<compile_context>
chip_gen: v7x
topology: tpu7x:2x2x1
jax: 0.10.0
libtpu: 0.0.40
codegen_flags: <defaults>
</compile_context>

<pallas_src>
from functools import partial

import jax
import jax.numpy as jnp
from jax.experimental import pallas as pl
from jax.experimental.pallas import tpu as pltpu


def _dkt_kernel(x_ref, m_ref,
                wfront_ref, bfront_ref,
                wih_ref, whh_ref, bcat_ref,
                wd_ref, bd_ref,
                h0_ref, c0_ref,
                out_ref, hT_ref, cT_ref,
                *, chunk, seq_len, hidden):
    """One grid step = `chunk` LSTM time steps for one batch block."""
    gc = pl.program_id(1)          # T-chunk index (serial / "arbitrary")
    H = hidden

    # Initialize the carried state (resident hT/cT output blocks) on the first
    # chunk of every batch block.
    @pl.when(gc == 0)
    def _():
        hT_ref[...] = h0_ref[...]
        cT_ref[...] = c0_ref[...]

    # Hoist weight loads out of the time loop.
    wfront = wfront_ref[...]       # [3, S*H]
    bfront = bfront_ref[...]       # [1, S*H]
    wih = wih_ref[...]             # [S*H, 4H]
    whh = whh_ref[...]             # [H, 4H]
    bcat = bcat_ref[...]           # [1, 4H]
    wd = wd_ref[...]               # [H, NP]   (decoder, lane-padded)
    bd = bd_ref[...]               # [1, NP]

    def step(i, carry):
        h, c = carry
        x = x_ref[i]               # [bb, 3]
        msk = m_ref[i]             # [bb, S*H] one-hot mask expanded over H

        # Front end: m1/m2 + all per-skill encoders in one lane-dense matmul.
        all_enc = jnp.dot(x, wfront, preferred_element_type=jnp.float32) + bfront
        sel = msk * all_enc        # zero every skill block except the chosen one

        # LSTMCell (PyTorch gate order i, f, g, o).  The masked [bb, S*H] feeds
        # the (S-tiled) input weight directly, so no explicit enc_out gather.
        gates = (jnp.dot(sel, wih, preferred_element_type=jnp.float32)
                 + jnp.dot(h, whh, preferred_element_type=jnp.float32)
                 + bcat)
        # 32-lane gate slices go to the (otherwise idle) XLU.
        i_g = jax.nn.sigmoid(gates[:, 0 * H:1 * H])
        f_g = jax.nn.sigmoid(gates[:, 1 * H:2 * H])
        g_g = jnp.tanh(gates[:, 2 * H:3 * H])
        o_g = jax.nn.sigmoid(gates[:, 3 * H:4 * H])
        c_new = f_g * c + i_g * g_g
        h_new = o_g * jnp.tanh(c_new)

        # Lane-dense (128-padded) per-step decoder output.
        out_ref[i] = jnp.dot(h_new, wd, preferred_element_type=jnp.float32) + bd

        # Guard against T padding: padded steps must not advance the state.
        valid = (gc * chunk + i) < seq_len
        h = jnp.where(valid, h_new, h)
        c = jnp.where(valid, c_new, c)
        return h, c

    h, c = jax.lax.fori_loop(0, chunk, step, (hT_ref[...], cT_ref[...]),
                             unroll=(chunk <= 16))
    hT_ref[...] = h
    cT_ref[...] = c


def dkt_forward(params, input_1, input_2, routers_info, hidden, *, chunk=None):
    """Pallas implementation of DeepKnowledgeTracing.forward.

    input_1: [B, T, 2] f32, input_2: [B, T, 1] f32, routers_info: [B, T] int32
    hidden:  (h0, c0) each [B, H] f32
    returns: (output [B*T, num_skills], (h_T, c_T))
    """
    B, T, _ = input_1.shape
    H = params["w_hh"].shape[1]
    NS = params["decoder_w"].shape[0]
    S = params["enc_w"].shape[0]
    SH = S * H
    NP = (-(-NS // 128)) * 128          # decoder output padded to 128 lanes
    h0, c0 = hidden

    # ---- time chunking (time loop runs inside the kernel) -------------------
    if chunk is None:
        chunk = T if T <= 32 else 32
    n_chunks = -(-T // chunk)
    T_pad = n_chunks * chunk

    # ---- batch blocking: gives v7x's second TensorCore independent work -----
    if B % 2 == 0 and (B // 2) % 8 == 0:
        bb = B // 2
    else:
        bb = B
    n_b = B // bb

    # ---- input re-layout (glue, tiny) ---------------------------------------
    x_cat = jnp.concatenate([input_1, input_2], axis=-1).astype(jnp.float32)  # [B,T,3]
    x_cat = jnp.transpose(x_cat, (1, 0, 2))                                   # [T,B,3]
    onehot = (jnp.transpose(routers_info, (1, 0)).astype(jnp.int32)[:, :, None]
              == jnp.arange(S, dtype=jnp.int32)[None, None, :]).astype(jnp.float32)  # [T,B,S]
    mask = jnp.broadcast_to(onehot[:, :, :, None], (T, B, S, H)).reshape(T, B, SH)
    if T_pad != T:
        pad = [(0, T_pad - T), (0, 0), (0, 0)]
        x_cat = jnp.pad(x_cat, pad)
        mask = jnp.pad(mask, pad)

    # ---- fold m1/m2 + per-skill encoders into one [3, S*H] matmul -----------
    Wm = jnp.zeros((3, 20), jnp.float32)
    Wm = Wm.at[0:2, 0:10].set(params["m1_w"].T)
    Wm = Wm.at[2:3, 10:20].set(params["m2_w"].T)
    bm = jnp.concatenate([params["m1_b"], params["m2_b"]])                 # [20]
    W_all = jnp.transpose(params["enc_w"], (2, 0, 1)).reshape(20, SH)      # [20, S*H]
    b_all = params["enc_b"].reshape(SH)                                    # [S*H]
    W_front = Wm @ W_all                                                   # [3, S*H]
    b_front = (bm @ W_all + b_all)[None, :]                                # [1, S*H]

    # LSTM input weight tiled over skills so masked [B,S*H] feeds it directly.
    W_ih_big = jnp.tile(params["w_ih"].T, (S, 1))                          # [S*H, 4H]
    W_hh_t = params["w_hh"].T                                              # [H, 4H]
    b_cat = (params["b_ih"] + params["b_hh"])[None, :]                     # [1, 4H]

    # Decoder padded to lane-dense 128 columns.
    wd_pad = jnp.zeros((H, NP), jnp.float32).at[:, :NS].set(params["decoder_w"].T)
    bd_pad = jnp.zeros((1, NP), jnp.float32).at[:, :NS].set(params["decoder_b"][None, :])

    def wspec(a):
        nd = a.ndim
        return pl.BlockSpec(a.shape, lambda bi, gc, nd=nd: (0,) * nd)

    in_specs = [
        pl.BlockSpec((chunk, bb, 3), lambda bi, gc: (gc, bi, 0)),    # x
        pl.BlockSpec((chunk, bb, SH), lambda bi, gc: (gc, bi, 0)),   # one-hot mask
        wspec(W_front), wspec(b_front),
        wspec(W_ih_big), wspec(W_hh_t), wspec(b_cat),
        wspec(wd_pad), wspec(bd_pad),
        pl.BlockSpec((bb, H), lambda bi, gc: (bi, 0)),               # h0
        pl.BlockSpec((bb, H), lambda bi, gc: (bi, 0)),               # c0
    ]
    out_specs = [
        pl.BlockSpec((chunk, bb, NP), lambda bi, gc: (gc, bi, 0)),   # per-step out
        pl.BlockSpec((bb, H), lambda bi, gc: (bi, 0)),               # final h
        pl.BlockSpec((bb, H), lambda bi, gc: (bi, 0)),               # final c
    ]

    grid_spec = pltpu.PrefetchScalarGridSpec(
        num_scalar_prefetch=0,
        grid=(n_b, n_chunks),
        in_specs=in_specs,
        out_specs=out_specs,
    )

    out_pad, h_T, c_T = pl.pallas_call(
        partial(_dkt_kernel, chunk=chunk, seq_len=T, hidden=H),
        out_shape=(jax.ShapeDtypeStruct((T_pad, B, NP), jnp.float32),
                   jax.ShapeDtypeStruct((B, H), jnp.float32),
                   jax.ShapeDtypeStruct((B, H), jnp.float32)),
        grid_spec=grid_spec,
        compiler_params=pltpu.CompilerParams(
            dimension_semantics=("parallel", "arbitrary")),
    )(x_cat, mask, W_front, b_front, W_ih_big, W_hh_t, b_cat,
      wd_pad, bd_pad, h0.astype(jnp.float32), c0.astype(jnp.float32))

    # outputs = stack(dim=1) then view(B*T, NS); strip the T / lane padding.
    output = jnp.transpose(out_pad[:T, :, :NS], (1, 0, 2)).reshape(B * T, NS)
    return output, (h_T, c_T)


def dkt_reference(params, input_1, input_2, routers_info, hidden):
    """Pure-JAX reference mirroring the PyTorch forward (uses a real gather)."""
    h, c = hidden
    B, T, _ = input_1.shape
    enc_wt = jnp.transpose(params["enc_w"], (0, 2, 1))  # [S, 20, H]
    outs = []
    for i in range(T):
        x1 = input_1[:, i]
        x2 = input_2[:, i]
        sk = routers_info[:, i]
        o1 = x1 @ params["m1_w"].T + params["m1_b"]
        o2 = x2 @ params["m2_w"].T + params["m2_b"]
        fused = jnp.concatenate([o1, o2], axis=1)       # [B, 20]
        bW = enc_wt[sk]                                 # [B, 20, H]
        bB = params["enc_b"][sk]                        # [B, H]
        xin = jnp.einsum("bk,bkh->bh", fused, bW) + bB
        gates = (xin @ params["w_ih"].T + params["b_ih"]
                 + h @ params["w_hh"].T + params["b_hh"])
        ig, fg, gg, og = jnp.split(gates, 4, axis=1)
        ig, fg, og = jax.nn.sigmoid(ig), jax.nn.sigmoid(fg), jax.nn.sigmoid(og)
        gg = jnp.tanh(gg)
        c = fg * c + ig * gg
        h = og * jnp.tanh(c)
        outs.append(h @ params["decoder_w"].T + params["decoder_b"])
    out = jnp.stack(outs, axis=1).reshape(B * T, -1)
    return out, (h, c)


def make_params(key, hidden_size, num_skills):
    ks = jax.random.split(key, 12)
    n = lambda k, shape, scale=0.05: scale * jax.random.normal(k, shape, dtype=jnp.float32)
    return {
        "m1_w": n(ks[0], (10, 2)),
        "m1_b": n(ks[1], (10,)),
        "m2_w": n(ks[2], (10, 1)),
        "m2_b": n(ks[3], (10,)),
        "enc_w": n(ks[4], (num_skills, hidden_size, 20)),   # nn.Linear(20, H).weight per skill
        "enc_b": n(ks[5], (num_skills, hidden_size)),
        "w_ih": n(ks[6], (4 * hidden_size, hidden_size)),
        "w_hh": n(ks[7], (4 * hidden_size, hidden_size)),
        "b_ih": n(ks[8], (4 * hidden_size,)),
        "b_hh": n(ks[9], (4 * hidden_size,)),
        "decoder_w": n(ks[10], (num_skills, hidden_size)),
        "decoder_b": n(ks[11], (num_skills,)),
    }


if __name__ == "__main__":
    # B = 32 because the PyTorch forward hardcodes range(32) for the per-sample
    # encoder gather; other dims kept small.
    B, T, H, NS = 32, 8, 32, 8

    key = jax.random.PRNGKey(0)
    kp, k1, k2, k3 = jax.random.split(key, 4)

    params = make_params(kp, H, NS)
    input_1 = jax.random.normal(k1, (B, T, 2), dtype=jnp.float32)
    input_2 = jax.random.normal(k2, (B, T, 1), dtype=jnp.float32)
    routers_info = jax.random.randint(k3, (B, T), 0, NS, dtype=jnp.int32)
    h0 = jnp.zeros((B, H), dtype=jnp.float32)
    c0 = jnp.zeros((B, H), dtype=jnp.float32)

    out, (h_T, c_T) = dkt_forward(params, input_1, input_2, routers_info, (h0, c0))
    jax.block_until_ready((out, h_T, c_T))

    ref_out, (ref_h, ref_c) = dkt_reference(params, input_1, input_2, routers_info, (h0, c0))
    assert out.shape == (B * T, NS)
    assert jnp.allclose(out, ref_out, atol=1e-4, rtol=1e-4)
    assert jnp.allclose(h_T, ref_h, atol=1e-4, rtol=1e-4)
    assert jnp.allclose(c_T, ref_c, atol=1e-4, rtol=1e-4)

    print("KERNEL_OK")
</pallas_src>

<mosaic_0001>
module attributes {stable_mosaic.version = 11 : i64} {
  func.func @_dkt_kernel(%arg0: i32, %arg1: i32, %arg2: memref<8x16x3xf32, #tpu.memory_space<vmem>>, %arg3: memref<8x16x256xf32, #tpu.memory_space<vmem>>, %arg4: memref<3x256xf32, #tpu.memory_space<vmem>>, %arg5: memref<1x256xf32, #tpu.memory_space<vmem>>, %arg6: memref<256x128xf32, #tpu.memory_space<vmem>>, %arg7: memref<32x128xf32, #tpu.memory_space<vmem>>, %arg8: memref<1x128xf32, #tpu.memory_space<vmem>>, %arg9: memref<32x128xf32, #tpu.memory_space<vmem>>, %arg10: memref<1x128xf32, #tpu.memory_space<vmem>>, %arg11: memref<16x32xf32, #tpu.memory_space<vmem>>, %arg12: memref<16x32xf32, #tpu.memory_space<vmem>>, %arg13: memref<8x16x128xf32, #tpu.memory_space<vmem>>, %arg14: memref<16x32xf32, #tpu.memory_space<vmem>>, %arg15: memref<16x32xf32, #tpu.memory_space<vmem>>) attributes {dimension_semantics = [#tpu.dimension_semantics<parallel>, #tpu.dimension_semantics<arbitrary>], iteration_bounds = array<i64: 2, 1>, scalar_prefetch = 0 : i64, scratch_operands = 0 : i64, tpu.core_type = #tpu.core_type<tc>, window_params = [{transform_indices = @transform_0, window_bounds = array<i64: 8, 16, 3>}, {transform_indices = @transform_1, window_bounds = array<i64: 8, 16, 256>}, {pipeline_mode = #tpu.pipeline_mode<synchronous>, transform_indices = @transform_2, window_bounds = array<i64: 3, 256>}, {pipeline_mode = #tpu.pipeline_mode<synchronous>, transform_indices = @transform_3, window_bounds = array<i64: 1, 256>}, {pipeline_mode = #tpu.pipeline_mode<synchronous>, transform_indices = @transform_4, window_bounds = array<i64: 256, 128>}, {pipeline_mode = #tpu.pipeline_mode<synchronous>, transform_indices = @transform_5, window_bounds = array<i64: 32, 128>}, {pipeline_mode = #tpu.pipeline_mode<synchronous>, transform_indices = @transform_6, window_bounds = array<i64: 1, 128>}, {pipeline_mode = #tpu.pipeline_mode<synchronous>, transform_indices = @transform_7, window_bounds = array<i64: 32, 128>}, {pipeline_mode = #tpu.pipeline_mode<synchronous>, transform_indices = @transform_8, window_bounds = array<i64: 1, 128>}, {transform_indices = @transform_9, window_bounds = array<i64: 16, 32>}, {transform_indices = @transform_10, window_bounds = array<i64: 16, 32>}, {transform_indices = @transform_11, window_bounds = array<i64: 8, 16, 128>}, {transform_indices = @transform_12, window_bounds = array<i64: 16, 32>}, {transform_indices = @transform_13, window_bounds = array<i64: 16, 32>}]} {
    %c0_i32 = arith.constant 0 : i32
    %0 = arith.cmpi eq, %arg1, %c0_i32 : i32
    %1 = arith.extui %0 : i1 to i32
    %c0_i32_0 = arith.constant 0 : i32
    %2 = arith.cmpi ne, %1, %c0_i32_0 : i32
    scf.if %2 {
      %c0_142 = arith.constant 0 : index
      %c0_143 = arith.constant 0 : index
      %430 = vector.load %arg11[%c0_142, %c0_143] : memref<16x32xf32, #tpu.memory_space<vmem>>, vector<16x32xf32>
      %c0_144 = arith.constant 0 : index
      %c0_145 = arith.constant 0 : index
      %431 = vector.load %arg14[%c0_144, %c0_145] : memref<16x32xf32, #tpu.memory_space<vmem>>, vector<16x32xf32>
      tpu.vector_store %arg14[%c0_144, %c0_145], %430 {strides = array<i32>} : memref<16x32xf32, #tpu.memory_space<vmem>>, vector<16x32xf32>,
      %c0_146 = arith.constant 0 : index
      %c0_147 = arith.constant 0 : index
      %432 = vector.load %arg12[%c0_146, %c0_147] : memref<16x32xf32, #tpu.memory_space<vmem>>, vector<16x32xf32>
      %c0_148 = arith.constant 0 : index
      %c0_149 = arith.constant 0 : index
      %433 = vector.load %arg15[%c0_148, %c0_149] : memref<16x32xf32, #tpu.memory_space<vmem>>, vector<16x32xf32>
      tpu.vector_store %arg15[%c0_148, %c0_149], %432 {strides = array<i32>} : memref<16x32xf32, #tpu.memory_space<vmem>>, vector<16x32xf32>,
    } else {
    }
    %c0 = arith.constant 0 : index
    %c0_1 = arith.constant 0 : index
    %3 = vector.load %arg4[%c0, %c0_1] : memref<3x256xf32, #tpu.memory_space<vmem>>, vector<3x256xf32>
    %c0_2 = arith.constant 0 : index
    %c0_3 = arith.constant 0 : index
    %4 = vector.load %arg5[%c0_2, %c0_3] : memref<1x256xf32, #tpu.memory_space<vmem>>, vector<1x256xf32>
    %c0_4 = arith.constant 0 : index
    %c0_5 = arith.constant 0 : index
    %5 = vector.load %arg6[%c0_4, %c0_5] : memref<256x128xf32, #tpu.memory_space<vmem>>, vector<256x128xf32>
    %c0_6 = arith.constant 0 : index
    %c0_7 = arith.constant 0 : index
    %6 = vector.load %arg7[%c0_6, %c0_7] : memref<32x128xf32, #tpu.memory_space<vmem>>, vector<32x128xf32>
    %c0_8 = arith.constant 0 : index
    %c0_9 = arith.constant 0 : index
    %7 = vector.load %arg8[%c0_8, %c0_9] : memref<1x128xf32, #tpu.memory_space<vmem>>, vector<1x128xf32>
    %c0_10 = arith.constant 0 : index
    %c0_11 = arith.constant 0 : index
    %8 = vector.load %arg9[%c0_10, %c0_11] : memref<32x128xf32, #tpu.memory_space<vmem>>, vector<32x128xf32>
    %c0_12 = arith.constant 0 : index
    %c0_13 = arith.constant 0 : index
    %9 = vector.load %arg10[%c0_12, %c0_13] : memref<1x128xf32, #tpu.memory_space<vmem>>, vector<1x128xf32>
    %c0_14 = arith.constant 0 : index
    %c0_15 = arith.constant 0 : index
    %10 = vector.load %arg14[%c0_14, %c0_15] : memref<16x32xf32, #tpu.memory_space<vmem>>, vector<16x32xf32>
    %c0_16 = arith.constant 0 : index
    %c0_17 = arith.constant 0 : index
    %11 = vector.load %arg15[%c0_16, %c0_17] : memref<16x32xf32, #tpu.memory_space<vmem>>, vector<16x32xf32>
    %c0_i32_18 = arith.constant 0 : i32
    %12 = arith.index_cast %c0_i32_18 : i32 to index
    %c0_19 = arith.constant 0 : index
    %c0_20 = arith.constant 0 : index
    %13 = vector.load %arg2[%12, %c0_19, %c0_20] : memref<8x16x3xf32, #tpu.memory_space<vmem>>, vector<1x16x3xf32>
    %14 = vector.shape_cast %13 : vector<1x16x3xf32> to vector<16x3xf32>
    %15 = arith.index_cast %c0_i32_18 : i32 to index
    %c0_21 = arith.constant 0 : index
    %c0_22 = arith.constant 0 : index
    %16 = vector.load %arg3[%15, %c0_21, %c0_22] : memref<8x16x256xf32, #tpu.memory_space<vmem>>, vector<1x16x256xf32>
    %17 = vector.shape_cast %16 : vector<1x16x256xf32> to vector<16x256xf32>
    %cst = arith.constant dense<0.000000e+00> : vector<16x256xf32>
    %18 = tpu.matmul %14, %3, %cst {dimension_numbers = #tpu.dot_dimension_numbers<[1], [0], [0], [1], [0, 0, 1, 1], [], []>} : vector<16x3xf32>, vector<3x256xf32>, vector<16x256xf32> -> vector<16x256xf32>
    %19 = vector.broadcast %4 : vector<1x256xf32> to vector<16x256xf32>
    %20 = arith.addf %18, %19 : vector<16x256xf32>
    %21 = arith.mulf %17, %20 : vector<16x256xf32>
    %cst_23 = arith.constant dense<0.000000e+00> : vector<16x128xf32>
    %22 = tpu.matmul %21, %5, %cst_23 {dimension_numbers = #tpu.dot_dimension_numbers<[1], [0], [0], [1], [0, 0, 1, 1], [], []>} : vector<16x256xf32>, vector<256x128xf32>, vector<16x128xf32> -> vector<16x128xf32>
    %cst_24 = arith.constant dense<0.000000e+00> : vector<16x128xf32>
    %23 = tpu.matmul %10, %6, %cst_24 {dimension_numbers = #tpu.dot_dimension_numbers<[1], [0], [0], [1], [0, 0, 1, 1], [], []>} : vector<16x32xf32>, vector<32x128xf32>, vector<16x128xf32> -> vector<16x128xf32>
    %24 = arith.addf %22, %23 : vector<16x128xf32>
    %25 = vector.broadcast %7 : vector<1x128xf32> to vector<16x128xf32>
    %26 = arith.addf %24, %25 : vector<16x128xf32>
    %27 = vector.extract_strided_slice %26 {offsets = [0, 0], sizes = [16, 32], strides = [1, 1]} : vector<16x128xf32> to vector<16x32xf32>
    %28 = arith.negf %27 : vector<16x32xf32>
    %29 = math.exp %28 : vector<16x32xf32>
    %cst_25 = arith.constant 1.000000e+00 : f32
    %30 = vector.broadcast %cst_25 : f32 to vector<16x32xf32>
    %31 = arith.addf %30, %29 : vector<16x32xf32>
    %32 = arith.divf %30, %31 : vector<16x32xf32>
    %33 = vector.extract_strided_slice %26 {offsets = [0, 32], sizes = [16, 32], strides = [1, 1]} : vector<16x128xf32> to vector<16x32xf32>
    %34 = arith.negf %33 : vector<16x32xf32>
    %35 = math.exp %34 : vector<16x32xf32>
    %cst_26 = arith.constant 1.000000e+00 : f32
    %36 = vector.broadcast %cst_26 : f32 to vector<16x32xf32>
    %37 = arith.addf %36, %35 : vector<16x32xf32>
    %38 = arith.divf %36, %37 : vector<16x32xf32>
    %39 = vector.extract_strided_slice %26 {offsets = [0, 64], sizes = [16, 32], strides = [1, 1]} : vector<16x128xf32> to vector<16x32xf32>
    %40 = math.tanh %39 : vector<16x32xf32>
    %41 = vector.extract_strided_slice %26 {offsets = [0, 96], sizes = [16, 32], strides = [1, 1]} : vector<16x128xf32> to vector<16x32xf32>
    %42 = arith.negf %41 : vector<16x32xf32>
    %43 = math.exp %42 : vector<16x32xf32>
    %cst_27 = arith.constant 1.000000e+00 : f32
    %44 = vector.broadcast %cst_27 : f32 to vector<16x32xf32>
    %45 = arith.addf %44, %43 : vector<16x32xf32>
    %46 = arith.divf %44, %45 : vector<16x32xf32>
    %47 = arith.mulf %38, %11 : vector<16x32xf32>
    %48 = arith.mulf %32, %40 : vector<16x32xf32>
    %49 = arith.addf %47, %48 : vector<16x32xf32>
    %50 = math.tanh %49 : vector<16x32xf32>
    %51 = arith.mulf %46, %50 : vector<16x32xf32>
    %cst_28 = arith.constant dense<0.000000e+00> : vector<16x128xf32>
    %52 = tpu.matmul %51, %8, %cst_28 {dimension_numbers = #tpu.dot_dimension_numbers<[1], [0], [0], [1], [0, 0, 1, 1], [], []>} : vector<16x32xf32>, vector<32x128xf32>, vector<16x128xf32> -> vector<16x128xf32>
    %53 = vector.broadcast %9 : vector<1x128xf32> to vector<16x128xf32>
    %54 = arith.addf %52, %53 : vector<16x128xf32>
    %55 = arith.index_cast %c0_i32_18 : i32 to index
    %c0_29 = arith.constant 0 : index
    %c0_30 = arith.constant 0 : index
    %56 = vector.load %arg13[%55, %c0_29, %c0_30] : memref<8x16x128xf32, #tpu.memory_space<vmem>>, vector<1x16x128xf32>
    %57 = vector.shape_cast %56 : vector<1x16x128xf32> to vector<16x128xf32>
    %58 = vector.shape_cast %54 : vector<16x128xf32> to vector<1x16x128xf32>
    tpu.vector_store %arg13[%55, %c0_29, %c0_30], %58 {strides = array<i32>} : memref<8x16x128xf32, #tpu.memory_space<vmem>>, vector<1x16x128xf32>,
    %c8_i32 = arith.constant 8 : i32
    %59 = arith.muli %arg1, %c8_i32 : i32
    %60 = arith.addi %59, %c0_i32_18 : i32
    %c8_i32_31 = arith.constant 8 : i32
    %61 = arith.cmpi slt, %60, %c8_i32_31 : i32
    %62 = arith.select %61, %51, %10 : vector<16x32xf32>
    %63 = arith.select %61, %49, %11 : vector<16x32xf32>
    %c1_i32 = arith.constant 1 : i32
    %64 = arith.index_cast %c1_i32 : i32 to index
    %c0_32 = arith.constant 0 : index
    %c0_33 = arith.constant 0 : index
    %65 = vector.load %arg2[%64, %c0_32, %c0_33] : memref<8x16x3xf32, #tpu.memory_space<vmem>>, vector<1x16x3xf32>
    %66 = vector.shape_cast %65 : vector<1x16x3xf32> to vector<16x3xf32>
    %67 = arith.index_cast %c1_i32 : i32 to index
    %c0_34 = arith.constant 0 : index
    %c0_35 = arith.constant 0 : index
    %68 = vector.load %arg3[%67, %c0_34, %c0_35] : memref<8x16x256xf32, #tpu.memory_space<vmem>>, vector<1x16x256xf32>
    %69 = vector.shape_cast %68 : vector<1x16x256xf32> to vector<16x256xf32>
    %cst_36 = arith.constant dense<0.000000e+00> : vector<16x256xf32>
    %70 = tpu.matmul %66, %3, %cst_36 {dimension_numbers = #tpu.dot_dimension_numbers<[1], [0], [0], [1], [0, 0, 1, 1], [], []>} : vector<16x3xf32>, vector<3x256xf32>, vector<16x256xf32> -> vector<16x256xf32>
    %71 = vector.broadcast %4 : vector<1x256xf32> to vector<16x256xf32>
    %72 = arith.addf %70, %71 : vector<16x256xf32>
    %73 = arith.mulf %69, %72 : vector<16x256xf32>
    %cst_37 = arith.constant dense<0.000000e+00> : vector<16x128xf32>
    %74 = tpu.matmul %73, %5, %cst_37 {dimension_numbers = #tpu.dot_dimension_numbers<[1], [0], [0], [1], [0, 0, 1, 1], [], []>} : vector<16x256xf32>, vector<256x128xf32>, vector<16x128xf32> -> vector<16x128xf32>
    %cst_38 = arith.constant dense<0.000000e+00> : vector<16x128xf32>
    %75 = tpu.matmul %62, %6, %cst_38 {dimension_numbers = #tpu.dot_dimension_numbers<[1], [0], [0], [1], [0, 0, 1, 1], [], []>} : vector<16x32xf32>, vector<32x128xf32>, vector<16x128xf32> -> vector<16x128xf32>
    %76 = arith.addf %74, %75 : vector<16x128xf32>
    %77 = vector.broadcast %7 : vector<1x128xf32> to vector<16x128xf32>
    %78 = arith.addf %76, %77 : vector<16x128xf32>
    %79 = vector.extract_strided_slice %78 {offsets = [0, 0], sizes = [16, 32], strides = [1, 1]} : vector<16x128xf32> to vector<16x32xf32>
    %80 = arith.negf %79 : vector<16x32xf32>
    %81 = math.exp %80 : vector<16x32xf32>
    %cst_39 = arith.constant 1.000000e+00 : f32
    %82 = vector.broadcast %cst_39 : f32 to vector<16x32xf32>
    %83 = arith.addf %82, %81 : vector<16x32xf32>
    %84 = arith.divf %82, %83 : vector<16x32xf32>
    %85 = vector.extract_strided_slice %78 {offsets = [0, 32], sizes = [16, 32], strides = [1, 1]} : vector<16x128xf32> to vector<16x32xf32>
    %86 = arith.negf %85 : vector<16x32xf32>
    %87 = math.exp %86 : vector<16x32xf32>
    %cst_40 = arith.constant 1.000000e+00 : f32
    %88 = vector.broadcast %cst_40 : f32 to vector<16x32xf32>
    %89 = arith.addf %88, %87 : vector<16x32xf32>
    %90 = arith.divf %88, %89 : vector<16x32xf32>
    %91 = vector.extract_strided_slice %78 {offsets = [0, 64], sizes = [16, 32], strides = [1, 1]} : vector<16x128xf32> to vector<16x32xf32>
    %92 = math.tanh %91 : vector<16x32xf32>
    %93 = vector.extract_strided_slice %78 {offsets = [0, 96], sizes = [16, 32], strides = [1, 1]} : vector<16x128xf32> to vector<16x32xf32>
    %94 = arith.negf %93 : vector<16x32xf32>
    %95 = math.exp %94 : vector<16x32xf32>
    %cst_41 = arith.constant 1.000000e+00 : f32
    %96 = vector.broadcast %cst_41 : f32 to vector<16x32xf32>
    %97 = arith.addf %96, %95 : vector<16x32xf32>
    %98 = arith.divf %96, %97 : vector<16x32xf32>
    %99 = arith.mulf %90, %63 : vector<16x32xf32>
    %100 = arith.mulf %84, %92 : vector<16x32xf32>
    %101 = arith.addf %99, %100 : vector<16x32xf32>
    %102 = math.tanh %101 : vector<16x32xf32>
    %103 = arith.mulf %98, %102 : vector<16x32xf32>
    %cst_42 = arith.constant dense<0.000000e+00> : vector<16x128xf32>
    %104 = tpu.matmul %103, %8, %cst_42 {dimension_numbers = #tpu.dot_dimension_numbers<[1], [0], [0], [1], [0, 0, 1, 1], [], []>} : vector<16x32xf32>, vector<32x128xf32>, vector<16x128xf32> -> vector<16x128xf32>
    %105 = vector.broadcast %9 : vector<1x128xf32> to vector<16x128xf32>
    %106 = arith.addf %104, %105 : vector<16x128xf32>
    %107 = arith.index_cast %c1_i32 : i32 to index
    %c0_43 = arith.constant 0 : index
    %c0_44 = arith.constant 0 : index
    %108 = vector.load %arg13[%107, %c0_43, %c0_44] : memref<8x16x128xf32, #tpu.memory_space<vmem>>, vector<1x16x128xf32>
    %109 = vector.shape_cast %108 : vector<1x16x128xf32> to vector<16x128xf32>
    %110 = vector.shape_cast %106 : vector<16x128xf32> to vector<1x16x128xf32>
    tpu.vector_store %arg13[%107, %c0_43, %c0_44], %110 {strides = array<i32>} : memref<8x16x128xf32, #tpu.memory_space<vmem>>, vector<1x16x128xf32>,
    %c8_i32_45 = arith.constant 8 : i32
    %111 = arith.muli %arg1, %c8_i32_45 : i32
    %112 = arith.addi %111, %c1_i32 : i32
    %c8_i32_46 = arith.constant 8 : i32
    %113 = arith.cmpi slt, %112, %c8_i32_46 : i32
    %114 = arith.select %113, %103, %62 : vector<16x32xf32>
    %115 = arith.select %113, %101, %63 : vector<16x32xf32>
    %c2_i32 = arith.constant 2 : i32
    %116 = arith.index_cast %c2_i32 : i32 to index
    %c0_47 = arith.constant 0 : index
    %c0_48 = arith.constant 0 : index
    %117 = vector.load %arg2[%116, %c0_47, %c0_48] : memref<8x16x3xf32, #tpu.memory_space<vmem>>, vector<1x16x3xf32>
    %118 = vector.shape_cast %117 : vector<1x16x3xf32> to vector<16x3xf32>
    %119 = arith.index_cast %c2_i32 : i32 to index
    %c0_49 = arith.constant 0 : index
    %c0_50 = arith.constant 0 : index
    %120 = vector.load %arg3[%119, %c0_49, %c0_50] : memref<8x16x256xf32, #tpu.memory_space<vmem>>, vector<1x16x256xf32>
    %121 = vector.shape_cast %120 : vector<1x16x256xf32> to vector<16x256xf32>
    %cst_51 = arith.constant dense<0.000000e+00> : vector<16x256xf32>
    %122 = tpu.matmul %118, %3, %cst_51 {dimension_numbers = #tpu.dot_dimension_numbers<[1], [0], [0], [1], [0, 0, 1, 1], [], []>} : vector<16x3xf32>, vector<3x256xf32>, vector<16x256xf32> -> vector<16x256xf32>
    %123 = vector.broadcast %4 : vector<1x256xf32> to vector<16x256xf32>
    %124 = arith.addf %122, %123 : vector<16x256xf32>
    %125 = arith.mulf %121, %124 : vector<16x256xf32>
    %cst_52 = arith.constant dense<0.000000e+00> : vector<16x128xf32>
    %126 = tpu.matmul %125, %5, %cst_52 {dimension_numbers = #tpu.dot_dimension_numbers<[1], [0], [0], [1], [0, 0, 1, 1], [], []>} : vector<16x256xf32>, vector<256x128xf32>, vector<16x128xf32> -> vector<16x128xf32>
    %cst_53 = arith.constant dense<0.000000e+00> : vector<16x128xf32>
    %127 = tpu.matmul %114, %6, %cst_53 {dimension_numbers = #tpu.dot_dimension_numbers<[1], [0], [0], [1], [0, 0, 1, 1], [], []>} : vector<16x32xf32>, vector<32x128xf32>, vector<16x128xf32> -> vector<16x128xf32>
    %128 = arith.addf %126, %127 : vector<16x128xf32>
    %129 = vector.broadcast %7 : vector<1x128xf32> to vector<16x128xf32>
    %130 = arith.addf %128, %129 : vector<16x128xf32>
    %131 = vector.extract_strided_slice %130 {offsets = [0, 0], sizes = [16, 32], strides = [1, 1]} : vector<16x128xf32> to vector<16x32xf32>
    %132 = arith.negf %131 : vector<16x32xf32>
    %133 = math.exp %132 : vector<16x32xf32>
    %cst_54 = arith.constant 1.000000e+00 : f32
    %134 = vector.broadcast %cst_54 : f32 to vector<16x32xf32>
    %135 = arith.addf %134, %133 : vector<16x32xf32>
    %136 = arith.divf %134, %135 : vector<16x32xf32>
    %137 = vector.extract_strided_slice %130 {offsets = [0, 32], sizes = [16, 32], strides = [1, 1]} : vector<16x128xf32> to vector<16x32xf32>
    %138 = arith.negf %137 : vector<16x32xf32>
    %139 = math.exp %138 : vector<16x32xf32>
    %cst_55 = arith.constant 1.000000e+00 : f32
    %140 = vector.broadcast %cst_55 : f32 to vector<16x32xf32>
    %141 = arith.addf %140, %139 : vector<16x32xf32>
    %142 = arith.divf %140, %141 : vector<16x32xf32>
    %143 = vector.extract_strided_slice %130 {offsets = [0, 64], sizes = [16, 32], strides = [1, 1]} : vector<16x128xf32> to vector<16x32xf32>
    %144 = math.tanh %143 : vector<16x32xf32>
    %145 = vector.extract_strided_slice %130 {offsets = [0, 96], sizes = [16, 32], strides = [1, 1]} : vector<16x128xf32> to vector<16x32xf32>
    %146 = arith.negf %145 : vector<16x32xf32>
    %147 = math.exp %146 : vector<16x32xf32>
    %cst_56 = arith.constant 1.000000e+00 : f32
    %148 = vector.broadcast %cst_56 : f32 to vector<16x32xf32>
    %149 = arith.addf %148, %147 : vector<16x32xf32>
    %150 = arith.divf %148, %149 : vector<16x32xf32>
    %151 = arith.mulf %142, %115 : vector<16x32xf32>
    %152 = arith.mulf %136, %144 : vector<16x32xf32>
    %153 = arith.addf %151, %152 : vector<16x32xf32>
    %154 = math.tanh %153 : vector<16x32xf32>
    %155 = arith.mulf %150, %154 : vector<16x32xf32>
    %cst_57 = arith.constant dense<0.000000e+00> : vector<16x128xf32>
    %156 = tpu.matmul %155, %8, %cst_57 {dimension_numbers = #tpu.dot_dimension_numbers<[1], [0], [0], [1], [0, 0, 1, 1], [], []>} : vector<16x32xf32>, vector<32x128xf32>, vector<16x128xf32> -> vector<16x128xf32>
    %157 = vector.broadcast %9 : vector<1x128xf32> to vector<16x128xf32>
    %158 = arith.addf %156, %157 : vector<16x128xf32>
    %159 = arith.index_cast %c2_i32 : i32 to index
    %c0_58 = arith.constant 0 : index
    %c0_59 = arith.constant 0 : index
    %160 = vector.load %arg13[%159, %c0_58, %c0_59] : memref<8x16x128xf32, #tpu.memory_space<vmem>>, vector<1x16x128xf32>
    %161 = vector.shape_cast %160 : vector<1x16x128xf32> to vector<16x128xf32>
    %162 = vector.shape_cast %158 : vector<16x128xf32> to vector<1x16x128xf32>
    tpu.vector_store %arg13[%159, %c0_58, %c0_59], %162 {strides = array<i32>} : memref<8x16x128xf32, #tpu.memory_space<vmem>>, vector<1x16x128xf32>,
    %c8_i32_60 = arith.constant 8 : i32
    %163 = arith.muli %arg1, %c8_i32_60 : i32
    %164 = arith.addi %163, %c2_i32 : i32
    %c8_i32_61 = arith.constant 8 : i32
    %165 = arith.cmpi slt, %164, %c8_i32_61 : i32
    %166 = arith.select %165, %155, %114 : vector<16x32xf32>
    %167 = arith.select %165, %153, %115 : vector<16x32xf32>
    %c3_i32 = arith.constant 3 : i32
    %168 = arith.index_cast %c3_i32 : i32 to index
    %c0_62 = arith.constant 0 : index
    %c0_63 = arith.constant 0 : index
    %169 = vector.load %arg2[%168, %c0_62, %c0_63] : memref<8x16x3xf32, #tpu.memory_space<vmem>>, vector<1x16x3xf32>
    %170 = vector.shape_cast %169 : vector<1x16x3xf32> to vector<16x3xf32>
    %171 = arith.index_cast %c3_i32 : i32 to index
    %c0_64 = arith.constant 0 : index
    %c0_65 = arith.constant 0 : index
    %172 = vector.load %arg3[%171, %c0_64, %c0_65] : memref<8x16x256xf32, #tpu.memory_space<vmem>>, vector<1x16x256xf32>
    %173 = vector.shape_cast %172 : vector<1x16x256xf32> to vector<16x256xf32>
    %cst_66 = arith.constant dense<0.000000e+00> : vector<16x256xf32>
    %174 = tpu.matmul %170, %3, %cst_66 {dimension_numbers = #tpu.dot_dimension_numbers<[1], [0], [0], [1], [0, 0, 1, 1], [], []>} : vector<16x3xf32>, vector<3x256xf32>, vector<16x256xf32> -> vector<16x256xf32>
    %175 = vector.broadcast %4 : vector<1x256xf32> to vector<16x256xf32>
    %176 = arith.addf %174, %175 : vector<16x256xf32>
    %177 = arith.mulf %173, %176 : vector<16x256xf32>
    %cst_67 = arith.constant dense<0.000000e+00> : vector<16x128xf32>
    %178 = tpu.matmul %177, %5, %cst_67 {dimension_numbers = #tpu.dot_dimension_numbers<[1], [0], [0], [1], [0, 0, 1, 1], [], []>} : vector<16x256xf32>, vector<256x128xf32>, vector<16x128xf32> -> vector<16x128xf32>
    %cst_68 = arith.constant dense<0.000000e+00> : vector<16x128xf32>
    %179 = tpu.matmul %166, %6, %cst_68 {dimension_numbers = #tpu.dot_dimension_numbers<[1], [0], [0], [1], [0, 0, 1, 1], [], []>} : vector<16x32xf32>, vector<32x128xf32>, vector<16x128xf32> -> vector<16x128xf32>
    %180 = arith.addf %178, %179 : vector<16x128xf32>
    %181 = vector.broadcast %7 : vector<1x128xf32> to vector<16x128xf32>
    %182 = arith.addf %180, %181 : vector<16x128xf32>
    %183 = vector.extract_strided_slice %182 {offsets = [0, 0], sizes = [16, 32], strides = [1, 1]} : vector<16x128xf32> to vector<16x32xf32>
    %184 = arith.negf %183 : vector<16x32xf32>
    %185 = math.exp %184 : vector<16x32xf32>
    %cst_69 = arith.constant 1.000000e+00 : f32
    %186 = vector.broadcast %cst_69 : f32 to vector<16x32xf32>
    %187 = arith.addf %186, %185 : vector<16x32xf32>
    %188 = arith.divf %186, %187 : vector<16x32xf32>
    %189 = vector.extract_strided_slice %182 {offsets = [0, 32], sizes = [16, 32], strides = [1, 1]} : vector<16x128xf32> to vector<16x32xf32>
    %190 = arith.negf %189 : vector<16x32xf32>
    %191 = math.exp %190 : vector<16x32xf32>
    %cst_70 = arith.constant 1.000000e+00 : f32
    %192 = vector.broadcast %cst_70 : f32 to vector<16x32xf32>
    %193 = arith.addf %192, %191 : vector<16x32xf32>
    %194 = arith.divf %192, %193 : vector<16x32xf32>
    %195 = vector.extract_strided_slice %182 {offsets = [0, 64], sizes = [16, 32], strides = [1, 1]} : vector<16x128xf32> to vector<16x32xf32>
    %196 = math.tanh %195 : vector<16x32xf32>
    %197 = vector.extract_strided_slice %182 {offsets = [0, 96], sizes = [16, 32], strides = [1, 1]} : vector<16x128xf32> to vector<16x32xf32>
    %198 = arith.negf %197 : vector<16x32xf32>
    %199 = math.exp %198 : vector<16x32xf32>
    %cst_71 = arith.constant 1.000000e+00 : f32
    %200 = vector.broadcast %cst_71 : f32 to vector<16x32xf32>
    %201 = arith.addf %200, %199 : vector<16x32xf32>
    %202 = arith.divf %200, %201 : vector<16x32xf32>
    %203 = arith.mulf %194, %167 : vector<16x32xf32>
    %204 = arith.mulf %188, %196 : vector<16x32xf32>
    %205 = arith.addf %203, %204 : vector<16x32xf32>
    %206 = math.tanh %205 : vector<16x32xf32>
    %207 = arith.mulf %202, %206 : vector<16x32xf32>
    %cst_72 = arith.constant dense<0.000000e+00> : vector<16x128xf32>
    %208 = tpu.matmul %207, %8, %cst_72 {dimension_numbers = #tpu.dot_dimension_numbers<[1], [0], [0], [1], [0, 0, 1, 1], [], []>} : vector<16x32xf32>, vector<32x128xf32>, vector<16x128xf32> -> vector<16x128xf32>
    %209 = vector.broadcast %9 : vector<1x128xf32> to vector<16x128xf32>
    %210 = arith.addf %208, %209 : vector<16x128xf32>
    %211 = arith.index_cast %c3_i32 : i32 to index
    %c0_73 = arith.constant 0 : index
    %c0_74 = arith.constant 0 : index
    %212 = vector.load %arg13[%211, %c0_73, %c0_74] : memref<8x16x128xf32, #tpu.memory_space<vmem>>, vector<1x16x128xf32>
    %213 = vector.shape_cast %212 : vector<1x16x128xf32> to vector<16x128xf32>
    %214 = vector.shape_cast %210 : vector<16x128xf32> to vector<1x16x128xf32>
    tpu.vector_store %arg13[%211, %c0_73, %c0_74], %214 {strides = array<i32>} : memref<8x16x128xf32, #tpu.memory_space<vmem>>, vector<1x16x128xf32>,
    %c8_i32_75 = arith.constant 8 : i32
    %215 = arith.muli %arg1, %c8_i32_75 : i32
    %216 = arith.addi %215, %c3_i32 : i32
    %c8_i32_76 = arith.constant 8 : i32
    %217 = arith.cmpi slt, %216, %c8_i32_76 : i32
    %218 = arith.select %217, %207, %166 : vector<16x32xf32>
    %219 = arith.select %217, %205, %167 : vector<16x32xf32>
    %c4_i32 = arith.constant 4 : i32
    %220 = arith.index_cast %c4_i32 : i32 to index
    %c0_77 = arith.constant 0 : index
    %c0_78 = arith.constant 0 : index
    %221 = vector.load %arg2[%220, %c0_77, %c0_78] : memref<8x16x3xf32, #tpu.memory_space<vmem>>, vector<1x16x3xf32>
    %222 = vector.shape_cast %221 : vector<1x16x3xf32> to vector<16x3xf32>
    %223 = arith.index_cast %c4_i32 : i32 to index
    %c0_79 = arith.constant 0 : index
    %c0_80 = arith.constant 0 : index
    %224 = vector.load %arg3[%223, %c0_79, %c0_80] : memref<8x16x256xf32, #tpu.memory_space<vmem>>, vector<1x16x256xf32>
    %225 = vector.shape_cast %224 : vector<1x16x256xf32> to vector<16x256xf32>
    %cst_81 = arith.constant dense<0.000000e+00> : vector<16x256xf32>
    %226 = tpu.matmul %222, %3, %cst_81 {dimension_numbers = #tpu.dot_dimension_numbers<[1], [0], [0], [1], [0, 0, 1, 1], [], []>} : vector<16x3xf32>, vector<3x256xf32>, vector<16x256xf32> -> vector<16x256xf32>
    %227 = vector.broadcast %4 : vector<1x256xf32> to vector<16x256xf32>
    %228 = arith.addf %226, %227 : vector<16x256xf32>
    %229 = arith.mulf %225, %228 : vector<16x256xf32>
    %cst_82 = arith.constant dense<0.000000e+00> : vector<16x128xf32>
    %230 = tpu.matmul %229, %5, %cst_82 {dimension_numbers = #tpu.dot_dimension_numbers<[1], [0], [0], [1], [0, 0, 1, 1], [], []>} : vector<16x256xf32>, vector<256x128xf32>, vector<16x128xf32> -> vector<16x128xf32>
    %cst_83 = arith.constant dense<0.000000e+00> : vector<16x128xf32>
    %231 = tpu.matmul %218, %6, %cst_83 {dimension_numbers = #tpu.dot_dimension_numbers<[1], [0], [0], [1], [0, 0, 1, 1], [], []>} : vector<16x32xf32>, vector<32x128xf32>, vector<16x128xf32> -> vector<16x128xf32>
    %232 = arith.addf %230, %231 : vector<16x128xf32>
    %233 = vector.broadcast %7 : vector<1x128xf32> to vector<16x128xf32>
    %234 = arith.addf %232, %233 : vector<16x128xf32>
    %235 = vector.extract_strided_slice %234 {offsets = [0, 0], sizes = [16, 32], strides = [1, 1]} : vector<16x128xf32> to vector<16x32xf32>
    %236 = arith.negf %235 : vector<16x32xf32>
    %237 = math.exp %236 : vector<16x32xf32>
    %cst_84 = arith.constant 1.000000e+00 : f32
    %238 = vector.broadcast %cst_84 : f32 to vector<16x32xf32>
    %239 = arith.addf %238, %237 : vector<16x32xf32>
    %240 = arith.divf %238, %239 : vector<16x32xf32>
    %241 = vector.extract_strided_slice %234 {offsets = [0, 32], sizes = [16, 32], strides = [1, 1]} : vector<16x128xf32> to vector<16x32xf32>
    %242 = arith.negf %241 : vector<16x32xf32>
    %243 = math.exp %242 : vector<16x32xf32>
    %cst_85 = arith.constant 1.000000e+00 : f32
    %244 = vector.broadcast %cst_85 : f32 to vector<16x32xf32>
    %245 = arith.addf %244, %243 : vector<16x32xf32>
    %246 = arith.divf %244, %245 : vector<16x32xf32>
    %247 = vector.extract_strided_slice %234 {offsets = [0, 64], sizes = [16, 32], strides = [1, 1]} : vector<16x128xf32> to vector<16x32xf32>
    %248 = math.tanh %247 : vector<16x32xf32>
    %249 = vector.extract_strided_slice %234 {offsets = [0, 96], sizes = [16, 32], strides = [1, 1]} : vector<16x128xf32> to vector<16x32xf32>
    %250 = arith.negf %249 : vector<16x32xf32>
    %251 = math.exp %250 : vector<16x32xf32>
    %cst_86 = arith.constant 1.000000e+00 : f32
    %252 = vector.broadcast %cst_86 : f32 to vector<16x32xf32>
    %253 = arith.addf %252, %251 : vector<16x32xf32>
    %254 = arith.divf %252, %253 : vector<16x32xf32>
    %255 = arith.mulf %246, %219 : vector<16x32xf32>
    %256 = arith.mulf %240, %248 : vector<16x32xf32>
    %257 = arith.addf %255, %256 : vector<16x32xf32>
    %258 = math.tanh %257 : vector<16x32xf32>
    %259 = arith.mulf %254, %258 : vector<16x32xf32>
    %cst_87 = arith.constant dense<0.000000e+00> : vector<16x128xf32>
    %260 = tpu.matmul %259, %8, %cst_87 {dimension_numbers = #tpu.dot_dimension_numbers<[1], [0], [0], [1], [0, 0, 1, 1], [], []>} : vector<16x32xf32>, vector<32x128xf32>, vector<16x128xf32> -> vector<16x128xf32>
    %261 = vector.broadcast %9 : vector<1x128xf32> to vector<16x128xf32>
    %262 = arith.addf %260, %261 : vector<16x128xf32>
    %263 = arith.index_cast %c4_i32 : i32 to index
    %c0_88 = arith.constant 0 : index
    %c0_89 = arith.constant 0 : index
    %264 = vector.load %arg13[%263, %c0_88, %c0_89] : memref<8x16x128xf32, #tpu.memory_space<vmem>>, vector<1x16x128xf32>
    %265 = vector.shape_cast %264 : vector<1x16x128xf32> to vector<16x128xf32>
    %266 = vector.shape_cast %262 : vector<16x128xf32> to vector<1x16x128xf32>
    tpu.vector_store %arg13[%263, %c0_88, %c0_89], %266 {strides = array<i32>} : memref<8x16x128xf32, #tpu.memory_space<vmem>>, vector<1x16x128xf32>,
    %c8_i32_90 = arith.constant 8 : i32
    %267 = arith.muli %arg1, %c8_i32_90 : i32
    %268 = arith.addi %267, %c4_i32 : i32
    %c8_i32_91 = arith.constant 8 : i32
    %269 = arith.cmpi slt, %268, %c8_i32_91 : i32
    %270 = arith.select %269, %259, %218 : vector<16x32xf32>
    %271 = arith.select %269, %257, %219 : vector<16x32xf32>
    %c5_i32 = arith.constant 5 : i32
    %272 = arith.index_cast %c5_i32 : i32 to index
    %c0_92 = arith.constant 0 : index
    %c0_93 = arith.constant 0 : index
    %273 = vector.load %arg2[%272, %c0_92, %c0_93] : memref<8x16x3xf32, #tpu.memory_space<vmem>>, vector<1x16x3xf32>
    %274 = vector.shape_cast %273 : vector<1x16x3xf32> to vector<16x3xf32>
    %275 = arith.index_cast %c5_i32 : i32 to index
    %c0_94 = arith.constant 0 : index
    %c0_95 = arith.constant 0 : index
    %276 = vector.load %arg3[%275, %c0_94, %c0_95] : memref<8x16x256xf32, #tpu.memory_space<vmem>>, vector<1x16x256xf32>
    %277 = vector.shape_cast %276 : vector<1x16x256xf32> to vector<16x256xf32>
    %cst_96 = arith.constant dense<0.000000e+00> : vector<16x256xf32>
    %278 = tpu.matmul %274, %3, %cst_96 {dimension_numbers = #tpu.dot_dimension_numbers<[1], [0], [0], [1], [0, 0, 1, 1], [], []>} : vector<16x3xf32>, vector<3x256xf32>, vector<16x256xf32> -> vector<16x256xf32>
    %279 = vector.broadcast %4 : vector<1x256xf32> to vector<16x256xf32>
    %280 = arith.addf %278, %279 : vector<16x256xf32>
    %281 = arith.mulf %277, %280 : vector<16x256xf32>
    %cst_97 = arith.constant dense<0.000000e+00> : vector<16x128xf32>
    %282 = tpu.matmul %281, %5, %cst_97 {dimension_numbers = #tpu.dot_dimension_numbers<[1], [0], [0], [1], [0, 0, 1, 1], [], []>} : vector<16x256xf32>, vector<256x128xf32>, vector<16x128xf32> -> vector<16x128xf32>
    %cst_98 = arith.constant dense<0.000000e+00> : vector<16x128xf32>
    %283 = tpu.matmul %270, %6, %cst_98 {dimension_numbers = #tpu.dot_dimension_numbers<[1], [0], [0], [1], [0, 0, 1, 1], [], []>} : vector<16x32xf32>, vector<32x128xf32>, vector<16x128xf32> -> vector<16x128xf32>
    %284 = arith.addf %282, %283 : vector<16x128xf32>
    %285 = vector.broadcast %7 : vector<1x128xf32> to vector<16x128xf32>
    %286 = arith.addf %284, %285 : vector<16x128xf32>
    %287 = vector.extract_strided_slice %286 {offsets = [0, 0], sizes = [16, 32], strides = [1, 1]} : vector<16x128xf32> to vector<16x32xf32>
    %288 = arith.negf %287 : vector<16x32xf32>
    %289 = math.exp %288 : vector<16x32xf32>
    %cst_99 = arith.constant 1.000000e+00 : f32
    %290 = vector.broadcast %cst_99 : f32 to vector<16x32xf32>
    %291 = arith.addf %290, %289 : vector<16x32xf32>
    %292 = arith.divf %290, %291 : vector<16x32xf32>
    %293 = vector.extract_strided_slice %286 {offsets = [0, 32], sizes = [16, 32], strides = [1, 1]} : vector<16x128xf32> to vector<16x32xf32>
    %294 = arith.negf %293 : vector<16x32xf32>
    %295 = math.exp %294 : vector<16x32xf32>
    %cst_100 = arith.constant 1.000000e+00 : f32
    %296 = vector.broadcast %cst_100 : f32 to vector<16x32xf32>
    %297 = arith.addf %296, %295 : vector<16x32xf32>
    %298 = arith.divf %296, %297 : vector<16x32xf32>
    %299 = vector.extract_strided_slice %286 {offsets = [0, 64], sizes = [16, 32], strides = [1, 1]} : vector<16x128xf32> to vector<16x32xf32>
    %300 = math.tanh %299 : vector<16x32xf32>
    %301 = vector.extract_strided_slice %286 {offsets = [0, 96], sizes = [16, 32], strides = [1, 1]} : vector<16x128xf32> to vector<16x32xf32>
    %302 = arith.negf %301 : vector<16x32xf32>
    %303 = math.exp %302 : vector<16x32xf32>
    %cst_101 = arith.constant 1.000000e+00 : f32
    %304 = vector.broadcast %cst_101 : f32 to vector<16x32xf32>
    %305 = arith.addf %304, %303 : vector<16x32xf32>
    %306 = arith.divf %304, %305 : vector<16x32xf32>
    %307 = arith.mulf %298, %271 : vector<16x32xf32>
    %308 = arith.mulf %292, %300 : vector<16x32xf32>
    %309 = arith.addf %307, %308 : vector<16x32xf32>
    %310 = math.tanh %309 : vector<16x32xf32>
    %311 = arith.mulf %306, %310 : vector<16x32xf32>
    %cst_102 = arith.constant dense<0.000000e+00> : vector<16x128xf32>
    %312 = tpu.matmul %311, %8, %cst_102 {dimension_numbers = #tpu.dot_dimension_numbers<[1], [0], [0], [1], [0, 0, 1, 1], [], []>} : vector<16x32xf32>, vector<32x128xf32>, vector<16x128xf32> -> vector<16x128xf32>
    %313 = vector.broadcast %9 : vector<1x128xf32> to vector<16x128xf32>
    %314 = arith.addf %312, %313 : vector<16x128xf32>
    %315 = arith.index_cast %c5_i32 : i32 to index
    %c0_103 = arith.constant 0 : index
    %c0_104 = arith.constant 0 : index
    %316 = vector.load %arg13[%315, %c0_103, %c0_104] : memref<8x16x128xf32, #tpu.memory_space<vmem>>, vector<1x16x128xf32>
    %317 = vector.shape_cast %316 : vector<1x16x128xf32> to vector<16x128xf32>
    %318 = vector.shape_cast %314 : vector<16x128xf32> to vector<1x16x128xf32>
    tpu.vector_store %arg13[%315, %c0_103, %c0_104], %318 {strides = array<i32>} : memref<8x16x128xf32, #tpu.memory_space<vmem>>, vector<1x16x128xf32>,
    %c8_i32_105 = arith.constant 8 : i32
    %319 = arith.muli %arg1, %c8_i32_105 : i32
    %320 = arith.addi %319, %c5_i32 : i32
    %c8_i32_106 = arith.constant 8 : i32
    %321 = arith.cmpi slt, %320, %c8_i32_106 : i32
    %322 = arith.select %321, %311, %270 : vector<16x32xf32>
    %323 = arith.select %321, %309, %271 : vector<16x32xf32>
    %c6_i32 = arith.constant 6 : i32
    %324 = arith.index_cast %c6_i32 : i32 to index
    %c0_107 = arith.constant 0 : index
    %c0_108 = arith.constant 0 : index
    %325 = vector.load %arg2[%324, %c0_107, %c0_108] : memref<8x16x3xf32, #tpu.memory_space<vmem>>, vector<1x16x3xf32>
    %326 = vector.shape_cast %325 : vector<1x16x3xf32> to vector<16x3xf32>
    %327 = arith.index_cast %c6_i32 : i32 to index
    %c0_109 = arith.constant 0 : index
    %c0_110 = arith.constant 0 : index
    %328 = vector.load %arg3[%327, %c0_109, %c0_110] : memref<8x16x256xf32, #tpu.memory_space<vmem>>, vector<1x16x256xf32>
    %329 = vector.shape_cast %328 : vector<1x16x256xf32> to vector<16x256xf32>
    %cst_111 = arith.constant dense<0.000000e+00> : vector<16x256xf32>
    %330 = tpu.matmul %326, %3, %cst_111 {dimension_numbers = #tpu.dot_dimension_numbers<[1], [0], [0], [1], [0, 0, 1, 1], [], []>} : vector<16x3xf32>, vector<3x256xf32>, vector<16x256xf32> -> vector<16x256xf32>
    %331 = vector.broadcast %4 : vector<1x256xf32> to vector<16x256xf32>
    %332 = arith.addf %330, %331 : vector<16x256xf32>
    %333 = arith.mulf %329, %332 : vector<16x256xf32>
    %cst_112 = arith.constant dense<0.000000e+00> : vector<16x128xf32>
    %334 = tpu.matmul %333, %5, %cst_112 {dimension_numbers = #tpu.dot_dimension_numbers<[1], [0], [0], [1], [0, 0, 1, 1], [], []>} : vector<16x256xf32>, vector<256x128xf32>, vector<16x128xf32> -> vector<16x128xf32>
    %cst_113 = arith.constant dense<0.000000e+00> : vector<16x128xf32>
    %335 = tpu.matmul %322, %6, %cst_113 {dimension_numbers = #tpu.dot_dimension_numbers<[1], [0], [0], [1], [0, 0, 1, 1], [], []>} : vector<16x32xf32>, vector<32x128xf32>, vector<16x128xf32> -> vector<16x128xf32>
    %336 = arith.addf %334, %335 : vector<16x128xf32>
    %337 = vector.broadcast %7 : vector<1x128xf32> to vector<16x128xf32>
    %338 = arith.addf %336, %337 : vector<16x128xf32>
    %339 = vector.extract_strided_slice %338 {offsets = [0, 0], sizes = [16, 32], strides = [1, 1]} : vector<16x128xf32> to vector<16x32xf32>
    %340 = arith.negf %339 : vector<16x32xf32>
    %341 = math.exp %340 : vector<16x32xf32>
    %cst_114 = arith.constant 1.000000e+00 : f32
    %342 = vector.broadcast %cst_114 : f32 to vector<16x32xf32>
    %343 = arith.addf %342, %341 : vector<16x32xf32>
    %344 = arith.divf %342, %343 : vector<16x32xf32>
    %345 = vector.extract_strided_slice %338 {offsets = [0, 32], sizes = [16, 32], strides = [1, 1]} : vector<16x128xf32> to vector<16x32xf32>
    %346 = arith.negf %345 : vector<16x32xf32>
    %347 = math.exp %346 : vector<16x32xf32>
    %cst_115 = arith.constant 1.000000e+00 : f32
    %348 = vector.broadcast %cst_115 : f32 to vector<16x32xf32>
    %349 = arith.addf %348, %347 : vector<16x32xf32>
    %350 = arith.divf %348, %349 : vector<16x32xf32>
    %351 = vector.extract_strided_slice %338 {offsets = [0, 64], sizes = [16, 32], strides = [1, 1]} : vector<16x128xf32> to vector<16x32xf32>
    %352 = math.tanh %351 : vector<16x32xf32>
    %353 = vector.extract_strided_slice %338 {offsets = [0, 96], sizes = [16, 32], strides = [1, 1]} : vector<16x128xf32> to vector<16x32xf32>
    %354 = arith.negf %353 : vector<16x32xf32>
    %355 = math.exp %354 : vector<16x32xf32>
    %cst_116 = arith.constant 1.000000e+00 : f32
    %356 = vector.broadcast %cst_116 : f32 to vector<16x32xf32>
    %357 = arith.addf %356, %355 : vector<16x32xf32>
    %358 = arith.divf %356, %357 : vector<16x32xf32>
    %359 = arith.mulf %350, %323 : vector<16x32xf32>
    %360 = arith.mulf %344, %352 : vector<16x32xf32>
    %361 = arith.addf %359, %360 : vector<16x32xf32>
    %362 = math.tanh %361 : vector<16x32xf32>
    %363 = arith.mulf %358, %362 : vector<16x32xf32>
    %cst_117 = arith.constant dense<0.000000e+00> : vector<16x128xf32>
    %364 = tpu.matmul %363, %8, %cst_117 {dimension_numbers = #tpu.dot_dimension_numbers<[1], [0], [0], [1], [0, 0, 1, 1], [], []>} : vector<16x32xf32>, vector<32x128xf32>, vector<16x128xf32> -> vector<16x128xf32>
    %365 = vector.broadcast %9 : vector<1x128xf32> to vector<16x128xf32>
    %366 = arith.addf %364, %365 : vector<16x128xf32>
    %367 = arith.index_cast %c6_i32 : i32 to index
    %c0_118 = arith.constant 0 : index
    %c0_119 = arith.constant 0 : index
    %368 = vector.load %arg13[%367, %c0_118, %c0_119] : memref<8x16x128xf32, #tpu.memory_space<vmem>>, vector<1x16x128xf32>
    %369 = vector.shape_cast %368 : vector<1x16x128xf32> to vector<16x128xf32>
    %370 = vector.shape_cast %366 : vector<16x128xf32> to vector<1x16x128xf32>
    tpu.vector_store %arg13[%367, %c0_118, %c0_119], %370 {strides = array<i32>} : memref<8x16x128xf32, #tpu.memory_space<vmem>>, vector<1x16x128xf32>,
    %c8_i32_120 = arith.constant 8 : i32
    %371 = arith.muli %arg1, %c8_i32_120 : i32
    %372 = arith.addi %371, %c6_i32 : i32
    %c8_i32_121 = arith.constant 8 : i32
    %373 = arith.cmpi slt, %372, %c8_i32_121 : i32
    %374 = arith.select %373, %363, %322 : vector<16x32xf32>
    %375 = arith.select %373, %361, %323 : vector<16x32xf32>
    %c7_i32 = arith.constant 7 : i32
    %376 = arith.index_cast %c7_i32 : i32 to index
    %c0_122 = arith.constant 0 : index
    %c0_123 = arith.constant 0 : index
    %377 = vector.load %arg2[%376, %c0_122, %c0_123] : memref<8x16x3xf32, #tpu.memory_space<vmem>>, vector<1x16x3xf32>
    %378 = vector.shape_cast %377 : vector<1x16x3xf32> to vector<16x3xf32>
    %379 = arith.index_cast %c7_i32 : i32 to index
    %c0_124 = arith.constant 0 : index
    %c0_125 = arith.constant 0 : index
    %380 = vector.load %arg3[%379, %c0_124, %c0_125] : memref<8x16x256xf32, #tpu.memory_space<vmem>>, vector<1x16x256xf32>
    %381 = vector.shape_cast %380 : vector<1x16x256xf32> to vector<16x256xf32>
    %cst_126 = arith.constant dense<0.000000e+00> : vector<16x256xf32>
    %382 = tpu.matmul %378, %3, %cst_126 {dimension_numbers = #tpu.dot_dimension_numbers<[1], [0], [0], [1], [0, 0, 1, 1], [], []>} : vector<16x3xf32>, vector<3x256xf32>, vector<16x256xf32> -> vector<16x256xf32>
    %383 = vector.broadcast %4 : vector<1x256xf32> to vector<16x256xf32>
    %384 = arith.addf %382, %383 : vector<16x256xf32>
    %385 = arith.mulf %381, %384 : vector<16x256xf32>
    %cst_127 = arith.constant dense<0.000000e+00> : vector<16x128xf32>
    %386 = tpu.matmul %385, %5, %cst_127 {dimension_numbers = #tpu.dot_dimension_numbers<[1], [0], [0], [1], [0, 0, 1, 1], [], []>} : vector<16x256xf32>, vector<256x128xf32>, vector<16x128xf32> -> vector<16x128xf32>
    %cst_128 = arith.constant dense<0.000000e+00> : vector<16x128xf32>
    %387 = tpu.matmul %374, %6, %cst_128 {dimension_numbers = #tpu.dot_dimension_numbers<[1], [0], [0], [1], [0, 0, 1, 1], [], []>} : vector<16x32xf32>, vector<32x128xf32>, vector<16x128xf32> -> vector<16x128xf32>
    %388 = arith.addf %386, %387 : vector<16x128xf32>
    %389 = vector.broadcast %7 : vector<1x128xf32> to vector<16x128xf32>
    %390 = arith.addf %388, %389 : vector<16x128xf32>
    %391 = vector.extract_strided_slice %390 {offsets = [0, 0], sizes = [16, 32], strides = [1, 1]} : vector<16x128xf32> to vector<16x32xf32>
    %392 = arith.negf %391 : vector<16x32xf32>
    %393 = math.exp %392 : vector<16x32xf32>
    %cst_129 = arith.constant 1.000000e+00 : f32
    %394 = vector.broadcast %cst_129 : f32 to vector<16x32xf32>
    %395 = arith.addf %394, %393 : vector<16x32xf32>
    %396 = arith.divf %394, %395 : vector<16x32xf32>
    %397 = vector.extract_strided_slice %390 {offsets = [0, 32], sizes = [16, 32], strides = [1, 1]} : vector<16x128xf32> to vector<16x32xf32>
    %398 = arith.negf %397 : vector<16x32xf32>
    %399 = math.exp %398 : vector<16x32xf32>
    %cst_130 = arith.constant 1.000000e+00 : f32
    %400 = vector.broadcast %cst_130 : f32 to vector<16x32xf32>
    %401 = arith.addf %400, %399 : vector<16x32xf32>
    %402 = arith.divf %400, %401 : vector<16x32xf32>
    %403 = vector.extract_strided_slice %390 {offsets = [0, 64], sizes = [16, 32], strides = [1, 1]} : vector<16x128xf32> to vector<16x32xf32>
    %404 = math.tanh %403 : vector<16x32xf32>
    %405 = vector.extract_strided_slice %390 {offsets = [0, 96], sizes = [16, 32], strides = [1, 1]} : vector<16x128xf32> to vector<16x32xf32>
    %406 = arith.negf %405 : vector<16x32xf32>
    %407 = math.exp %406 : vector<16x32xf32>
    %cst_131 = arith.constant 1.000000e+00 : f32
    %408 = vector.broadcast %cst_131 : f32 to vector<16x32xf32>
    %409 = arith.addf %408, %407 : vector<16x32xf32>
    %410 = arith.divf %408, %409 : vector<16x32xf32>
    %411 = arith.mulf %402, %375 : vector<16x32xf32>
    %412 = arith.mulf %396, %404 : vector<16x32xf32>
    %413 = arith.addf %411, %412 : vector<16x32xf32>
    %414 = math.tanh %413 : vector<16x32xf32>
    %415 = arith.mulf %410, %414 : vector<16x32xf32>
    %cst_132 = arith.constant dense<0.000000e+00> : vector<16x128xf32>
    %416 = tpu.matmul %415, %8, %cst_132 {dimension_numbers = #tpu.dot_dimension_numbers<[1], [0], [0], [1], [0, 0, 1, 1], [], []>} : vector<16x32xf32>, vector<32x128xf32>, vector<16x128xf32> -> vector<16x128xf32>
    %417 = vector.broadcast %9 : vector<1x128xf32> to vector<16x128xf32>
    %418 = arith.addf %416, %417 : vector<16x128xf32>
    %419 = arith.index_cast %c7_i32 : i32 to index
    %c0_133 = arith.constant 0 : index
    %c0_134 = arith.constant 0 : index
    %420 = vector.load %arg13[%419, %c0_133, %c0_134] : memref<8x16x128xf32, #tpu.memory_space<vmem>>, vector<1x16x128xf32>
    %421 = vector.shape_cast %420 : vector<1x16x128xf32> to vector<16x128xf32>
    %422 = vector.shape_cast %418 : vector<16x128xf32> to vector<1x16x128xf32>
    tpu.vector_store %arg13[%419, %c0_133, %c0_134], %422 {strides = array<i32>} : memref<8x16x128xf32, #tpu.memory_space<vmem>>, vector<1x16x128xf32>,
    %c8_i32_135 = arith.constant 8 : i32
    %423 = arith.muli %arg1, %c8_i32_135 : i32
    %424 = arith.addi %423, %c7_i32 : i32
    %c8_i32_136 = arith.constant 8 : i32
    %425 = arith.cmpi slt, %424, %c8_i32_136 : i32
    %426 = arith.select %425, %415, %374 : vector<16x32xf32>
    %427 = arith.select %425, %413, %375 : vector<16x32xf32>
    %c8_i32_137 = arith.constant 8 : i32
    %c0_138 = arith.constant 0 : index
    %c0_139 = arith.constant 0 : index
    %428 = vector.load %arg14[%c0_138, %c0_139] : memref<16x32xf32, #tpu.memory_space<vmem>>, vector<16x32xf32>
    tpu.vector_store %arg14[%c0_138, %c0_139], %426 {strides = array<i32>} : memref<16x32xf32, #tpu.memory_space<vmem>>, vector<16x32xf32>,
    %c0_140 = arith.constant 0 : index
    %c0_141 = arith.constant 0 : index
    %429 = vector.load %arg15[%c0_140, %c0_141] : memref<16x32xf32, #tpu.memory_space<vmem>>, vector<16x32xf32>
    tpu.vector_store %arg15[%c0_140, %c0_141], %427 {strides = array<i32>} : memref<16x32xf32, #tpu.memory_space<vmem>>, vector<16x32xf32>,
    return
  }
  func.func @transform_0(%arg0: i32, %arg1: i32) -> (i32, i32, i32) {
    %c0_i32 = arith.constant 0 : i32
    %c0_i32_0 = arith.constant 0 : i32
    return %arg1, %arg0, %c0_i32 : i32, i32, i32
  }
  func.func @transform_1(%arg0: i32, %arg1: i32) -> (i32, i32, i32) {
    %c0_i32 = arith.constant 0 : i32
    %c0_i32_0 = arith.constant 0 : i32
    return %arg1, %arg0, %c0_i32 : i32, i32, i32
  }
  func.func @transform_2(%arg0: i32, %arg1: i32) -> (i32, i32) {
    %c0_i32 = arith.constant 0 : i32
    %c0_i32_0 = arith.constant 0 : i32
    %c0_i32_1 = arith.constant 0 : i32
    return %c0_i32, %c0_i32_0 : i32, i32
  }
  func.func @transform_3(%arg0: i32, %arg1: i32) -> (i32, i32) {
    %c0_i32 = arith.constant 0 : i32
    %c0_i32_0 = arith.constant 0 : i32
    %c0_i32_1 = arith.constant 0 : i32
    return %c0_i32, %c0_i32_0 : i32, i32
  }
  func.func @transform_4(%arg0: i32, %arg1: i32) -> (i32, i32) {
    %c0_i32 = arith.constant 0 : i32
    %c0_i32_0 = arith.constant 0 : i32
    %c0_i32_1 = arith.constant 0 : i32
    return %c0_i32, %c0_i32_0 : i32, i32
  }
  func.func @transform_5(%arg0: i32, %arg1: i32) -> (i32, i32) {
    %c0_i32 = arith.constant 0 : i32
    %c0_i32_0 = arith.constant 0 : i32
    %c0_i32_1 = arith.constant 0 : i32
    return %c0_i32, %c0_i32_0 : i32, i32
  }
  func.func @transform_6(%arg0: i32, %arg1: i32) -> (i32, i32) {
    %c0_i32 = arith.constant 0 : i32
    %c0_i32_0 = arith.constant 0 : i32
    %c0_i32_1 = arith.constant 0 : i32
    return %c0_i32, %c0_i32_0 : i32, i32
  }
  func.func @transform_7(%arg0: i32, %arg1: i32) -> (i32, i32) {
    %c0_i32 = arith.constant 0 : i32
    %c0_i32_0 = arith.constant 0 : i32
    %c0_i32_1 = arith.constant 0 : i32
    return %c0_i32, %c0_i32_0 : i32, i32
  }
  func.func @transform_8(%arg0: i32, %arg1: i32) -> (i32, i32) {
    %c0_i32 = arith.constant 0 : i32
    %c0_i32_0 = arith.constant 0 : i32
    %c0_i32_1 = arith.constant 0 : i32
    return %c0_i32, %c0_i32_0 : i32, i32
  }
  func.func @transform_9(%arg0: i32, %arg1: i32) -> (i32, i32) {
    %c0_i32 = arith.constant 0 : i32
    %c0_i32_0 = arith.constant 0 : i32
    return %arg0, %c0_i32 : i32, i32
  }
  func.func @transform_10(%arg0: i32, %arg1: i32) -> (i32, i32) {
    %c0_i32 = arith.constant 0 : i32
    %c0_i32_0 = arith.constant 0 : i32
    return %arg0, %c0_i32 : i32, i32
  }
  func.func @transform_11(%arg0: i32, %arg1: i32) -> (i32, i32, i32) {
    %c0_i32 = arith.constant 0 : i32
    %c0_i32_0 = arith.constant 0 : i32
    return %arg1, %arg0, %c0_i32 : i32, i32, i32
  }
  func.func @transform_12(%arg0: i32, %arg1: i32) -> (i32, i32) {
    %c0_i32 = arith.constant 0 : i32
    %c0_i32_0 = arith.constant 0 : i32
    return %arg0, %c0_i32 : i32, i32
  }
  func.func @transform_13(%arg0: i32, %arg1: i32) -> (i32, i32) {
    %c0_i32 = arith.constant 0 : i32
    %c0_i32_0 = arith.constant 0 : i32
    return %arg0, %c0_i32 : i32, i32
  }
}

</mosaic_0001>

<bundles_post_ra>
// kernel: tpu_custom_call.1
= control target key start
LH: loop header
LB: loop body
LE: loop exit
PB: predicated region body
PF: predicated region fallthrough
CT: control target
= control target key end

     0   :  { %s7333_s0 = inlined_call_operand.vmem [shape: f32[8,32,3], index: 0, kind: input, shape index: {}]   ;;  %s7334_s1 = inlined_call_operand.hbm [shape: f32[8,32,256], index: 1, kind: input, shape index: {}]   ;;  %s7335_s2 = inlined_call_operand.hbm [shape: f32[3,256], index: 2, kind: input, shape index: {}]   ;;  %s7336_s3 = inlined_call_operand.vmem [shape: f32[1,256], index: 3, kind: input, shape index: {}]   ;;  %s7337_s4 = inlined_call_operand.vmem [shape: f32[256,128], index: 4, kind: input, shape index: {}]   ;;  %s7338_s5 = inlined_call_operand.vmem [shape: f32[32,128], index: 5, kind: input, shape index: {}]   ;;  %s7339_s6 = inlined_call_operand.vmem [shape: f32[1,128], index: 6, kind: input, shape index: {}]   ;;  %s7340_s7 = inlined_call_operand.hbm [shape: f32[32,128], index: 7, kind: input, shape index: {}]   ;;  %s7341_s8 = inlined_call_operand.vmem [shape: f32[1,128], index: 8, kind: input, shape index: {}]   ;;  %s7342_s9 = inlined_call_operand.hbm [shape: f32[32,32], index: 9, kind: input, shape index: {}]   ;;  %s7343_s10 = inlined_call_operand.hbm [shape: f32[32,32], index: 10, kind: input, shape index: {}]   ;;  %s7344_s11 = inlined_call_operand.hbm [shape: f32[8,32,128], index: 11, kind: output, shape index: {0}]   ;;  %s7345_s12 = inlined_call_operand.hbm [shape: f32[32,32], index: 12, kind: output, shape index: {1}]   ;;  %s7346_s13 = inlined_call_operand.hbm [shape: f32[32,32], index: 13, kind: output, shape index: {2}]  }
   0x1   :  { %7360 = sst [smem:[#allocation32_spill]] %s7333_s0 }
   0x2   :  { %7361 = sst [smem:[#allocation33_spill]] %s7334_s1 }
   0x3   :  { %7362 = sst [smem:[#allocation34_spill]] %s7335_s2 }
   0x4   :  { %7363 = sst [smem:[#allocation35_spill]] %s7336_s3 }
   0x5   :  { %7364 = sst [smem:[#allocation36_spill]] %s7344_s11 }
   0x6   :  { %7365 = sst [smem:[#allocation37_spill]] %s7345_s12 }
   0x7   :  { %7366 = sst [smem:[#allocation38_spill]] %s7346_s13 }
   0x8   :  { %19 = vsyncpa [#allocation4], 0 }
   0x9   :  { %21 = vsyncpa [#allocation4 + $0x1], 0 }
   0xa   :  { %22 = vsyncpa [#allocation7], 0 }
   0xb   :  { %23 = vsyncpa [#allocation10], 0 }
   0xc   :  { %25 = vsyncpa [#allocation10 + $0x1], 0 }
   0xd   :  { %26 = vsyncpa [#allocation5], 0 }
   0xe   :  { %28 = vsyncpa [#allocation5 + $0x1], 0 }
   0xf   :  { %29 = vsyncpa [#allocation14], 0 }
  0x10   :  { %31 = vsyncpa [#allocation14 + $0x1], 0  ;;  %s6154_s25 = smov 0   ;;  %s6156_s26 = smov 0  }
  0x11   :  { %s6158_s27 = smov 0   ;;  %s6160_s28 = smov 0  }
  0x12   :  { %s6162_s29 = smov 0   ;;  %s6164_s30 = smov 0  }
  0x13 LB: > { %7367 = sst [smem:[#allocation26_spill]] %s6033_s25  ;;  %s6185_s14 = sadd.s32 4294967295, %s6053_s30   ;;  %s6053_s30 = sphi %s6164_s30, %s37_s30   ;;  %s6049_s29 = sphi %s6162_s29, %s7405_s29   ;;  %s6045_s28 = sphi %s6160_s28, %s7404_s28   ;;  %s6041_s27 = sphi %s6158_s27, %s7403_s27   ;;  %s6037_s26 = sphi %s6156_s26, %s7402_s26   ;;  %s6033_s25 = sphi %s6154_s25, %s7401_s25  }
  0x14   : > { %7368 = sst [smem:[#allocation27_spill]] %s6045_s28  ;;  %s7350_s15 = sadd.s32 4294967294, %s6053_s30  }
  0x15   : > { %s49_s16 = sadd.s32 1, %s6049_s29  ;;  %s58_s17 = sadd.s32 1, %s6041_s27 }
  0x16   : > { %p51_p0 = scmp.ge.s32.totalorder %s49_s16, 2  ;;  %p65_p1 = scmp.ne.s32.totalorder %s6041_s27, %s6037_s26 }
  0x17   : > { %p66_p2 = scmp.eq.s32.totalorder %s6053_s30, 0  ;;  %p99_p3 = scmp.ne.s32.totalorder %s6037_s26, %s6033_s25 }
  0x18   : > { %s7407_s16 = smov (%p51_p0, %s49_s16), 0  ;;  %p7355_p5 = scmp.eq.s32.totalorder %s6185_s14, 0 }
  0x19   : > { %7369 = sst [smem:[#allocation28_spill]] %s7407_s16  ;;  %p6197_p4 = por %p66_p2, %p65_p1 }
  0x1a   : > { %s54_s19 = ssub.s32 %s6049_s29, %s7407_s16  ;;  %p324_p6 = scmp.eq.s32.totalorder %s6185_s14, 1 }
  0x1b   : > { %s7370_s18 = scalar_select %p6197_p4, 1, 0 }
  0x1c   : > { %p56_p7 = scmp.eq.s32.totalorder %s54_s19, 0  ;;  %p6207_p8 = por %p7355_p5, %p99_p3 }
  0x1d   : > { %p6211_p9 = por %p324_p6, %p65_p1  ;;  %p330_p10 = scmp.eq.s32.totalorder %s7350_s15, 1 }
  0x1e   : > { %s7371_s20 = scalar_select %p6207_p8, 1, 0 }
  0x1f   : > { %s7372_s21 = scalar_select %p6211_p9, 1, 0 }
  0x20   : > { %s6218_s22 = scalar_select %p56_p7, %s6041_s27, %s58_s17  }
  0x21   : > { %7373 = sst [smem:[#allocation29_spill]] %s7372_s21  ;;  %p6220_p11 = por %p330_p10, %p99_p3 }
  0x22   : > { %7374 = sst [smem:[#allocation30_spill]] %s6218_s22  ;;  %p4413_p12 = scmp.ge.s32.totalorder %s6053_s30, 1 }
  0x23   : > { %s7375_s23 = scalar_select %p6220_p11, 1, 0 }
  0x24   : > { %p389_p13 = scmp.lt.s32.totalorder %s6053_s30, 3  ;;  %s6055_s19 = smov [#allocation6]  }
  0x25   : > { %7376 = sst [smem:[#allocation31_spill]] %s7375_s23  ;;  %s402_s16 = sshll.u32 %s6055_s19, 4  ;;  %s403_s16 = int_to_ptr.vmem [resolvable:$true] %s402_s16 }
  0x26   : > { %p6226_p0 = pnand %p4413_p12, %p389_p13  ;;  %s6056_s25 = smov [#allocation8]  }
  0x27   : > { %s424_s13 = sshll.u32 %s6056_s25, 4  ;;  %s7379_s2 = sld [smem:[#allocation34_spill]]  ;;  %s6238_s13 = int_to_ptr.vmem [resolvable:$true] %s424_s13 }
  0x28   : > { %s7377_s24 = scalar_select %p6226_p0, 1, 0 }
  0x29   : > { %p5592_p1 = pneg %p6226_p0 }
  0x2b   : > { %p6234_p2 = pnand %p5592_p1, %p7355_p5 }
  0x2d   : > { %s5819_s23 = scalar_lea.hbm %s7379_s2, 128  ;;  %p5821_p6 = pneg %p6234_p2 }
  0x2e   : > { %p5820_p3 = scmp.ne.s32.totalorder %s7379_s2, %s5819_s23  ;;  %p5826_p12 = scmp.lt.u32.totalorder %s5819_s23, %s7379_s2 }
  0x30   : > { %p5822_p7 = pnand %p5821_p6, %p5820_p3 }
  0x32   : > { %p5823_p10 = pneg %p5822_p7 }
  0x34   : > { %p5828_p13 = pnand %p5826_p12, %p5823_p10 }
  0x36   : > { %5831 = shalt.err (!%p5828_p13)
}
  0x37   : > { %s5832_s21 = scalar_lea.vmem %s403_s16, 128  ;;  %p5840_p9 = scmp.lt.s32.totalorder %s403_s16, %s403_s16 }
  0x38   : > { %p5833_p1 = scmp.ne.s32.totalorder %s403_s16, %s5832_s21  ;;  %p5841_p8 = scmp.lt.s32.totalorder %s5832_s21, %s5832_s21 }
  0x3a   : > { %p5835_p5 = pnand %p5833_p1, %p5821_p6  ;;  %p5842_p0 = por %p5841_p8, %p5840_p9 }
  0x3c   : > { %p5836_p11 = pneg %p5835_p5 }
  0x3e   : > { %p5843_p4 = pnand %p5842_p0, %p5836_p11 }
  0x40   : > { %5846 = shalt.err (!%p5843_p4)
}
  0x41   : > { %5595 = dma.hbm_to_vmem [thread:$0]  (!%p6234_p2), %s7379_s2, 128, %s403_s16, [#allocation7]  }
  0x42   : > { %s5847_s23 = scalar_lea.hbm %s7340_s7, 512 }
  0x43   : > { %p5848_p5 = scmp.ne.s32.totalorder %s7340_s7, %s5847_s23  ;;  %p5854_p4 = scmp.lt.u32.totalorder %s5847_s23, %s7340_s7 }
  0x45   : > { %p5850_p8 = pnand %p5848_p5, %p5821_p6 }
  0x47   : > { %p5851_p9 = pneg %p5850_p8 }
  0x49   : > { %p5856_p11 = pnand %p5854_p4, %p5851_p9 }
  0x4b   : > { %5859 = shalt.err (!%p5856_p11)
}
  0x4c   : > { %s5860_s16 = scalar_lea.vmem %s6238_s13, 512  ;;  %p5868_p10 = scmp.lt.s32.totalorder %s6238_s13, %s6238_s13 }
  0x4d   : > { %p5861_p0 = scmp.ne.s32.totalorder %s6238_s13, %s5860_s16  ;;  %p5869_p12 = scmp.lt.s32.totalorder %s5860_s16, %s5860_s16 }
  0x4f   : > { %p5863_p3 = pnand %p5861_p0, %p5821_p6  ;;  %p5870_p13 = por %p5869_p12, %p5868_p10 }
  0x51   : > { %p5864_p7 = pneg %p5863_p3 }
  0x53   : > { %p5871_p1 = pnand %p5870_p13, %p5864_p7 }
  0x55   : > { %5874 = shalt.err (!%p5871_p1)
}
  0x56   : > { %s6057_s28 = smov 128   ;;  %s6058_s12 = smov 8  }
  0x57   : > { %5598 = dma.hbm_to_vmem [thread:$0]  (!%p6234_p2), %s7340_s7, 512, %s6238_s13, [#allocation7], %s6057_s28, %s6057_s28, %s6058_s12  }
  0x58   : > { %p4416_p5 = scmp.ge.s32.totalorder %s6053_s30, 2 }
  0x59   : > { %p7380_p6 = scmp.ne.s32.totalorder (!%p4416_p5), %s7370_s18, 0 }
  0x5a   : > { %437 = sbr.rel (%p4416_p5) target bundleno = 178 (0xb2), region = 44 }
  0x61   : > { %440 = sbr.rel (!%p7380_p6) target bundleno = 115 (0x73), region = 48  ;;  %s442_s22 = sand.u32 (%p7380_p6), 1, %s6041_s27  }
  0x62   : > { %s4591_s23 = sshll.u32 (%p7380_p6), %s6049_s29, 4  ;;  %s4417_s19 = sshll.u32 (%p7380_p6), %s442_s22, 7 }
  0x63   : > { %s7381_s0 = sld [smem:[#allocation32_spill]] (%p7380_p6)  ;;  %s444_s13 = scalar_lea.vmem (%p7380_p6), [#allocation2], %s4417_s19 }
  0x69   : > { %s6297_s17 = scalar_lea.vmem %s7381_s0, %s4591_s23 }
  0x6a   : > { %v508_v0 = vld [vmem:[%s6297_s17] sm:$0xff]  ;;  %v510_v1 = vld [vmem:[%s6297_s17 + $0x8] sm:$0xff] }
  0x6b   : > { %v512_v2 = vld [vmem:[%s6297_s17 + $0x20] sm:$0xff]  ;;  %509 = vst [vmem:[%s444_s13] sm:$0xff] %v508_v0  ;;  %511 = vst [vmem:[%s444_s13 + $0x8] sm:$0xff] %v510_v1  ;;  %v514_v3 = vld [vmem:[%s6297_s17 + $0x28] sm:$0xff] }
  0x6c   : > { %513 = vst [vmem:[%s444_s13 + $0x10] sm:$0xff] %v512_v2  ;;  %v516_v4 = vld [vmem:[%s6297_s17 + $0x40] sm:$0xff]  ;;  %v518_v5 = vld [vmem:[%s6297_s17 + $0x48] sm:$0xff]  ;;  %515 = vst [vmem:[%s444_s13 + $0x18] sm:$0xff] %v514_v3 }
  0x6d   : > { %517 = vst [vmem:[%s444_s13 + $0x20] sm:$0xff] %v516_v4  ;;  %519 = vst [vmem:[%s444_s13 + $0x28] sm:$0xff] %v518_v5  ;;  %v520_v6 = vld [vmem:[%s6297_s17 + $0x60] sm:$0xff]  ;;  %v522_v7 = vld [vmem:[%s6297_s17 + $0x68] sm:$0xff] }
  0x6e   : > { %v524_v8 = vld [vmem:[%s6297_s17 + $0x80] sm:$0xff]  ;;  %521 = vst [vmem:[%s444_s13 + $0x30] sm:$0xff] %v520_v6  ;;  %523 = vst [vmem:[%s444_s13 + $0x38] sm:$0xff] %v522_v7  ;;  %v526_v9 = vld [vmem:[%s6297_s17 + $0x88] sm:$0xff] }
  0x6f   : > { %525 = vst [vmem:[%s444_s13 + $0x40] sm:$0xff] %v524_v8  ;;  %v528_v10 = vld [vmem:[%s6297_s17 + $0xa0] sm:$0xff]  ;;  %v530_v11 = vld [vmem:[%s6297_s17 + $0xa8] sm:$0xff]  ;;  %527 = vst [vmem:[%s444_s13 + $0x48] sm:$0xff] %v526_v9 }
  0x70   : > { %529 = vst [vmem:[%s444_s13 + $0x50] sm:$0xff] %v528_v10  ;;  %531 = vst [vmem:[%s444_s13 + $0x58] sm:$0xff] %v530_v11  ;;  %v532_v12 = vld [vmem:[%s6297_s17 + $0xc0] sm:$0xff]  ;;  %v534_v13 = vld [vmem:[%s6297_s17 + $0xc8] sm:$0xff] }
  0x71   : > { %v536_v14 = vld [vmem:[%s6297_s17 + $0xe0] sm:$0xff]  ;;  %533 = vst [vmem:[%s444_s13 + $0x60] sm:$0xff] %v532_v12  ;;  %535 = vst [vmem:[%s444_s13 + $0x68] sm:$0xff] %v534_v13  ;;  %v538_v15 = vld [vmem:[%s6297_s17 + $0xe8] sm:$0xff] }
  0x72   : > { %537 = vst [vmem:[%s444_s13 + $0x70] sm:$0xff] %v536_v14  ;;  %539 = vst [vmem:[%s444_s13 + $0x78] sm:$0xff] %v538_v15 }
  0x73 PF: > { %s6316_s16 = sand.u32 1, %s6041_s27   ;;  %s4593_s28 = sshll.u32 %s6049_s29, 9 }
  0x74   : > { %s4420_s12 = sshll.u32 %s6316_s16, 8  ;;  %s7382_s1 = sld [smem:[#allocation33_spill]] }
  0x75   : > { %p7383_p2 = scmp.ne.s32.totalorder %s7370_s18, 0  ;;  %s550_s19 = scalar_lea.vmem [#allocation3], %s4420_s12 }
  0x76   : > { %s573_s25 = sshll.u32 %s550_s19, 4  ;;  %s6059_s17 = smov 1024   ;;  %s574_s25 = int_to_ptr.vmem [resolvable:$true] %s573_s25 }
  0x77   : > { %s5563_s23 = scalar_select %p7383_p2, [#allocation0], [#allocation20] }
  0x78   : > { %5564 = sst [smem:[#allocation17]] (%p7383_p2), %s6059_s17  ;;  %s6060_s13 = smov 512  }
  0x79   : > { %s565_s21 = sld [smem:[%s5563_s23]]   ;;  %s6061_s0 = smov 2  }
  0x7a   : > { %s560_s22 = scalar_lea.hbm %s7382_s1, %s4593_s28  ;;  %5565 = sst [smem:[#allocation17 + $0x1]] (%p7383_p2), %s6060_s13 }
  0x7b   : > { %5566 = sst [smem:[#allocation17 + $0x2]] (%p7383_p2), %s6061_s0  ;;  %s6062_s15 = smov 256  }
  0x7c   : > { %5567 = sst [smem:[#allocation17 + $0x3]] (%p7383_p2), %s6062_s15  ;;  %s6063_s12 = smov 16  }
  0x7d   : > { %5568 = sst [smem:[#allocation17 + $0x4]] (%p7383_p2), %s6062_s15  ;;  %s547_s23 = scalar_lea.sflag [#allocation4], %s6316_s16 }
  0x7e   : > { %5569 = sst [smem:[#allocation17 + $0x5]] (%p7383_p2), %s6063_s12  ;;  %s6064_s19 = smov [#allocation16]  }
  0x7f   : > { %s4424_s28 = sshll.u32 %s565_s21, 26  ;;  %s596_s0 = sand.u32 1, %s6053_s30  }
  0x80   : > { %s4425_s11 = sadd.s32 134217728, %s4424_s28  ;;  %s4426_s17 = sshll.u32 %s6316_s16, 4 }
  0x81   : > { %5570 = dma.general (%p7383_p2), %s560_s22, 4096, %s574_s25, %s547_s23, %s6064_s19, [#allocation17], %s4425_s11, 0  }
  0x82   : > { %s4594_s13 = sshll.u32 %s6049_s29, 8  ;;  %s600_s15 = scalar_lea.vmem [#allocation9], %s4426_s17 }
  0x83   : > { %s607_s21 = sshll.u32 %s600_s15, 4  ;;  %s6350_s28 = scalar_lea.hbm %s7342_s9, %s4594_s13  ;;  %s6352_s21 = int_to_ptr.vmem [resolvable:$true] %s607_s21 }
  0x84   : > { %s6354_s22 = scalar_lea.sflag [#allocation10], %s596_s0  ;;  %s5875_s25 = scalar_lea.hbm %s6350_s28, 256 }
  0x85   : > { %p5876_p8 = scmp.ne.s32.totalorder %s6350_s28, %s5875_s25  ;;  %s5879_s19 = scalar_lea.hbm %s7342_s9, 512 }
  0x86   : > { %p5880_p11 = scmp.lt.u32.totalorder %s6350_s28, %s7342_s9  ;;  %p5881_p0 = scmp.lt.u32.totalorder %s5879_s19, %s5875_s25 }
  0x87   : > { %p5877_p9 = pnand %p5876_p8, %p7383_p2  ;;  %p5883_p7 = scmp.lt.u32.totalorder %s5875_s25, %s6350_s28 }
  0x88   : > { %p5882_p3 = por %p5881_p0, %p5880_p11 }
  0x89   : > { %p5878_p4 = pneg %p5877_p9 }
  0x8a   : > { %p5884_p10 = por %p5883_p7, %p5882_p3 }
  0x8c   : > { %p5885_p12 = pnand %p5884_p10, %p5878_p4 }
  0x8e   : > { %5888 = shalt.err (!%p5885_p12)
}
  0x8f   : > { %s5889_s0 = scalar_lea.vmem %s6352_s21, 256  ;;  %s6065_s12 = smov [#allocation9]  }
  0x90   : > { %p5890_p13 = scmp.ne.s32.totalorder %s6352_s21, %s5889_s0  ;;  %s5893_s11 = sshll.u32 %s6065_s12, 4  ;;  %s5894_s11 = int_to_ptr.vmem [resolvable:$false] %s5893_s11 }
  0x91   : > { %s5895_s23 = scalar_lea.vmem %s5894_s11, 512  ;;  %p5896_p8 = scmp.lt.s32.totalorder %s6352_s21, %s5894_s11 }
  0x92   : > { %p5891_p1 = pnand %p5890_p13, %p7383_p2  ;;  %p5897_p9 = scmp.lt.s32.totalorder %s5895_s23, %s5889_s0 }
  0x94   : > { %p5892_p6 = pneg %p5891_p1  ;;  %p5898_p11 = por %p5897_p9, %p5896_p8 }
  0x96   : > { %p5899_p0 = pnand %p5898_p11, %p5892_p6 }
  0x98   : > { %5902 = shalt.err (!%p5899_p0)
}
  0x99   : > { %s6066_s25 = smov 128   ;;  %s6067_s19 = smov 8  }
  0x9a   : > { %5571 = dma.hbm_to_vmem [thread:$0]  (%p7383_p2), %s6350_s28, 256, %s6352_s21, %s6354_s22, %s6066_s25, %s6066_s25, %s6067_s19  }
  0x9b   : > { %s6386_s0 = scalar_lea.hbm %s7343_s10, %s4594_s13  ;;  %s621_s12 = scalar_lea.vmem [#allocation11], %s4426_s17 }
  0x9c   : > { %s628_s11 = sshll.u32 %s621_s12, 4  ;;  %s5903_s23 = scalar_lea.hbm %s6386_s0, 256  ;;  %s6390_s11 = int_to_ptr.vmem [resolvable:$true] %s628_s11 }
  0x9d   : > { %p5904_p4 = scmp.ne.s32.totalorder %s6386_s0, %s5903_s23  ;;  %s5907_s1 = scalar_lea.hbm %s7343_s10, 512 }
  0x9e   : > { %p5908_p10 = scmp.lt.u32.totalorder %s6386_s0, %s7343_s10  ;;  %p5909_p12 = scmp.lt.u32.totalorder %s5907_s1, %s5903_s23 }
  0x9f   : > { %p5905_p3 = pnand %p5904_p4, %p7383_p2  ;;  %p5911_p1 = scmp.lt.u32.totalorder %s5903_s23, %s6386_s0 }
  0xa0   : > { %p5910_p13 = por %p5909_p12, %p5908_p10 }
  0xa1   : > { %p5906_p7 = pneg %p5905_p3 }
  0xa2   : > { %p5912_p6 = por %p5911_p1, %p5910_p13 }
  0xa4   : > { %p5913_p8 = pnand %p5912_p6, %p5906_p7 }
  0xa6   : > { %5916 = shalt.err (!%p5913_p8)
}
  0xa7   : > { %s5917_s16 = scalar_lea.vmem %s6390_s11, 256  ;;  %s6068_s17 = smov [#allocation11]  }
  0xa8   : > { %p5918_p9 = scmp.ne.s32.totalorder %s6390_s11, %s5917_s16  ;;  %s5921_s12 = sshll.u32 %s6068_s17, 4  ;;  %s5922_s12 = int_to_ptr.vmem [resolvable:$false] %s5921_s12 }
  0xa9   : > { %s5923_s21 = scalar_lea.vmem %s5922_s12, 512  ;;  %p5924_p4 = scmp.lt.s32.totalorder %s6390_s11, %s5922_s12 }
  0xaa   : > { %p5919_p11 = pnand %p5918_p9, %p7383_p2  ;;  %p5925_p3 = scmp.lt.s32.totalorder %s5923_s21, %s5917_s16 }
  0xac   : > { %p5920_p0 = pneg %p5919_p11  ;;  %p5926_p10 = por %p5925_p3, %p5924_p4 }
  0xae   : > { %p5927_p12 = pnand %p5926_p10, %p5920_p0 }
  0xb0   : > { %5930 = shalt.err (!%p5927_p12)
}
  0xb1   : > { %5572 = dma.hbm_to_vmem [thread:$0]  (%p7383_p2), %s6386_s0, 256, %s6390_s11, %s6354_s22, %s6066_s25, %s6066_s25, %s6067_s19  }
  0xb2 PF: > { %p7384_p7 = scmp.ne.s32.totalorder %s7377_s24, 0 }
  0xb3   : > { %s6420_s23 = sand.u32 (!%p7384_p7), 1, %s6037_s26   ;;  %p7385_p2 = scmp.ne.s32.totalorder (!%p7384_p7), %s7371_s20, 0 }
  0xb4   : > { %640 = sbr.rel (%p7384_p7) target bundleno = 7938 (0x1f02), region = 98  ;;  %s4433_s18 = sshll.u32 (!%p7384_p7), %s6420_s23, 7 }
  0xb5   : > { %s4434_s28 = sshll.u32 (!%p7384_p7), %s6420_s23, 8  ;;  %s6426_s1 = scalar_lea.vmem (!%p7384_p7), [#allocation2], %s4433_s18 }
  0xb6   : > { %s650_s13 = scalar_lea.sflag (!%p7384_p7), [#allocation4], %s6420_s23  ;;  %s6429_s15 = scalar_lea.vmem (!%p7384_p7), [#allocation3], %s4434_s28 }
  0xbb   : > { %6012 = dma.done.wait (%p7385_p2), %s650_s13, 4096  }
  0xbc   : > { %6014 = vsyncadd (%p7385_p2), %s650_s13, 4294963200  ;;  %p7386_p13 = scmp.eq.s32.totalorder %s6185_s14, 0 }
  0xbe   : > { %6016 = dma.done.wait (%p7386_p13), [#allocation7], 640   ;;  %p7387_p1 = pmov %p7386_p13 }
  0xbf   : > { %s666_s24 = sand.u32 1, %s6185_s14   ;;  %s6441_s22 = sshll.u32 %s6420_s23, 4 }
  0xc0   : > { %6018 = vsyncadd (%p7387_p1), [#allocation7], 4294966656  ;;  %s667_s25 = scalar_lea.sflag [#allocation10], %s666_s24  ;;  %s670_s19 = scalar_lea.vmem [#allocation9], %s6441_s22 }
  0xc1   : > { %6020 = dma.done.wait (%p7385_p2), %s667_s25, 512  }
  0xc2   : > { %6022 = vsyncadd (%p7385_p2), %s667_s25, 4294966784  ;;  %v6069_v16 = vmov 0.0   ;;  %v6451_v17 = vld [vmem:[#allocation6] sm:$0x77]  ;;  %vm843_vm0 = vcmask 1042432   ;;  %vm762_vm1 = vcmask 261120  }
  0xc3   : > { %912 = vmatprep.mubr.f32.mxu0 %v6069_v16  ;;  %v817_v18 = vld [vmem:[%s6426_s1] sm:$0xff]  ;;  %v6456_v19 = vcombine.high %v6451_v17, %v6451_v17  ;;  %v804_v21 = vld [vmem:[%s7338_s5 + $0x8] sm:$0xff]  ;;  %v805_v22 = vld [vmem:[%s7338_s5 + $0x10] sm:$0xff]  ;;  %vm836_vm2 = vcmask 23552   ;;  %s6477_s13 = scalar_lea.vmem [#allocation13], %s6441_s22  ;;  %s679_s20 = scalar_lea.vmem [#allocation11], %s6441_s22 }
  0xc4   : > { %v803_v20 = vld [vmem:[%s7338_s5] sm:$0xff]  ;;  %v806_v24 = vld [vmem:[%s7338_s5 + $0x18] sm:$0xff]  ;;  %v788_v29 = vld [vmem:[%s7337_s4 + $0x88] sm:$0xff]  ;;  %s6643_s16 = scalar_lea.vmem [#allocation15], %s6441_s22  ;;  %s6070_s17 = smov 32  }
  0xc5   : > { %v6467_v23 = vpack.c.bf16 %v804_v21, %v803_v20  ;;  %v760_v25 = vld [vmem:[%s670_s19] sm:$0xff]  ;;  %v761_v26 = vld [vmem:[%s670_s19 + $0x8] sm:$0xff]  ;;  %4442 = vmatprep.subr.msk.mxu0 %vm843_vm0, %v6456_v19  ;;  %v6474_v27 = vpack.c.bf16 %v806_v24, %v805_v22  ;;  %v824_v22 = vlaneseq  ;;  %s7388_s3 = sld [smem:[#allocation35_spill]]  ;;  %s6071_s25 = smov 64  }
  0xc6   : > { %763 = vst.msk [vmem:[%s6477_s13] sm:$0xff] %vm762_vm1, %v760_v25  ;;  %764 = vst.msk [vmem:[%s6477_s13 + $0x8] sm:$0xff] %vm762_vm1, %v761_v26  ;;  %4443 = vmatpush1.msk.msra.mxu0 %vm843_vm0, %v6451_v17  ;;  %v787_v28 = vld [vmem:[%s7337_s4 + $0x80] sm:$0xff]  ;;  %v818_v30 = vld [vmem:[%s6426_s1 + $0x8] sm:$0xff]  ;;  %s6749_s11 = scalar_lea.vmem [#allocation12], %s4433_s18 }
  0xc7   : > { %4444 = vmatmul.mubr.msk.f32.vlgmr.msra.gmra.mrb[0].mxu0 %vm836_vm2, %v817_v18  ;;  %5176 = vmatprep.subr.bf16.mxu0 %v6467_v23  ;;  %v6497_v31 = vpack.c.bf16 %v788_v29, %v787_v28  ;;  %v771_v32 = vld [vmem:[%s7337_s4] sm:$0xff]  ;;  %v772_v33 = vld [vmem:[%s7337_s4 + $0x8] sm:$0xff]  ;;  %v789_v34 = vld [vmem:[%s7337_s4 + $0x90] sm:$0xff]  ;;  %v825_v24 = vshrl.u32 %v824_v22, 7 }
  0xc8   : > { %918 = vmatprep.mubr.f32.mxu0 %v6069_v16  ;;  %5178 = vmatpush3.bf16.msra.mxu0 %v6467_v23  ;;  %v790_v35 = vld [vmem:[%s7337_s4 + $0x98] sm:$0xff]  ;;  %v6515_v38 = vpack.c.bf16 %v772_v33, %v771_v32  ;;  %v773_v40 = vld [vmem:[%s7337_s4 + $0x10] sm:$0xff]  ;;  %v791_v42 = vld [vmem:[%s7337_s4 + $0xa0] sm:$0xff] }
  0xc9   : > { %5180 = vmatprep.subr.bf16.mxu0 %v6474_v27  ;;  %v6519_v39 = vpack.c.bf16 %v790_v35, %v789_v34  ;;  %v774_v41 = vld [vmem:[%s7337_s4 + $0x18] sm:$0xff]  ;;  %v792_v43 = vld [vmem:[%s7337_s4 + $0xa8] sm:$0xff]  ;;  %v775_v46 = vld [vmem:[%s7337_s4 + $0x20] sm:$0xff]  ;;  %v826_v25 = vsub.s32 0, %v825_v24  ;;  %v830_v28 = vsub.s32 1, %v825_v24 }
  0xca   : > { %v6535_v44 = vpack.c.bf16 %v774_v41, %v773_v40  ;;  %v6538_v45 = vpack.c.bf16 %v792_v43, %v791_v42  ;;  %v776_v47 = vld [vmem:[%s7337_s4 + $0x28] sm:$0xff]  ;;  %v793_v48 = vld [vmem:[%s7337_s4 + $0xb0] sm:$0xff]  ;;  %v794_v49 = vld [vmem:[%s7337_s4 + $0xb8] sm:$0xff] }
  0xcb   : > { %4445 = vmatmul.mubr.msk.f32.gmra.mrb[2].mxu0 %vm836_vm2, %v818_v30  ;;  %v6553_v50 = vpack.c.bf16 %v776_v47, %v775_v46  ;;  %v6556_v51 = vpack.c.bf16 %v794_v49, %v793_v48  ;;  %v777_v52 = vld [vmem:[%s7337_s4 + $0x30] sm:$0xff]  ;;  %v778_v53 = vld [vmem:[%s7337_s4 + $0x38] sm:$0xff]  ;;  %v795_v54 = vld [vmem:[%s7337_s4 + $0xc0] sm:$0xff] }
  0xcc   : > { %5182 = vmatpush3.bf16.msra.mxu0 %v6474_v27  ;;  %v796_v55 = vld [vmem:[%s7337_s4 + $0xc8] sm:$0xff]  ;;  %v6571_v56 = vpack.c.bf16 %v778_v53, %v777_v52  ;;  %v779_v58 = vld [vmem:[%s7337_s4 + $0x40] sm:$0xff]  ;;  %v797_v60 = vld [vmem:[%s7337_s4 + $0xd0] sm:$0xff] }
  0xcd   : > { %v813_v36 = vld [vmem:[%s6477_s13] sm:$0xff]  ;;  %v814_v37 = vld [vmem:[%s6477_s13 + $0x8] sm:$0xff]  ;;  %5184 = vmatprep.subr.bf16.mxu0 %v6497_v31  ;;  %v6574_v57 = vpack.c.bf16 %v796_v55, %v795_v54 }
  0xce   : > { %5007 = vmatprep.mubr.msk.f32.mxu0 %vm762_vm1, %v813_v36  ;;  %v780_v59 = vld [vmem:[%s7337_s4 + $0x48] sm:$0xff]  ;;  %v798_v61 = vld [vmem:[%s7337_s4 + $0xd8] sm:$0xff]  ;;  %v781_v0 = vld [vmem:[%s7337_s4 + $0x50] sm:$0xff] }
  0xcf   : > { %5008 = vmatmul.mubr.msk.f32.vlgmr.msra.gmra.mrb[4].mxu0 %vm762_vm1, %v814_v37  ;;  %v6589_v62 = vpack.c.bf16 %v780_v59, %v779_v58  ;;  %v6592_v63 = vpack.c.bf16 %v798_v61, %v797_v60  ;;  %v782_v1 = vld [vmem:[%s7337_s4 + $0x58] sm:$0xff]  ;;  %v799_v2 = vld [vmem:[%s7337_s4 + $0xe0] sm:$0xff]  ;;  %v800_v3 = vld [vmem:[%s7337_s4 + $0xe8] sm:$0xff] }
  0xd0   : > { %5186 = vmatpush3.bf16.msra.mxu0 %v6515_v38  ;;  %v6607_v4 = vpack.c.bf16 %v782_v1, %v781_v0  ;;  %v6610_v5 = vpack.c.bf16 %v800_v3, %v799_v2  ;;  %v783_v6 = vld [vmem:[%s7337_s4 + $0x60] sm:$0xff]  ;;  %v784_v7 = vld [vmem:[%s7337_s4 + $0x68] sm:$0xff]  ;;  %v801_v9 = vld [vmem:[%s7337_s4 + $0xf0] sm:$0xff] }
  0xd1   : > { %5188 = vmatprep.subr.bf16.mxu0 %v6519_v39  ;;  %v6620_v8 = vpack.c.bf16 %v784_v7, %v783_v6  ;;  %v802_v10 = vld [vmem:[%s7337_s4 + $0xf8] sm:$0xff]  ;;  %v785_v12 = vld [vmem:[%s7337_s4 + $0x70] sm:$0xff]  ;;  %v770_v26 = vld [vmem:[%s7388_s3] sm:$0x3] }
  0xd2   : > { %v6629_v11 = vpack.c.bf16 %v802_v10, %v801_v9  ;;  %v786_v13 = vld [vmem:[%s7337_s4 + $0x78] sm:$0xff]  ;;  %v766_v18 = vld [vmem:[%s679_s20 + $0x8] sm:$0xff]  ;;  %v6656_v29 = vrot.slane %v770_v26, %v826_v25  ;;  %v6658_v30 = vrot.slane %v770_v26, %v830_v28  ;;  %v820_v34 = vld [vmem:[%s6429_s15 + $0x8] sm:$0xff] }
  0xd3   : > { %v6637_v14 = vpack.c.bf16 %v786_v13, %v785_v12  ;;  %v765_v15 = vld [vmem:[%s679_s20] sm:$0xff]  ;;  %768 = vst.msk [vmem:[%s6643_s16 + $0x8] sm:$0xff] %vm762_vm1, %v766_v18  ;;  %v819_v36 = vld [vmem:[%s6429_s15] sm:$0xff]  ;;  %v821_v48 = vld [vmem:[%s6429_s15 + $0x10] sm:$0xff] }
  0xd4   : > { %5190 = vmatpush3.bf16.msra.mxu0 %v6535_v44  ;;  %767 = vst.msk [vmem:[%s6643_s16] sm:$0xff] %vm762_vm1, %v765_v15  ;;  %v822_v46 = vld [vmem:[%s6429_s15 + $0x18] sm:$0xff]  ;;  %v6671_v61 = vld [vmem:[%s7339_s6] ss:$0 sm:$0xff] }
  0xd5   : > { %5192 = vmatprep.subr.bf16.mxu0 %v6538_v45 }
  0xd8   : > { %5194 = vmatpush3.bf16.msra.mxu0 %v6553_v50 }
  0xd9   : > { %5196 = vmatprep.subr.bf16.mxu0 %v6556_v51 }
  0xda   : > { %v816_v21 = vld [vmem:[%s6643_s16 + $0x8] sm:$0xff] }
  0xdb   : > { %v815_v20 = vld [vmem:[%s6643_s16] sm:$0xff] }
  0xdc   : > { %5198 = vmatpush3.bf16.msra.mxu0 %v6571_v56  ;;  %1110 = vrot.lane.b32.xlu1 %v815_v20, %s6070_s17 }
  0xdd   : > { %5200 = vmatprep.subr.bf16.mxu0 %v6574_v57 }
  0xe0   : > { %5202 = vmatpush3.bf16.msra.mxu0 %v6589_v62  ;;  %1112 = vrot.lane.b32.xlu1 %v816_v21, %s6070_s17 }
  0xe1   : > { %5204 = vmatprep.subr.bf16.mxu0 %v6592_v63 }
  0xe4   : > { %5206 = vmatpush3.bf16.msra.mxu0 %v6607_v4 }
  0xe5   : > { %5208 = vmatprep.subr.bf16.mxu0 %v6610_v5 }
  0xe8   : > { %5210 = vmatpush3.bf16.msra.mxu0 %v6620_v8 }
  0xe9   : > { %5212 = vmatprep.subr.bf16.mxu0 %v6629_v11 }
  0xec   : > { %5214 = vmatpush3.bf16.msra.mxu0 %v6637_v14 }
 0x19a   : > { %v914_v32 = vpop.f32.mrb[0].mxu0 }
 0x19b   : > { %v915_v33 = vadd.f32 %v914_v32, %v6656_v29  ;;  %v916_v35 = vpop.f32.mrb[1].mxu0 }
 0x19c   : > { %v917_v37 = vadd.f32 %v916_v35, %v6658_v30 }
 0x19d   : > { %v925_v42 = vmul.f32 %v915_v33, %v819_v36 }
 0x19e   : > { %v926_v40 = vmul.f32 %v917_v37, %v820_v34  ;;  %v920_v41 = vpop.f32.mrb[2].mxu0  ;;  %v1111_v34 = vpop.permute.xlu1 %1110 }
 0x19f   : > { %v921_v43 = vadd.f32 %v920_v41, %v6656_v29  ;;  %v922_v47 = vpop.f32.mrb[3].mxu0 }
 0x1a0   : > { %v923_v49 = vadd.f32 %v922_v47, %v6658_v30  ;;  %1075 = vmatprep.mubr.f32.mxu0 %v926_v40  ;;  %v809_v47 = vld [vmem:[#allocation8 + $0x8] sm:$0xff] }
 0x1a1   : > { %1076 = vmatmul.mubr.f32.vlgmr.msra.gmra.mrb[6].mxu0 %v925_v42  ;;  %v927_v54 = vmul.f32 %v921_v43, %v821_v48  ;;  %v810_v48 = vld [vmem:[#allocation8 + $0x10] sm:$0xff] }
 0x1a2   : > { %v928_v52 = vmul.f32 %v923_v49, %v822_v46  ;;  %v5009_v53 = vpop.f32.mrb[4].mxu0  ;;  %v1113_v36 = vpop.permute.xlu1 %1112  ;;  %v808_v46 = vld [vmem:[#allocation8] sm:$0xff] }
 0x1a3   : > { %v1002_v55 = vpop.f32.mrb[5].mxu0  ;;  %v6685_v49 = vpack.c.bf16 %v809_v47, %v808_v46 }
 0x1a4   : > { %1080 = vmatprep.mubr.f32.mxu0 %v928_v52  ;;  %v811_v52 = vld [vmem:[#allocation8 + $0x18] sm:$0xff] }
 0x1a5   : > { %1081 = vmatmul.mubr.f32.gmra.mrb[8].mxu0 %v927_v54  ;;  %v6687_v54 = vpack.c.bf16 %v811_v52, %v810_v48  ;;  %5216 = vmatprep.subr.bf16.mxu1 %v6685_v49 }
 0x1a6   : > { %5218 = vmatpush3.bf16.msra.mxu1 %v6685_v49  ;;  %5264 = vmatprep.subr.bf16.mxu0 %v6685_v49 }
 0x1a7   : > { %5220 = vmatprep.subr.bf16.mxu1 %v6687_v54  ;;  %5266 = vmatpush3.bf16.msra.mxu0 %v6685_v49 }
 0x1a8   : > { %5268 = vmatprep.subr.bf16.mxu0 %v6687_v54 }
 0x1aa   : > { %5222 = vmatpush3.bf16.msra.mxu1 %v6687_v54 }
 0x1ab   : > { %4460 = vmatprep.subr.msk.mxu1 %vm843_vm0, %v6456_v19  ;;  %5270 = vmatpush3.bf16.msra.mxu0 %v6687_v54 }
 0x1ac   : > { %4478 = vmatprep.subr.msk.mxu0 %vm843_vm0, %v6456_v19 }
 0x274   : > { %v4637_v58 = vpop.f32.mrb[6].mxu0 }
 0x275   : > { %v4638_v59 = vpop.f32.mrb[7].mxu0 }
 0x276   : > { %v4639_v60 = vadd.f32 %v4638_v59, %v4637_v58 }
 0x278   : > { %v1078_v0 = vadd.f32 %v4639_v60, %v1002_v55  ;;  %v4640_v1 = vpop.f32.mrb[8].mxu0 }
 0x279   : > { %v4641_v2 = vpop.f32.mrb[9].mxu0 }
 0x27a   : > { %v1092_v3 = vadd.f32 %v6671_v61, %v1078_v0  ;;  %v4642_v6 = vadd.f32 %v4641_v2, %v4640_v1 }
 0x27c   : > { %5688 = vtanh.f32 %v1092_v3  ;;  %v1083_v7 = vadd.f32 %v5009_v53, %v4642_v6  ;;  %v4449_v13 = vmul.f32 -1.442695, %v1092_v3  ;;  %v4454_v3 = vld [vmem:[%s6426_s1 + $0x10] sm:$0xff]  ;;  %v4455_v6 = vld [vmem:[%s6426_s1 + $0x18] sm:$0xff] }
 0x27e   : > { %v1093_v9 = vadd.f32 %v6671_v61, %v1083_v7 }
 0x280   : > { %5690 = vtanh.f32 %v1093_v9  ;;  %v4450_v15 = vmul.f32 -1.442695, %v1093_v9 }
 0x281   : > { %5692 = vpow2.f32 %v4449_v13 }
 0x282   : > { %5694 = vpow2.f32 %v4450_v15 }
 0x286   : > { %v5689_v10 = vpop.eup %5688 }
 0x287   : > { %1120 = vrot.lane.b32.xlu0 %v5689_v10, %s6071_s25  ;;  %v6743_v10 = vld [vmem:[%s7341_s8] ss:$0 sm:$0xff] }
 0x28a   : > { %v5691_v12 = vpop.eup %5690 }
 0x28b   : > { %1122 = vrot.lane.b32.xlu0 %v5691_v12, %s6071_s25  ;;  %v5693_v18 = vpop.eup %5692 }
 0x28c   : > { %v1100_v20 = vadd.f32 1.0, %v5693_v18  ;;  %v5695_v21 = vpop.eup %5694 }
 0x28d   : > { %v1101_v22 = vadd.f32 1.0, %v5695_v21 }
 0x28e   : > { %5696 = vrcp.f32 %v1100_v20 }
 0x28f   : > { %5698 = vrcp.f32 %v1101_v22  ;;  %v4457_v22 = vld [vmem:[%s6429_s15 + $0x28] sm:$0xff] }
 0x298   : > { %v5697_v24 = vpop.eup %5696 }
 0x299   : > { %v5699_v28 = vpop.eup %5698  ;;  %v1116_v35 = vmul.f32 %v5697_v24, %v1111_v34 }
 0x29a   : > { %v1117_v41 = vmul.f32 %v5699_v28, %v1113_v36 }
 0x2f9   : > { %v1121_v25 = vpop.permute.xlu0 %1120 }
 0x2fa   : > { %v1126_v26 = vmul.f32 %v5697_v24, %v1121_v25  ;;  %v4456_v25 = vld [vmem:[%s6429_s15 + $0x20] sm:$0xff] }
 0x2fc   : > { %1130 = vrot.lane.b32.xlu0 %v1126_v26, %s6070_s17 }
 0x2fd   : > { %v1123_v32 = vpop.permute.xlu0 %1122 }
 0x2fe   : > { %v1127_v33 = vmul.f32 %v5699_v28, %v1123_v32 }
 0x300   : > { %1132 = vrot.lane.b32.xlu1 %v1127_v33, %s6070_s17 }
 0x36e   : > { %v1131_v37 = vpop.permute.xlu0 %1130 }
 0x36f   : > { %v6679_v40 = vadd.f32 %v1131_v37, %v1116_v35  ;;  %v4459_v35 = vld [vmem:[%s6429_s15 + $0x38] sm:$0xff]  ;;  %v4458_v37 = vld [vmem:[%s6429_s15 + $0x30] sm:$0xff] }
 0x371   : > { %5700 = vtanh.f32 %v6679_v40 }
 0x372   : > { %v1133_v42 = vpop.permute.xlu1 %1132 }
 0x373   : > { %v6682_v43 = vadd.f32 %v1133_v42, %v1117_v41 }
 0x375   : > { %5702 = vtanh.f32 %v6682_v43 }
 0x37b   : > { %v5701_v53 = vpop.eup %5700 }
 0x37c   : > { %1142 = vrot.lane.b32.xlu0 %v5701_v53, %s6071_s25 }
 0x37f   : > { %v5703_v55 = vpop.eup %5702 }
 0x380   : > { %1144 = vrot.lane.b32.xlu1 %v5703_v55, %s6071_s25 }
 0x3ee   : > { %v1143_v58 = vpop.permute.xlu0 %1142 }
 0x3ef   : > { %v1148_v59 = vmul.f32 %v5697_v24, %v1143_v58 }
 0x3f1   : > { %1158 = vrot.lane.b32.xlu0 %v1148_v59, %s6070_s17 }
 0x3f2   : > { %v1145_v60 = vpop.permute.xlu1 %1144 }
 0x3f3   : > { %v1149_v0 = vmul.f32 %v5699_v28, %v1145_v60 }
 0x3f5   : > { %1160 = vrot.lane.b32.xlu1 %v1149_v0, %s6070_s17  ;;  %1355 = vrot.lane.b32.xlu0 %v1148_v59, %s6070_s17 }
 0x3f9   : > { %1357 = vrot.lane.b32.xlu1 %v1149_v0, %s6070_s17 }
 0x463   : > { %v1159_v1 = vpop.permute.xlu0 %1158 }
 0x464   : > { %5018 = vmatprep.mubr.msk.f32.mxu1 %vm762_vm1, %v1159_v1 }
 0x467   : > { %v1161_v2 = vpop.permute.xlu1 %1160  ;;  %v1356_v7 = vpop.permute.xlu0 %1355 }
 0x468   : > { %5019 = vmatmul.mubr.msk.f32.vlgmr.msra.gmra.mrb[0].mxu1 %vm762_vm1, %v1161_v2 }
 0x469   : > { %4461 = vmatpush1.msk.msra.mxu1 %vm843_vm0, %v6451_v17  ;;  %1336 = vmatprep.mubr.f32.mxu1 %v6069_v16 }
 0x46a   : > { %5224 = vmatprep.subr.bf16.mxu1 %v6467_v23 }
 0x46b   : > { %v1358_v9 = vpop.permute.xlu1 %1357 }
 0x46c   : > { %4462 = vmatmul.mubr.msk.f32.vlgmr.msra.gmra.mrb[2].mxu1 %vm836_vm2, %v4454_v3 }
 0x46d   : > { %5226 = vmatpush3.bf16.msra.mxu1 %v6467_v23  ;;  %1342 = vmatprep.mubr.f32.mxu1 %v6069_v16 }
 0x46e   : > { %5228 = vmatprep.subr.bf16.mxu1 %v6474_v27 }
 0x470   : > { %4463 = vmatmul.mubr.msk.f32.gmra.mrb[4].mxu1 %vm836_vm2, %v4455_v6 }
 0x471   : > { %5230 = vmatpush3.bf16.msra.mxu1 %v6474_v27  ;;  %5029 = vmatprep.mubr.msk.f32.mxu1 %vm762_vm1, %v1356_v7 }
 0x472   : > { %5232 = vmatprep.subr.bf16.mxu1 %v6497_v31 }
 0x474   : > { %5030 = vmatmul.mubr.msk.f32.vlgmr.msra.gmra.mrb[6].mxu1 %vm762_vm1, %v1358_v9 }
 0x475   : > { %5234 = vmatpush3.bf16.msra.mxu1 %v6515_v38 }
 0x476   : > { %5236 = vmatprep.subr.bf16.mxu1 %v6519_v39 }
 0x479   : > { %5238 = vmatpush3.bf16.msra.mxu1 %v6535_v44 }
 0x47a   : > { %5240 = vmatprep.subr.bf16.mxu1 %v6538_v45 }
 0x47d   : > { %5242 = vmatpush3.bf16.msra.mxu1 %v6553_v50 }
 0x47e   : > { %5244 = vmatprep.subr.bf16.mxu1 %v6556_v51 }
 0x481   : > { %5246 = vmatpush3.bf16.msra.mxu1 %v6571_v56 }
 0x482   : > { %5248 = vmatprep.subr.bf16.mxu1 %v6574_v57 }
 0x485   : > { %5250 = vmatpush3.bf16.msra.mxu1 %v6589_v62 }
 0x486   : > { %5252 = vmatprep.subr.bf16.mxu1 %v6592_v63 }
 0x489   : > { %5254 = vmatpush3.bf16.msra.mxu1 %v6607_v4 }
 0x48a   : > { %5256 = vmatprep.subr.bf16.mxu1 %v6610_v5 }
 0x48d   : > { %5258 = vmatpush3.bf16.msra.mxu1 %v6620_v8 }
 0x48e   : > { %5260 = vmatprep.subr.bf16.mxu1 %v6629_v11 }
 0x491   : > { %5262 = vmatpush3.bf16.msra.mxu1 %v6637_v14 }
 0x492   : > { %5312 = vmatprep.subr.bf16.mxu1 %v6685_v49 }
 0x53b   : > { %v5020_v12 = vpop.f32.mrb[0].mxu1 }
 0x53c   : > { %v1238_v13 = vadd.f32 %v5020_v12, %v6743_v10  ;;  %v1232_v15 = vpop.f32.mrb[1].mxu1 }
 0x53d   : > { %v1233_v18 = vadd.f32 %v6743_v10, %v1232_v15 }
 0x53e   : > { %1242 = vst [vmem:[%s6749_s11 + $0x8] sm:$0xff] %v1238_v13 }
 0x53f   : > { %1241 = vst [vmem:[%s6749_s11] sm:$0xff] %v1233_v18  ;;  %v1338_v20 = vpop.f32.mrb[2].mxu1 }
 0x540   : > { %v1339_v21 = vadd.f32 %v1338_v20, %v6656_v29  ;;  %v1340_v24 = vpop.f32.mrb[3].mxu1 }
 0x541   : > { %v1341_v26 = vadd.f32 %v1340_v24, %v6658_v30 }
 0x542   : > { %v1349_v33 = vmul.f32 %v4456_v25, %v1339_v21 }
 0x543   : > { %v1350_v28 = vmul.f32 %v4457_v22, %v1341_v26  ;;  %v1344_v32 = vpop.f32.mrb[4].mxu1 }
 0x544   : > { %v1345_v34 = vadd.f32 %v1344_v32, %v6656_v29  ;;  %v1346_v36 = vpop.f32.mrb[5].mxu1 }
 0x545   : > { %v1347_v41 = vadd.f32 %v1346_v36, %v6658_v30  ;;  %1502 = vmatprep.mubr.f32.mxu1 %v1350_v28 }
 0x546   : > { %1503 = vmatmul.mubr.f32.vlgmr.msra.gmra.mrb[8].mxu1 %v1349_v33  ;;  %v1351_v47 = vmul.f32 %v4458_v37, %v1345_v34 }
 0x547   : > { %v1352_v42 = vmul.f32 %v4459_v35, %v1347_v41  ;;  %v5031_v46 = vpop.f32.mrb[6].mxu1  ;;  %5314 = vmatpush3.bf16.msra.mxu1 %v6685_v49 }
 0x548   : > { %v1429_v48 = vpop.f32.mrb[7].mxu1  ;;  %5316 = vmatprep.subr.bf16.mxu1 %v6687_v54 }
 0x549   : > { %1507 = vmatprep.mubr.f32.mxu1 %v1352_v42 }
 0x54a   : > { %1508 = vmatmul.mubr.f32.gmra.mrb[10].mxu1 %v1351_v47 }
 0x54b   : > { %5318 = vmatpush3.bf16.msra.mxu1 %v6687_v54 }
 0x54c   : > { %4496 = vmatprep.subr.msk.mxu1 %vm843_vm0, %v6456_v19 }
 0x619   : > { %v4687_v52 = vpop.f32.mrb[8].mxu1 }
 0x61a   : > { %v4688_v53 = vpop.f32.mrb[9].mxu1 }
 0x61b   : > { %v4689_v55 = vadd.f32 %v4688_v53, %v4687_v52  ;;  %v4472_v53 = vld [vmem:[%s6426_s1 + $0x20] sm:$0xff] }
 0x61d   : > { %v1505_v58 = vadd.f32 %v4689_v55, %v1429_v48  ;;  %v4690_v59 = vpop.f32.mrb[10].mxu1  ;;  %v4473_v55 = vld [vmem:[%s6426_s1 + $0x28] sm:$0xff] }
 0x61e   : > { %v4691_v60 = vpop.f32.mrb[11].mxu1 }
 0x61f   : > { %v1513_v0 = vadd.f32 %v6671_v61, %v1505_v58  ;;  %v4692_v1 = vadd.f32 %v4691_v60, %v4690_v59 }
 0x621   : > { %5704 = vtanh.f32 %v1513_v0  ;;  %v1510_v2 = vadd.f32 %v5031_v46, %v4692_v1  ;;  %v4466_v9 = vmul.f32 -1.442695, %v1513_v0 }
 0x623   : > { %v1514_v3 = vadd.f32 %v6671_v61, %v1510_v2 }
 0x625   : > { %5706 = vtanh.f32 %v1514_v3  ;;  %v4467_v12 = vmul.f32 -1.442695, %v1514_v3 }
 0x626   : > { %5708 = vpow2.f32 %v4466_v9 }
 0x627   : > { %5710 = vpow2.f32 %v4467_v12  ;;  %v4474_v12 = vld [vmem:[%s6429_s15 + $0x40] sm:$0xff] }
 0x62b   : > { %v5705_v6 = vpop.eup %5704 }
 0x62c   : > { %1533 = vrot.lane.b32.xlu0 %v5705_v6, %s6071_s25 }
 0x62f   : > { %v5707_v7 = vpop.eup %5706 }
 0x630   : > { %1535 = vrot.lane.b32.xlu1 %v5707_v7, %s6071_s25  ;;  %v5709_v13 = vpop.eup %5708  ;;  %v4475_v7 = vld [vmem:[%s6429_s15 + $0x48] sm:$0xff] }
 0x631   : > { %v1521_v15 = vadd.f32 1.0, %v5709_v13  ;;  %v5711_v18 = vpop.eup %5710 }
 0x632   : > { %v1522_v20 = vadd.f32 1.0, %v5711_v18 }
 0x633   : > { %5712 = vrcp.f32 %v1521_v15 }
 0x634   : > { %5714 = vrcp.f32 %v1522_v20 }
 0x63d   : > { %v5713_v21 = vpop.eup %5712 }
 0x63e   : > { %v5715_v25 = vpop.eup %5714  ;;  %v1529_v32 = vmul.f32 %v5713_v21, %v6679_v40 }
 0x63f   : > { %v1530_v35 = vmul.f32 %v5715_v25, %v6682_v43 }
 0x69e   : > { %v1534_v22 = vpop.permute.xlu0 %1533 }
 0x69f   : > { %v1539_v24 = vmul.f32 %v5713_v21, %v1534_v22  ;;  %v4477_v22 = vld [vmem:[%s6429_s15 + $0x58] sm:$0xff] }
 0x6a1   : > { %1543 = vrot.lane.b32.xlu0 %v1539_v24, %s6070_s17 }
 0x6a2   : > { %v1536_v26 = vpop.permute.xlu1 %1535 }
 0x6a3   : > { %v1540_v28 = vmul.f32 %v5715_v25, %v1536_v26 }
 0x6a5   : > { %1545 = vrot.lane.b32.xlu1 %v1540_v28, %s6070_s17 }
 0x713   : > { %v1544_v33 = vpop.permute.xlu0 %1543 }
 0x714   : > { %v6773_v34 = vadd.f32 %v1544_v33, %v1529_v32 }
 0x716   : > { %5716 = vtanh.f32 %v6773_v34 }
 0x717   : > { %v1546_v36 = vpop.permute.xlu1 %1545 }
 0x718   : > { %v6777_v37 = vadd.f32 %v1546_v36, %v1530_v35 }
 0x71a   : > { %5718 = vtanh.f32 %v6777_v37 }
 0x720   : > { %v5717_v41 = vpop.eup %5716 }
 0x721   : > { %1555 = vrot.lane.b32.xlu0 %v5717_v41, %s6071_s25 }
 0x724   : > { %v5719_v42 = vpop.eup %5718 }
 0x725   : > { %1557 = vrot.lane.b32.xlu1 %v5719_v42, %s6071_s25 }
 0x793   : > { %v1556_v40 = vpop.permute.xlu0 %1555 }
 0x794   : > { %v1561_v46 = vmul.f32 %v5713_v21, %v1556_v40 }
 0x796   : > { %1565 = vrot.lane.b32.xlu0 %v1561_v46, %s6070_s17 }
 0x797   : > { %v1558_v47 = vpop.permute.xlu1 %1557 }
 0x798   : > { %v1562_v48 = vmul.f32 %v5715_v25, %v1558_v47  ;;  %v4476_v25 = vld [vmem:[%s6429_s15 + $0x50] sm:$0xff] }
 0x79a   : > { %1567 = vrot.lane.b32.xlu1 %v1562_v48, %s6070_s17  ;;  %1757 = vrot.lane.b32.xlu0 %v1561_v46, %s6070_s17 }
 0x79e   : > { %1759 = vrot.lane.b32.xlu1 %v1562_v48, %s6070_s17 }
 0x808   : > { %v1566_v43 = vpop.permute.xlu0 %1565 }
 0x809   : > { %5040 = vmatprep.mubr.msk.f32.mxu0 %vm762_vm1, %v1566_v43 }
 0x80c   : > { %v1568_v52 = vpop.permute.xlu1 %1567  ;;  %v1758_v58 = vpop.permute.xlu0 %1757 }
 0x80d   : > { %5041 = vmatmul.mubr.msk.f32.vlgmr.msra.gmra.mrb[10].mxu0 %vm762_vm1, %v1568_v52 }
 0x80e   : > { %4479 = vmatpush1.msk.msra.mxu0 %vm843_vm0, %v6451_v17  ;;  %1738 = vmatprep.mubr.f32.mxu0 %v6069_v16 }
 0x80f   : > { %5272 = vmatprep.subr.bf16.mxu0 %v6467_v23 }
 0x810   : > { %v1760_v59 = vpop.permute.xlu1 %1759 }
 0x811   : > { %4480 = vmatmul.mubr.msk.f32.vlgmr.msra.gmra.mrb[12].mxu0 %vm836_vm2, %v4472_v53 }
 0x812   : > { %5274 = vmatpush3.bf16.msra.mxu0 %v6467_v23  ;;  %1744 = vmatprep.mubr.f32.mxu0 %v6069_v16 }
 0x813   : > { %5276 = vmatprep.subr.bf16.mxu0 %v6474_v27 }
 0x815   : > { %4481 = vmatmul.mubr.msk.f32.gmra.mrb[14].mxu0 %vm836_vm2, %v4473_v55 }
 0x816   : > { %5278 = vmatpush3.bf16.msra.mxu0 %v6474_v27  ;;  %5051 = vmatprep.mubr.msk.f32.mxu0 %vm762_vm1, %v1758_v58 }
 0x817   : > { %5280 = vmatprep.subr.bf16.mxu0 %v6497_v31 }
 0x819   : > { %5052 = vmatmul.mubr.msk.f32.vlgmr.msra.gmra.mrb[16].mxu0 %vm762_vm1, %v1760_v59 }
 0x81a   : > { %5282 = vmatpush3.bf16.msra.mxu0 %v6515_v38 }
 0x81b   : > { %5284 = vmatprep.subr.bf16.mxu0 %v6519_v39 }
 0x81e   : > { %5286 = vmatpush3.bf16.msra.mxu0 %v6535_v44 }
 0x81f   : > { %5288 = vmatprep.subr.bf16.mxu0 %v6538_v45 }
 0x822   : > { %5290 = vmatpush3.bf16.msra.mxu0 %v6553_v50 }
 0x823   : > { %5292 = vmatprep.subr.bf16.mxu0 %v6556_v51 }
 0x826   : > { %5294 = vmatpush3.bf16.msra.mxu0 %v6571_v56 }
 0x827   : > { %5296 = vmatprep.subr.bf16.mxu0 %v6574_v57 }
 0x82a   : > { %5298 = vmatpush3.bf16.msra.mxu0 %v6589_v62 }
 0x82b   : > { %5300 = vmatprep.subr.bf16.mxu0 %v6592_v63 }
 0x82e   : > { %5302 = vmatpush3.bf16.msra.mxu0 %v6607_v4 }
 0x82f   : > { %5304 = vmatprep.subr.bf16.mxu0 %v6610_v5 }
 0x832   : > { %5306 = vmatpush3.bf16.msra.mxu0 %v6620_v8 }
 0x833   : > { %5308 = vmatprep.subr.bf16.mxu0 %v6629_v11 }
 0x836   : > { %5310 = vmatpush3.bf16.msra.mxu0 %v6637_v14 }
 0x837   : > { %5360 = vmatprep.subr.bf16.mxu0 %v6685_v49 }
 0x8e0   : > { %v5042_v60 = vpop.f32.mrb[10].mxu0 }
 0x8e1   : > { %v1645_v0 = vadd.f32 %v5042_v60, %v6743_v10  ;;  %v1639_v1 = vpop.f32.mrb[11].mxu0 }
 0x8e2   : > { %v1640_v2 = vadd.f32 %v6743_v10, %v1639_v1 }
 0x8e3   : > { %4471 = vst [vmem:[%s6749_s11 + $0x18] sm:$0xff] %v1645_v0 }
 0x8e4   : > { %4470 = vst [vmem:[%s6749_s11 + $0x10] sm:$0xff] %v1640_v2  ;;  %v1740_v3 = vpop.f32.mrb[12].mxu0 }
 0x8e5   : > { %v1741_v6 = vadd.f32 %v1740_v3, %v6656_v29  ;;  %v1742_v9 = vpop.f32.mrb[13].mxu0 }
 0x8e6   : > { %v1743_v13 = vadd.f32 %v1742_v9, %v6658_v30 }
 0x8e7   : > { %v1751_v20 = vmul.f32 %v4474_v12, %v1741_v6 }
 0x8e8   : > { %v1752_v15 = vmul.f32 %v4475_v7, %v1743_v13  ;;  %v1746_v18 = vpop.f32.mrb[14].mxu0 }
 0x8e9   : > { %v1747_v21 = vadd.f32 %v1746_v18, %v6656_v29  ;;  %v1748_v24 = vpop.f32.mrb[15].mxu0 }
 0x8ea   : > { %v1749_v26 = vadd.f32 %v1748_v24, %v6658_v30  ;;  %1904 = vmatprep.mubr.f32.mxu0 %v1752_v15 }
 0x8eb   : > { %1905 = vmatmul.mubr.f32.vlgmr.msra.gmra.mrb[18].mxu0 %v1751_v20  ;;  %v1753_v33 = vmul.f32 %v4476_v25, %v1747_v21 }
 0x8ec   : > { %v1754_v28 = vmul.f32 %v4477_v22, %v1749_v26  ;;  %v5053_v32 = vpop.f32.mrb[16].mxu0  ;;  %5362 = vmatpush3.bf16.msra.mxu0 %v6685_v49 }
 0x8ed   : > { %v1831_v35 = vpop.f32.mrb[17].mxu0  ;;  %5364 = vmatprep.subr.bf16.mxu0 %v6687_v54 }
 0x8ee   : > { %1909 = vmatprep.mubr.f32.mxu0 %v1754_v28 }
 0x8ef   : > { %1910 = vmatmul.mubr.f32.gmra.mrb[20].mxu0 %v1753_v33 }
 0x8f0   : > { %5366 = vmatpush3.bf16.msra.mxu0 %v6687_v54 }
 0x8f1   : > { %4514 = vmatprep.subr.msk.mxu0 %vm843_vm0, %v6456_v19 }
 0x9be   : > { %v4737_v36 = vpop.f32.mrb[18].mxu0 }
 0x9bf   : > { %v4738_v41 = vpop.f32.mrb[19].mxu0 }
 0x9c0   : > { %v4739_v42 = vadd.f32 %v4738_v41, %v4737_v36  ;;  %v4490_v41 = vld [vmem:[%s6426_s1 + $0x30] sm:$0xff] }
 0x9c2   : > { %v1907_v40 = vadd.f32 %v4739_v42, %v1831_v35  ;;  %v4740_v46 = vpop.f32.mrb[20].mxu0  ;;  %v4491_v42 = vld [vmem:[%s6426_s1 + $0x38] sm:$0xff] }
 0x9c3   : > { %v4741_v47 = vpop.f32.mrb[21].mxu0 }
 0x9c4   : > { %v1915_v48 = vadd.f32 %v6671_v61, %v1907_v40  ;;  %v4742_v43 = vadd.f32 %v4741_v47, %v4740_v46 }
 0x9c6   : > { %5720 = vtanh.f32 %v1915_v48  ;;  %v1912_v52 = vadd.f32 %v5053_v32, %v4742_v43  ;;  %v4484_v59 = vmul.f32 -1.442695, %v1915_v48 }
 0x9c8   : > { %v1916_v53 = vadd.f32 %v6671_v61, %v1912_v52 }
 0x9ca   : > { %5722 = vtanh.f32 %v1916_v53  ;;  %v4485_v60 = vmul.f32 -1.442695, %v1916_v53 }
 0x9cb   : > { %5724 = vpow2.f32 %v4484_v59  ;;  %v4492_v59 = vld [vmem:[%s6429_s15 + $0x60] sm:$0xff] }
 0x9cc   : > { %5726 = vpow2.f32 %v4485_v60 }
 0x9d0   : > { %v5721_v55 = vpop.eup %5720 }
 0x9d1   : > { %1935 = vrot.lane.b32.xlu0 %v5721_v55, %s6071_s25  ;;  %v4493_v55 = vld [vmem:[%s6429_s15 + $0x68] sm:$0xff] }
 0x9d4   : > { %v5723_v58 = vpop.eup %5722 }
 0x9d5   : > { %1937 = vrot.lane.b32.xlu1 %v5723_v58, %s6071_s25  ;;  %v5725_v0 = vpop.eup %5724 }
 0x9d6   : > { %v1923_v1 = vadd.f32 1.0, %v5725_v0  ;;  %v5727_v2 = vpop.eup %5726 }
 0x9d7   : > { %v1924_v3 = vadd.f32 1.0, %v5727_v2 }
 0x9d8   : > { %5728 = vrcp.f32 %v1923_v1 }
 0x9d9   : > { %5730 = vrcp.f32 %v1924_v3 }
 0x9e2   : > { %v5729_v6 = vpop.eup %5728 }
 0x9e3   : > { %v5731_v12 = vpop.eup %5730  ;;  %v1931_v18 = vmul.f32 %v5729_v6, %v6773_v34 }
 0x9e4   : > { %v1932_v22 = vmul.f32 %v5731_v12, %v6777_v37 }
 0xa43   : > { %v1936_v7 = vpop.permute.xlu0 %1935 }
 0xa44   : > { %v1941_v9 = vmul.f32 %v5729_v6, %v1936_v7 }
 0xa46   : > { %1945 = vrot.lane.b32.xlu0 %v1941_v9, %s6070_s17  ;;  %v4494_v9 = vld [vmem:[%s6429_s15 + $0x70] sm:$0xff] }
 0xa47   : > { %v1938_v13 = vpop.permute.xlu1 %1937 }
 0xa48   : > { %v1942_v15 = vmul.f32 %v5731_v12, %v1938_v13 }
 0xa4a   : > { %1947 = vrot.lane.b32.xlu1 %v1942_v15, %s6070_s17 }
 0xab8   : > { %v1946_v20 = vpop.permute.xlu0 %1945 }
 0xab9   : > { %v6843_v21 = vadd.f32 %v1946_v20, %v1931_v18 }
 0xabb   : > { %5732 = vtanh.f32 %v6843_v21 }
 0xabc   : > { %v1948_v24 = vpop.permute.xlu1 %1947 }
 0xabd   : > { %v6847_v25 = vadd.f32 %v1948_v24, %v1932_v22 }
 0xabf   : > { %5734 = vtanh.f32 %v6847_v25 }
 0xac5   : > { %v5733_v26 = vpop.eup %5732 }
 0xac6   : > { %1957 = vrot.lane.b32.xlu0 %v5733_v26, %s6071_s25 }
 0xac9   : > { %v5735_v28 = vpop.eup %5734 }
 0xaca   : > { %1959 = vrot.lane.b32.xlu1 %v5735_v28, %s6071_s25 }
 0xb38   : > { %v1958_v34 = vpop.permute.xlu0 %1957 }
 0xb39   : > { %v1963_v32 = vmul.f32 %v5729_v6, %v1958_v34  ;;  %v4495_v6 = vld [vmem:[%s6429_s15 + $0x78] sm:$0xff] }
 0xb3b   : > { %1967 = vrot.lane.b32.xlu0 %v1963_v32, %s6070_s17 }
 0xb3c   : > { %v1960_v33 = vpop.permute.xlu1 %1959 }
 0xb3d   : > { %v1964_v35 = vmul.f32 %v5731_v12, %v1960_v33 }
 0xb3f   : > { %1969 = vrot.lane.b32.xlu1 %v1964_v35, %s6070_s17  ;;  %2159 = vrot.lane.b32.xlu0 %v1963_v32, %s6070_s17 }
 0xb43   : > { %2161 = vrot.lane.b32.xlu1 %v1964_v35, %s6070_s17 }
 0xbad   : > { %v1968_v37 = vpop.permute.xlu0 %1967 }
 0xbae   : > { %5062 = vmatprep.mubr.msk.f32.mxu1 %vm762_vm1, %v1968_v37 }
 0xbb1   : > { %v1970_v36 = vpop.permute.xlu1 %1969  ;;  %v2160_v40 = vpop.permute.xlu0 %2159 }
 0xbb2   : > { %5063 = vmatmul.mubr.msk.f32.vlgmr.msra.gmra.mrb[12].mxu1 %vm762_vm1, %v1970_v36 }
 0xbb3   : > { %4497 = vmatpush1.msk.msra.mxu1 %vm843_vm0, %v6451_v17  ;;  %2140 = vmatprep.mubr.f32.mxu1 %v6069_v16 }
 0xbb4   : > { %5320 = vmatprep.subr.bf16.mxu1 %v6467_v23 }
 0xbb5   : > { %v2162_v17 = vpop.permute.xlu1 %2161 }
 0xbb6   : > { %4498 = vmatmul.mubr.msk.f32.vlgmr.msra.gmra.mrb[14].mxu1 %vm836_vm2, %v4490_v41 }
 0xbb7   : > { %5322 = vmatpush3.bf16.msra.mxu1 %v6467_v23  ;;  %2146 = vmatprep.mubr.f32.mxu1 %v6069_v16 }
 0xbb8   : > { %5324 = vmatprep.subr.bf16.mxu1 %v6474_v27 }
 0xbba   : > { %4499 = vmatmul.mubr.msk.f32.gmra.mrb[16].mxu1 %vm836_vm2, %v4491_v42 }
 0xbbb   : > { %5326 = vmatpush3.bf16.msra.mxu1 %v6474_v27  ;;  %5073 = vmatprep.mubr.msk.f32.mxu1 %vm762_vm1, %v2160_v40 }
 0xbbc   : > { %5328 = vmatprep.subr.bf16.mxu1 %v6497_v31 }
 0xbbe   : > { %5074 = vmatmul.mubr.msk.f32.vlgmr.msra.gmra.mrb[18].mxu1 %vm762_vm1, %v2162_v17 }
 0xbbf   : > { %5330 = vmatpush3.bf16.msra.mxu1 %v6515_v38 }
 0xbc0   : > { %5332 = vmatprep.subr.bf16.mxu1 %v6519_v39 }
 0xbc3   : > { %5334 = vmatpush3.bf16.msra.mxu1 %v6535_v44 }
 0xbc4   : > { %5336 = vmatprep.subr.bf16.mxu1 %v6538_v45 }
 0xbc7   : > { %5338 = vmatpush3.bf16.msra.mxu1 %v6553_v50 }
 0xbc8   : > { %5340 = vmatprep.subr.bf16.mxu1 %v6556_v51 }
 0xbcb   : > { %5342 = vmatpush3.bf16.msra.mxu1 %v6571_v56 }
 0xbcc   : > { %5344 = vmatprep.subr.bf16.mxu1 %v6574_v57 }
 0xbcf   : > { %5346 = vmatpush3.bf16.msra.mxu1 %v6589_v62 }
 0xbd0   : > { %5348 = vmatprep.subr.bf16.mxu1 %v6592_v63 }
 0xbd3   : > { %5350 = vmatpush3.bf16.msra.mxu1 %v6607_v4 }
 0xbd4   : > { %5352 = vmatprep.subr.bf16.mxu1 %v6610_v5 }
 0xbd7   : > { %5354 = vmatpush3.bf16.msra.mxu1 %v6620_v8 }
 0xbd8   : > { %5356 = vmatprep.subr.bf16.mxu1 %v6629_v11 }
 0xbdb   : > { %5358 = vmatpush3.bf16.msra.mxu1 %v6637_v14 }
 0xbdc   : > { %5408 = vmatprep.subr.bf16.mxu1 %v6685_v49 }
 0xc85   : > { %v5064_v46 = vpop.f32.mrb[12].mxu1 }
 0xc86   : > { %v2047_v47 = vadd.f32 %v5064_v46, %v6743_v10  ;;  %v2041_v48 = vpop.f32.mrb[13].mxu1 }
 0xc87   : > { %v2042_v43 = vadd.f32 %v6743_v10, %v2041_v48 }
 0xc88   : > { %4489 = vst [vmem:[%s6749_s11 + $0x28] sm:$0xff] %v2047_v47 }
 0xc89   : > { %4488 = vst [vmem:[%s6749_s11 + $0x20] sm:$0xff] %v2042_v43  ;;  %v2142_v52 = vpop.f32.mrb[14].mxu1 }
 0xc8a   : > { %v2143_v53 = vadd.f32 %v2142_v52, %v6656_v29  ;;  %v2144_v58 = vpop.f32.mrb[15].mxu1 }
 0xc8b   : > { %v2145_v60 = vadd.f32 %v2144_v58, %v6658_v30 }
 0xc8c   : > { %v2153_v2 = vmul.f32 %v4492_v59, %v2143_v53 }
 0xc8d   : > { %v2154_v0 = vmul.f32 %v4493_v55, %v2145_v60  ;;  %v2148_v1 = vpop.f32.mrb[16].mxu1 }
 0xc8e   : > { %v2149_v3 = vadd.f32 %v2148_v1, %v6656_v29  ;;  %v2150_v7 = vpop.f32.mrb[17].mxu1 }
 0xc8f   : > { %v2151_v12 = vadd.f32 %v2150_v7, %v6658_v30  ;;  %2306 = vmatprep.mubr.f32.mxu1 %v2154_v0 }
 0xc90   : > { %2307 = vmatmul.mubr.f32.vlgmr.msra.gmra.mrb[20].mxu1 %v2153_v2  ;;  %v2155_v18 = vmul.f32 %v4494_v9, %v2149_v3 }
 0xc91   : > { %v2156_v13 = vmul.f32 %v4495_v6, %v2151_v12  ;;  %v5075_v15 = vpop.f32.mrb[18].mxu1  ;;  %5410 = vmatpush3.bf16.msra.mxu1 %v6685_v49 }
 0xc92   : > { %v2233_v20 = vpop.f32.mrb[19].mxu1  ;;  %5412 = vmatprep.subr.bf16.mxu1 %v6687_v54 }
 0xc93   : > { %2311 = vmatprep.mubr.f32.mxu1 %v2156_v13 }
 0xc94   : > { %2312 = vmatmul.mubr.f32.gmra.mrb[22].mxu1 %v2155_v18 }
 0xc95   : > { %5414 = vmatpush3.bf16.msra.mxu1 %v6687_v54 }
 0xc96   : > { %4532 = vmatprep.subr.msk.mxu1 %vm843_vm0, %v6456_v19 }
 0xd63   : > { %v4787_v22 = vpop.f32.mrb[20].mxu1 }
 0xd64   : > { %v4788_v24 = vpop.f32.mrb[21].mxu1 }
 0xd65   : > { %v4789_v26 = vadd.f32 %v4788_v24, %v4787_v22  ;;  %v4508_v22 = vld [vmem:[%s6426_s1 + $0x40] sm:$0xff]  ;;  %v4509_v24 = vld [vmem:[%s6426_s1 + $0x48] sm:$0xff] }
 0xd67   : > { %v2309_v28 = vadd.f32 %v4789_v26, %v2233_v20  ;;  %v4790_v34 = vpop.f32.mrb[22].mxu1  ;;  %v6928_v20 = vld [vmem:[#allocation6] sm:$0x77] }
 0xd68   : > { %v4791_v32 = vpop.f32.mrb[23].mxu1 }
 0xd69   : > { %v2317_v33 = vadd.f32 %v6671_v61, %v2309_v28  ;;  %v4792_v35 = vadd.f32 %v4791_v32, %v4790_v34 }
 0xd6b   : > { %5736 = vtanh.f32 %v2317_v33  ;;  %v2314_v37 = vadd.f32 %v5075_v15, %v4792_v35  ;;  %v4502_v40 = vmul.f32 -1.442695, %v2317_v33 }
 0xd6d   : > { %v2318_v36 = vadd.f32 %v6671_v61, %v2314_v37 }
 0xd6f   : > { %5738 = vtanh.f32 %v2318_v36  ;;  %v4503_v17 = vmul.f32 -1.442695, %v2318_v36 }
 0xd70   : > { %5740 = vpow2.f32 %v4502_v40  ;;  %v4510_v40 = vld [vmem:[%s6429_s15 + $0x80] sm:$0xff] }
 0xd71   : > { %5742 = vpow2.f32 %v4503_v17 }
 0xd75   : > { %v5737_v41 = vpop.eup %5736 }
 0xd76   : > { %2337 = vrot.lane.b32.xlu0 %v5737_v41, %s6071_s25  ;;  %v4511_v41 = vld [vmem:[%s6429_s15 + $0x88] sm:$0xff] }
 0xd79   : > { %v5739_v42 = vpop.eup %5738 }
 0xd7a   : > { %2339 = vrot.lane.b32.xlu1 %v5739_v42, %s6071_s25  ;;  %v5741_v46 = vpop.eup %5740 }
 0xd7b   : > { %v2325_v47 = vadd.f32 1.0, %v5741_v46  ;;  %v5743_v48 = vpop.eup %5742 }
 0xd7c   : > { %v2326_v43 = vadd.f32 1.0, %v5743_v48 }
 0xd7d   : > { %5744 = vrcp.f32 %v2325_v47 }
 0xd7e   : > { %5746 = vrcp.f32 %v2326_v43 }
 0xd87   : > { %v5745_v52 = vpop.eup %5744 }
 0xd88   : > { %v5747_v55 = vpop.eup %5746  ;;  %v2333_v60 = vmul.f32 %v5745_v52, %v6843_v21 }
 0xd89   : > { %v2334_v2 = vmul.f32 %v5747_v55, %v6847_v25 }
 0xde8   : > { %v2338_v53 = vpop.permute.xlu0 %2337 }
 0xde9   : > { %v2343_v61 = vmul.f32 %v5745_v52, %v2338_v53 }
 0xdeb   : > { %2347 = vrot.lane.b32.xlu0 %v2343_v61, %s6070_s17  ;;  %v4512_v61 = vld [vmem:[%s6429_s15 + $0x90] sm:$0xff] }
 0xdec   : > { %v2340_v58 = vpop.permute.xlu1 %2339 }
 0xded   : > { %v2344_v59 = vmul.f32 %v5747_v55, %v2340_v58 }
 0xdef   : > { %2349 = vrot.lane.b32.xlu1 %v2344_v59, %s6070_s17 }
 0xe5d   : > { %v2348_v0 = vpop.permute.xlu0 %2347 }
 0xe5e   : > { %v6913_v1 = vadd.f32 %v2348_v0, %v2333_v60 }
 0xe60   : > { %5748 = vtanh.f32 %v6913_v1 }
 0xe61   : > { %v2350_v3 = vpop.permute.xlu1 %2349 }
 0xe62   : > { %v6917_v6 = vadd.f32 %v2350_v3, %v2334_v2 }
 0xe64   : > { %5750 = vtanh.f32 %v6917_v6 }
 0xe6a   : > { %v5749_v7 = vpop.eup %5748 }
 0xe6b   : > { %2359 = vrot.lane.b32.xlu0 %v5749_v7, %s6071_s25 }
 0xe6e   : > { %v5751_v9 = vpop.eup %5750 }
 0xe6f   : > { %2361 = vrot.lane.b32.xlu1 %v5751_v9, %s6071_s25 }
 0xedd   : > { %v2360_v21 = vpop.permute.xlu0 %2359 }
 0xede   : > { %v2365_v12 = vmul.f32 %v5745_v52, %v2360_v21  ;;  %v4513_v52 = vld [vmem:[%s6429_s15 + $0x98] sm:$0xff] }
 0xee0   : > { %2369 = vrot.lane.b32.xlu0 %v2365_v12, %s6070_s17 }
 0xee1   : > { %v2362_v13 = vpop.permute.xlu1 %2361 }
 0xee2   : > { %v2366_v15 = vmul.f32 %v5747_v55, %v2362_v13  ;;  %v6981_v13 = vld [vmem:[%s7339_s6] ss:$0 sm:$0xff] }
 0xee4   : > { %2371 = vrot.lane.b32.xlu1 %v2366_v15, %s6070_s17  ;;  %2561 = vrot.lane.b32.xlu0 %v2365_v12, %s6070_s17 }
 0xee8   : > { %2563 = vrot.lane.b32.xlu1 %v2366_v15, %s6070_s17 }
 0xf52   : > { %v2370_v25 = vpop.permute.xlu0 %2369 }
 0xf53   : > { %5084 = vmatprep.mubr.msk.f32.mxu0 %vm762_vm1, %v2370_v25 }
 0xf56   : > { %v2372_v18 = vpop.permute.xlu1 %2371  ;;  %v2562_v26 = vpop.permute.xlu0 %2561 }
 0xf57   : > { %5085 = vmatmul.mubr.msk.f32.vlgmr.msra.gmra.mrb[22].mxu0 %vm762_vm1, %v2372_v18 }
 0xf58   : > { %4515 = vmatpush1.msk.msra.mxu0 %vm843_vm0, %v6928_v20  ;;  %2542 = vmatprep.mubr.f32.mxu0 %v6069_v16 }
 0xf59   : > { %5368 = vmatprep.subr.bf16.mxu0 %v6467_v23 }
 0xf5a   : > { %v2564_v28 = vpop.permute.xlu1 %2563 }
 0xf5b   : > { %4516 = vmatmul.mubr.msk.f32.vlgmr.msra.gmra.mrb[24].mxu0 %vm836_vm2, %v4508_v22 }
 0xf5c   : > { %5370 = vmatpush3.bf16.msra.mxu0 %v6467_v23  ;;  %2548 = vmatprep.mubr.f32.mxu0 %v6069_v16 }
 0xf5d   : > { %5372 = vmatprep.subr.bf16.mxu0 %v6474_v27 }
 0xf5f   : > { %4517 = vmatmul.mubr.msk.f32.gmra.mrb[26].mxu0 %vm836_vm2, %v4509_v24 }
 0xf60   : > { %5374 = vmatpush3.bf16.msra.mxu0 %v6474_v27  ;;  %5095 = vmatprep.mubr.msk.f32.mxu0 %vm762_vm1, %v2562_v26 }
 0xf61   : > { %5376 = vmatprep.subr.bf16.mxu0 %v6497_v31 }
 0xf63   : > { %5096 = vmatmul.mubr.msk.f32.vlgmr.msra.gmra.mrb[28].mxu0 %vm762_vm1, %v2564_v28 }
 0xf64   : > { %5378 = vmatpush3.bf16.msra.mxu0 %v6515_v38 }
 0xf65   : > { %5380 = vmatprep.subr.bf16.mxu0 %v6519_v39 }
 0xf68   : > { %5382 = vmatpush3.bf16.msra.mxu0 %v6535_v44 }
 0xf69   : > { %5384 = vmatprep.subr.bf16.mxu0 %v6538_v45 }
 0xf6c   : > { %5386 = vmatpush3.bf16.msra.mxu0 %v6553_v50 }
 0xf6d   : > { %5388 = vmatprep.subr.bf16.mxu0 %v6556_v51 }
 0xf70   : > { %5390 = vmatpush3.bf16.msra.mxu0 %v6571_v56 }
 0xf71   : > { %5392 = vmatprep.subr.bf16.mxu0 %v6574_v57 }
 0xf74   : > { %5394 = vmatpush3.bf16.msra.mxu0 %v6589_v62 }
 0xf75   : > { %5396 = vmatprep.subr.bf16.mxu0 %v6592_v63 }
 0xf78   : > { %5398 = vmatpush3.bf16.msra.mxu0 %v6607_v4 }
 0xf79   : > { %5400 = vmatprep.subr.bf16.mxu0 %v6610_v5 }
 0xf7c   : > { %5402 = vmatpush3.bf16.msra.mxu0 %v6620_v8 }
 0xf7d   : > { %5404 = vmatprep.subr.bf16.mxu0 %v6629_v11 }
 0xf80   : > { %5406 = vmatpush3.bf16.msra.mxu0 %v6637_v14 }
 0xf81   : > { %5456 = vmatprep.subr.bf16.mxu0 %v6685_v49 }
0x102a   : > { %v5086_v34 = vpop.f32.mrb[22].mxu0 }
0x102b   : > { %v2449_v32 = vadd.f32 %v5086_v34, %v6743_v10  ;;  %v2443_v33 = vpop.f32.mrb[23].mxu0 }
0x102c   : > { %v2444_v35 = vadd.f32 %v6743_v10, %v2443_v33 }
0x102d   : > { %4507 = vst [vmem:[%s6749_s11 + $0x38] sm:$0xff] %v2449_v32 }
0x102e   : > { %4506 = vst [vmem:[%s6749_s11 + $0x30] sm:$0xff] %v2444_v35  ;;  %v2544_v37 = vpop.f32.mrb[24].mxu0 }
0x102f   : > { %v2545_v36 = vadd.f32 %v2544_v37, %v6656_v29  ;;  %v2546_v42 = vpop.f32.mrb[25].mxu0 }
0x1030   : > { %v2547_v17 = vadd.f32 %v2546_v42, %v6658_v30 }
0x1031   : > { %v2555_v48 = vmul.f32 %v4510_v40, %v2545_v36 }
0x1032   : > { %v2556_v46 = vmul.f32 %v4511_v41, %v2547_v17  ;;  %v2550_v47 = vpop.f32.mrb[26].mxu0 }
0x1033   : > { %v2551_v43 = vadd.f32 %v2550_v47, %v6656_v29  ;;  %v2552_v53 = vpop.f32.mrb[27].mxu0 }
0x1034   : > { %v2553_v55 = vadd.f32 %v2552_v53, %v6658_v30  ;;  %2708 = vmatprep.mubr.f32.mxu0 %v2556_v46 }
0x1035   : > { %2709 = vmatmul.mubr.f32.vlgmr.msra.gmra.mrb[30].mxu0 %v2555_v48  ;;  %v2557_v60 = vmul.f32 %v4512_v61, %v2551_v43 }
0x1036   : > { %v2558_v58 = vmul.f32 %v4513_v52, %v2553_v55  ;;  %v5097_v59 = vpop.f32.mrb[28].mxu0  ;;  %5458 = vmatpush3.bf16.msra.mxu0 %v6685_v49 }
0x1037   : > { %v2635_v0 = vpop.f32.mrb[29].mxu0  ;;  %5460 = vmatprep.subr.bf16.mxu0 %v6687_v54 }
0x1038   : > { %2713 = vmatprep.mubr.f32.mxu0 %v2558_v58 }
0x1039   : > { %2714 = vmatmul.mubr.f32.gmra.mrb[32].mxu0 %v2557_v60 }
0x103a   : > { %5462 = vmatpush3.bf16.msra.mxu0 %v6687_v54 }
0x103b   : > { %4550 = vmatprep.subr.msk.mxu0 %vm843_vm0, %v6456_v19 }
0x1108   : > { %v4837_v2 = vpop.f32.mrb[30].mxu0 }
0x1109   : > { %v4838_v3 = vpop.f32.mrb[31].mxu0 }
0x110a   : > { %v4839_v7 = vadd.f32 %v4838_v3, %v4837_v2  ;;  %v4526_v3 = vld [vmem:[%s6426_s1 + $0x50] sm:$0xff] }
0x110c   : > { %v2711_v9 = vadd.f32 %v4839_v7, %v2635_v0  ;;  %v4840_v21 = vpop.f32.mrb[32].mxu0  ;;  %v4527_v7 = vld [vmem:[%s6426_s1 + $0x58] sm:$0xff] }
0x110d   : > { %v4841_v12 = vpop.f32.mrb[33].mxu0 }
0x110e   : > { %v2719_v15 = vadd.f32 %v6981_v13, %v2711_v9  ;;  %v4842_v25 = vadd.f32 %v4841_v12, %v4840_v21 }
0x1110   : > { %5752 = vtanh.f32 %v2719_v15  ;;  %v2716_v18 = vadd.f32 %v5097_v59, %v4842_v25  ;;  %v4520_v28 = vmul.f32 -1.442695, %v2719_v15 }
0x1112   : > { %v2720_v22 = vadd.f32 %v6981_v13, %v2716_v18 }
0x1114   : > { %5754 = vtanh.f32 %v2720_v22  ;;  %v4521_v34 = vmul.f32 -1.442695, %v2720_v22 }
0x1115   : > { %5756 = vpow2.f32 %v4520_v28 }
0x1116   : > { %5758 = vpow2.f32 %v4521_v34  ;;  %v4528_v34 = vld [vmem:[%s6429_s15 + $0xa0] sm:$0xff] }
0x111a   : > { %v5753_v24 = vpop.eup %5752 }
0x111b   : > { %2739 = vrot.lane.b32.xlu0 %v5753_v24, %s6071_s25 }
0x111e   : > { %v5755_v26 = vpop.eup %5754 }
0x111f   : > { %2741 = vrot.lane.b32.xlu1 %v5755_v26, %s6071_s25  ;;  %v5757_v32 = vpop.eup %5756  ;;  %v4529_v26 = vld [vmem:[%s6429_s15 + $0xa8] sm:$0xff] }
0x1120   : > { %v2727_v33 = vadd.f32 1.0, %v5757_v32  ;;  %v5759_v35 = vpop.eup %5758 }
0x1121   : > { %v2728_v37 = vadd.f32 1.0, %v5759_v35 }
0x1122   : > { %5760 = vrcp.f32 %v2727_v33 }
0x1123   : > { %5762 = vrcp.f32 %v2728_v37 }
0x112c   : > { %v5761_v36 = vpop.eup %5760 }
0x112d   : > { %v5763_v40 = vpop.eup %5762  ;;  %v2735_v47 = vmul.f32 %v5761_v36, %v6913_v1 }
0x112e   : > { %v2736_v52 = vmul.f32 %v5763_v40, %v6917_v6 }
0x118d   : > { %v2740_v41 = vpop.permute.xlu0 %2739 }
0x118e   : > { %v2745_v42 = vmul.f32 %v5761_v36, %v2740_v41  ;;  %v4531_v41 = vld [vmem:[%s6429_s15 + $0xb8] sm:$0xff] }
0x1190   : > { %2749 = vrot.lane.b32.xlu0 %v2745_v42, %s6070_s17 }
0x1191   : > { %v2742_v17 = vpop.permute.xlu1 %2741 }
0x1192   : > { %v2746_v46 = vmul.f32 %v5763_v40, %v2742_v17 }
0x1194   : > { %2751 = vrot.lane.b32.xlu1 %v2746_v46, %s6070_s17 }
0x1202   : > { %v2750_v48 = vpop.permute.xlu0 %2749 }
0x1203   : > { %v6990_v43 = vadd.f32 %v2750_v48, %v2735_v47 }
0x1205   : > { %5764 = vtanh.f32 %v6990_v43 }
0x1206   : > { %v2752_v53 = vpop.permute.xlu1 %2751 }
0x1207   : > { %v6994_v61 = vadd.f32 %v2752_v53, %v2736_v52 }
0x1209   : > { %5766 = vtanh.f32 %v6994_v61 }
0x120f   : > { %v5765_v55 = vpop.eup %5764 }
0x1210   : > { %2761 = vrot.lane.b32.xlu0 %v5765_v55, %s6071_s25 }
0x1213   : > { %v5767_v58 = vpop.eup %5766 }
0x1214   : > { %2763 = vrot.lane.b32.xlu1 %v5767_v58, %s6071_s25 }
0x1282   : > { %v2762_v1 = vpop.permute.xlu0 %2761 }
0x1283   : > { %v2767_v59 = vmul.f32 %v5761_v36, %v2762_v1 }
0x1285   : > { %2771 = vrot.lane.b32.xlu0 %v2767_v59, %s6070_s17 }
0x1286   : > { %v2764_v60 = vpop.permute.xlu1 %2763 }
0x1287   : > { %v2768_v0 = vmul.f32 %v5763_v40, %v2764_v60  ;;  %v4530_v40 = vld [vmem:[%s6429_s15 + $0xb0] sm:$0xff] }
0x1289   : > { %2773 = vrot.lane.b32.xlu1 %v2768_v0, %s6070_s17  ;;  %2963 = vrot.lane.b32.xlu0 %v2767_v59, %s6070_s17 }
0x128d   : > { %2965 = vrot.lane.b32.xlu1 %v2768_v0, %s6070_s17 }
0x12f7   : > { %v2772_v6 = vpop.permute.xlu0 %2771 }
0x12f8   : > { %5106 = vmatprep.mubr.msk.f32.mxu1 %vm762_vm1, %v2772_v6 }
0x12fb   : > { %v2774_v2 = vpop.permute.xlu1 %2773  ;;  %v2964_v9 = vpop.permute.xlu0 %2963 }
0x12fc   : > { %5107 = vmatmul.mubr.msk.f32.vlgmr.msra.gmra.mrb[24].mxu1 %vm762_vm1, %v2774_v2 }
0x12fd   : > { %4533 = vmatpush1.msk.msra.mxu1 %vm843_vm0, %v6928_v20  ;;  %2944 = vmatprep.mubr.f32.mxu1 %v6069_v16 }
0x12fe   : > { %5416 = vmatprep.subr.bf16.mxu1 %v6467_v23 }
0x12ff   : > { %v2966_v21 = vpop.permute.xlu1 %2965 }
0x1300   : > { %4534 = vmatmul.mubr.msk.f32.vlgmr.msra.gmra.mrb[26].mxu1 %vm836_vm2, %v4526_v3 }
0x1301   : > { %5418 = vmatpush3.bf16.msra.mxu1 %v6467_v23  ;;  %2950 = vmatprep.mubr.f32.mxu1 %v6069_v16 }
0x1302   : > { %5420 = vmatprep.subr.bf16.mxu1 %v6474_v27 }
0x1304   : > { %4535 = vmatmul.mubr.msk.f32.gmra.mrb[28].mxu1 %vm836_vm2, %v4527_v7 }
0x1305   : > { %5422 = vmatpush3.bf16.msra.mxu1 %v6474_v27  ;;  %5117 = vmatprep.mubr.msk.f32.mxu1 %vm762_vm1, %v2964_v9 }
0x1306   : > { %5424 = vmatprep.subr.bf16.mxu1 %v6497_v31 }
0x1308   : > { %5118 = vmatmul.mubr.msk.f32.vlgmr.msra.gmra.mrb[30].mxu1 %vm762_vm1, %v2966_v21 }
0x1309   : > { %5426 = vmatpush3.bf16.msra.mxu1 %v6515_v38 }
0x130a   : > { %5428 = vmatprep.subr.bf16.mxu1 %v6519_v39 }
0x130d   : > { %5430 = vmatpush3.bf16.msra.mxu1 %v6535_v44 }
0x130e   : > { %5432 = vmatprep.subr.bf16.mxu1 %v6538_v45 }
0x1311   : > { %5434 = vmatpush3.bf16.msra.mxu1 %v6553_v50 }
0x1312   : > { %5436 = vmatprep.subr.bf16.mxu1 %v6556_v51 }
0x1315   : > { %5438 = vmatpush3.bf16.msra.mxu1 %v6571_v56 }
0x1316   : > { %5440 = vmatprep.subr.bf16.mxu1 %v6574_v57 }
0x1319   : > { %5442 = vmatpush3.bf16.msra.mxu1 %v6589_v62 }
0x131a   : > { %5444 = vmatprep.subr.bf16.mxu1 %v6592_v63 }
0x131d   : > { %5446 = vmatpush3.bf16.msra.mxu1 %v6607_v4 }
0x131e   : > { %5448 = vmatprep.subr.bf16.mxu1 %v6610_v5 }
0x1321   : > { %5450 = vmatpush3.bf16.msra.mxu1 %v6620_v8 }
0x1322   : > { %5452 = vmatprep.subr.bf16.mxu1 %v6629_v11 }
0x1325   : > { %5454 = vmatpush3.bf16.msra.mxu1 %v6637_v14 }
0x1326   : > { %5504 = vmatprep.subr.bf16.mxu1 %v6685_v49 }
0x13cf   : > { %v5108_v12 = vpop.f32.mrb[24].mxu1 }
0x13d0   : > { %v2851_v15 = vadd.f32 %v5108_v12, %v6743_v10  ;;  %v2845_v25 = vpop.f32.mrb[25].mxu1 }
0x13d1   : > { %v2846_v18 = vadd.f32 %v6743_v10, %v2845_v25 }
0x13d2   : > { %4525 = vst [vmem:[%s6749_s11 + $0x48] sm:$0xff] %v2851_v15 }
0x13d3   : > { %4524 = vst [vmem:[%s6749_s11 + $0x40] sm:$0xff] %v2846_v18  ;;  %v2946_v22 = vpop.f32.mrb[26].mxu1 }
0x13d4   : > { %v2947_v24 = vadd.f32 %v2946_v22, %v6656_v29  ;;  %v2948_v28 = vpop.f32.mrb[27].mxu1 }
0x13d5   : > { %v2949_v32 = vadd.f32 %v2948_v28, %v6658_v30 }
0x13d6   : > { %v2957_v37 = vmul.f32 %v4528_v34, %v2947_v24 }
0x13d7   : > { %v2958_v33 = vmul.f32 %v4529_v26, %v2949_v32  ;;  %v2952_v35 = vpop.f32.mrb[28].mxu1 }
0x13d8   : > { %v2953_v36 = vadd.f32 %v2952_v35, %v6656_v29  ;;  %v2954_v42 = vpop.f32.mrb[29].mxu1 }
0x13d9   : > { %v2955_v10 = vadd.f32 %v2954_v42, %v6658_v30  ;;  %3110 = vmatprep.mubr.f32.mxu1 %v2958_v33 }
0x13da   : > { %3111 = vmatmul.mubr.f32.vlgmr.msra.gmra.mrb[32].mxu1 %v2957_v37  ;;  %v2959_v47 = vmul.f32 %v4530_v40, %v2953_v36 }
0x13db   : > { %v2960_v17 = vmul.f32 %v4531_v41, %v2955_v10  ;;  %v5119_v46 = vpop.f32.mrb[30].mxu1  ;;  %5506 = vmatpush3.bf16.msra.mxu1 %v6685_v49 }
0x13dc   : > { %v3037_v48 = vpop.f32.mrb[31].mxu1  ;;  %5508 = vmatprep.subr.bf16.mxu1 %v6687_v54 }
0x13dd   : > { %3115 = vmatprep.mubr.f32.mxu1 %v2960_v17 }
0x13de   : > { %3116 = vmatmul.mubr.f32.gmra.mrb[34].mxu1 %v2959_v47 }
0x13df   : > { %5510 = vmatpush3.bf16.msra.mxu1 %v6687_v54 }
0x13e0   : > { %4568 = vmatprep.subr.msk.mxu1 %vm843_vm0, %v6456_v19 }
0x14ad   : > { %v4887_v52 = vpop.f32.mrb[32].mxu1 }
0x14ae   : > { %v4888_v53 = vpop.f32.mrb[33].mxu1 }
0x14af   : > { %v4889_v55 = vadd.f32 %v4888_v53, %v4887_v52  ;;  %v4545_v52 = vld [vmem:[%s6426_s1 + $0x68] sm:$0xff] }
0x14b1   : > { %v3113_v58 = vadd.f32 %v4889_v55, %v3037_v48  ;;  %v4890_v1 = vpop.f32.mrb[34].mxu1  ;;  %v4544_v48 = vld [vmem:[%s6426_s1 + $0x60] sm:$0xff] }
0x14b2   : > { %v4891_v59 = vpop.f32.mrb[35].mxu1 }
0x14b3   : > { %v3121_v60 = vadd.f32 %v6981_v13, %v3113_v58  ;;  %v4892_v0 = vadd.f32 %v4891_v59, %v4890_v1  ;;  %v7109_v1 = vld [vmem:[%s7341_s8] ss:$0 sm:$0xff] }
0x14b5   : > { %5768 = vtanh.f32 %v3121_v60  ;;  %v3118_v6 = vadd.f32 %v5119_v46, %v4892_v0  ;;  %v4538_v19 = vmul.f32 -1.442695, %v3121_v60 }
0x14b7   : > { %v3122_v2 = vadd.f32 %v6981_v13, %v3118_v6 }
0x14b9   : > { %5770 = vtanh.f32 %v3122_v2  ;;  %v4539_v9 = vmul.f32 -1.442695, %v3122_v2 }
0x14ba   : > { %5772 = vpow2.f32 %v4538_v19  ;;  %v4546_v19 = vld [vmem:[%s6429_s15 + $0xc0] sm:$0xff] }
0x14bb   : > { %5774 = vpow2.f32 %v4539_v9 }
0x14bf   : > { %v5769_v3 = vpop.eup %5768 }
0x14c0   : > { %3141 = vrot.lane.b32.xlu0 %v5769_v3, %s6071_s25  ;;  %v4547_v3 = vld [vmem:[%s6429_s15 + $0xc8] sm:$0xff] }
0x14c3   : > { %v5771_v7 = vpop.eup %5770 }
0x14c4   : > { %3143 = vrot.lane.b32.xlu1 %v5771_v7, %s6071_s25  ;;  %v5773_v21 = vpop.eup %5772 }
0x14c5   : > { %v3129_v12 = vadd.f32 1.0, %v5773_v21  ;;  %v5775_v15 = vpop.eup %5774 }
0x14c6   : > { %v3130_v25 = vadd.f32 1.0, %v5775_v15 }
0x14c7   : > { %5776 = vrcp.f32 %v3129_v12 }
0x14c8   : > { %5778 = vrcp.f32 %v3130_v25 }
0x14d1   : > { %v5777_v18 = vpop.eup %5776 }
0x14d2   : > { %v5779_v26 = vpop.eup %5778  ;;  %v3137_v32 = vmul.f32 %v5777_v18, %v6990_v43 }
0x14d3   : > { %v3138_v37 = vmul.f32 %v5779_v26, %v6994_v61 }
0x1532   : > { %v3142_v22 = vpop.permute.xlu0 %3141 }
0x1533   : > { %v3147_v24 = vmul.f32 %v5777_v18, %v3142_v22 }
0x1535   : > { %3151 = vrot.lane.b32.xlu0 %v3147_v24, %s6070_s17  ;;  %v4548_v24 = vld [vmem:[%s6429_s15 + $0xd0] sm:$0xff] }
0x1536   : > { %v3144_v28 = vpop.permute.xlu1 %3143 }
0x1537   : > { %v3148_v34 = vmul.f32 %v5779_v26, %v3144_v28 }
0x1539   : > { %3153 = vrot.lane.b32.xlu1 %v3148_v34, %s6070_s17 }
0x15a7   : > { %v3152_v33 = vpop.permute.xlu0 %3151 }
0x15a8   : > { %v7060_v35 = vadd.f32 %v3152_v33, %v3137_v32 }
0x15aa   : > { %5780 = vtanh.f32 %v7060_v35 }
0x15ab   : > { %v3154_v36 = vpop.permute.xlu1 %3153 }
0x15ac   : > { %v7064_v41 = vadd.f32 %v3154_v36, %v3138_v37 }
0x15ae   : > { %5782 = vtanh.f32 %v7064_v41 }
0x15b4   : > { %v5781_v42 = vpop.eup %5780 }
0x15b5   : > { %3163 = vrot.lane.b32.xlu0 %v5781_v42, %s6071_s25 }
0x15b8   : > { %v5783_v40 = vpop.eup %5782 }
0x15b9   : > { %3165 = vrot.lane.b32.xlu1 %v5783_v40, %s6071_s25 }
0x1627   : > { %v3164_v43 = vpop.permute.xlu0 %3163 }
0x1628   : > { %v3169_v10 = vmul.f32 %v5777_v18, %v3164_v43  ;;  %v4549_v18 = vld [vmem:[%s6429_s15 + $0xd8] sm:$0xff] }
0x162a   : > { %3173 = vrot.lane.b32.xlu0 %v3169_v10, %s6070_s17 }
0x162b   : > { %v3166_v17 = vpop.permute.xlu1 %3165 }
0x162c   : > { %v3170_v46 = vmul.f32 %v5779_v26, %v3166_v17 }
0x162e   : > { %3175 = vrot.lane.b32.xlu1 %v3170_v46, %s6070_s17  ;;  %3365 = vrot.lane.b32.xlu0 %v3169_v10, %s6070_s17 }
0x1632   : > { %3367 = vrot.lane.b32.xlu1 %v3170_v46, %s6070_s17 }
0x169c   : > { %v3174_v61 = vpop.permute.xlu0 %3173 }
0x169d   : > { %5128 = vmatprep.mubr.msk.f32.mxu0 %vm762_vm1, %v3174_v61 }
0x16a0   : > { %v3176_v47 = vpop.permute.xlu1 %3175  ;;  %v3366_v53 = vpop.permute.xlu0 %3365 }
0x16a1   : > { %5129 = vmatmul.mubr.msk.f32.vlgmr.msra.gmra.mrb[34].mxu0 %vm762_vm1, %v3176_v47 }
0x16a2   : > { %4551 = vmatpush1.msk.msra.mxu0 %vm843_vm0, %v6928_v20  ;;  %3346 = vmatprep.mubr.f32.mxu0 %v6069_v16 }
0x16a3   : > { %5464 = vmatprep.subr.bf16.mxu0 %v6467_v23 }
0x16a4   : > { %v3368_v55 = vpop.permute.xlu1 %3367 }
0x16a5   : > { %4552 = vmatmul.mubr.msk.f32.vlgmr.msra.gmra.mrb[36].mxu0 %vm836_vm2, %v4544_v48 }
0x16a6   : > { %5466 = vmatpush3.bf16.msra.mxu0 %v6467_v23  ;;  %3352 = vmatprep.mubr.f32.mxu0 %v6069_v16 }
0x16a7   : > { %5468 = vmatprep.subr.bf16.mxu0 %v6474_v27 }
0x16a9   : > { %4553 = vmatmul.mubr.msk.f32.gmra.mrb[38].mxu0 %vm836_vm2, %v4545_v52 }
0x16aa   : > { %5470 = vmatpush3.bf16.msra.mxu0 %v6474_v27  ;;  %5139 = vmatprep.mubr.msk.f32.mxu0 %vm762_vm1, %v3366_v53 }
0x16ab   : > { %5472 = vmatprep.subr.bf16.mxu0 %v6497_v31 }
0x16ad   : > { %5140 = vmatmul.mubr.msk.f32.vlgmr.msra.gmra.mrb[40].mxu0 %vm762_vm1, %v3368_v55 }
0x16ae   : > { %5474 = vmatpush3.bf16.msra.mxu0 %v6515_v38 }
0x16af   : > { %5476 = vmatprep.subr.bf16.mxu0 %v6519_v39 }
0x16b2   : > { %5478 = vmatpush3.bf16.msra.mxu0 %v6535_v44 }
0x16b3   : > { %5480 = vmatprep.subr.bf16.mxu0 %v6538_v45 }
0x16b6   : > { %5482 = vmatpush3.bf16.msra.mxu0 %v6553_v50 }
0x16b7   : > { %5484 = vmatprep.subr.bf16.mxu0 %v6556_v51 }
0x16ba   : > { %5486 = vmatpush3.bf16.msra.mxu0 %v6571_v56 }
0x16bb   : > { %5488 = vmatprep.subr.bf16.mxu0 %v6574_v57 }
0x16be   : > { %5490 = vmatpush3.bf16.msra.mxu0 %v6589_v62 }
0x16bf   : > { %5492 = vmatprep.subr.bf16.mxu0 %v6592_v63 }
0x16c2   : > { %5494 = vmatpush3.bf16.msra.mxu0 %v6607_v4 }
0x16c3   : > { %5496 = vmatprep.subr.bf16.mxu0 %v6610_v5 }
0x16c6   : > { %5498 = vmatpush3.bf16.msra.mxu0 %v6620_v8 }
0x16c7   : > { %5500 = vmatprep.subr.bf16.mxu0 %v6629_v11 }
0x16ca   : > { %5502 = vmatpush3.bf16.msra.mxu0 %v6637_v14 }
0x16cb   : > { %5552 = vmatprep.subr.bf16.mxu0 %v6685_v49 }
0x1774   : > { %v5130_v58 = vpop.f32.mrb[34].mxu0 }
0x1775   : > { %v3253_v59 = vadd.f32 %v7109_v1, %v5130_v58  ;;  %v3247_v60 = vpop.f32.mrb[35].mxu0 }
0x1776   : > { %v3248_v0 = vadd.f32 %v7109_v1, %v3247_v60 }
0x1777   : > { %4543 = vst [vmem:[%s6749_s11 + $0x58] sm:$0xff] %v3253_v59 }
0x1778   : > { %4542 = vst [vmem:[%s6749_s11 + $0x50] sm:$0xff] %v3248_v0  ;;  %v3348_v6 = vpop.f32.mrb[36].mxu0 }
0x1779   : > { %v3349_v2 = vadd.f32 %v3348_v6, %v6656_v29  ;;  %v3350_v7 = vpop.f32.mrb[37].mxu0 }
0x177a   : > { %v3351_v9 = vadd.f32 %v3350_v7, %v6658_v30 }
0x177b   : > { %v3359_v15 = vmul.f32 %v4546_v19, %v3349_v2 }
0x177c   : > { %v3360_v21 = vmul.f32 %v4547_v3, %v3351_v9  ;;  %v3354_v12 = vpop.f32.mrb[38].mxu0 }
0x177d   : > { %v3355_v25 = vadd.f32 %v3354_v12, %v6656_v29  ;;  %v3356_v22 = vpop.f32.mrb[39].mxu0 }
0x177e   : > { %v3357_v26 = vadd.f32 %v3356_v22, %v6658_v30  ;;  %3512 = vmatprep.mubr.f32.mxu0 %v3360_v21 }
0x177f   : > { %3513 = vmatmul.mubr.f32.vlgmr.msra.gmra.mrb[42].mxu0 %v3359_v15  ;;  %v3361_v32 = vmul.f32 %v4548_v24, %v3355_v25 }
0x1780   : > { %v3362_v28 = vmul.f32 %v4549_v18, %v3357_v26  ;;  %v5141_v34 = vpop.f32.mrb[40].mxu0  ;;  %5554 = vmatpush3.bf16.msra.mxu0 %v6685_v49 }
0x1781   : > { %v3439_v33 = vpop.f32.mrb[41].mxu0  ;;  %5556 = vmatprep.subr.bf16.mxu0 %v6687_v54 }
0x1782   : > { %3517 = vmatprep.mubr.f32.mxu0 %v3362_v28 }
0x1783   : > { %3518 = vmatmul.mubr.f32.gmra.mrb[44].mxu0 %v3361_v32  ;;  %v4562_v32 = vld [vmem:[%s6426_s1 + $0x70] sm:$0xff] }
0x1784   : > { %5558 = vmatpush3.bf16.msra.mxu0 %v6687_v54 }
0x1852   : > { %v4937_v37 = vpop.f32.mrb[42].mxu0 }
0x1853   : > { %v4938_v36 = vpop.f32.mrb[43].mxu0 }
0x1854   : > { %v4939_v42 = vadd.f32 %v4938_v36, %v4937_v37 }
0x1856   : > { %v3515_v40 = vadd.f32 %v4939_v42, %v3439_v33  ;;  %v4940_v43 = vpop.f32.mrb[44].mxu0  ;;  %v4563_v33 = vld [vmem:[%s6426_s1 + $0x78] sm:$0xff]  ;;  %s6072_s1 = smov 96  }
0x1857   : > { %v4941_v10 = vpop.f32.mrb[45].mxu0 }
0x1858   : > { %v3523_v17 = vadd.f32 %v6981_v13, %v3515_v40  ;;  %v4942_v46 = vadd.f32 %v4941_v10, %v4940_v43 }
0x185a   : > { %5784 = vtanh.f32 %v3523_v17  ;;  %v3520_v61 = vadd.f32 %v5141_v34, %v4942_v46  ;;  %v4556_v54 = vmul.f32 -1.442695, %v3523_v17 }
0x185c   : > { %v3524_v49 = vadd.f32 %v6981_v13, %v3520_v61 }
0x185e   : > { %5786 = vtanh.f32 %v3524_v49  ;;  %v4557_v52 = vmul.f32 -1.442695, %v3524_v49 }
0x185f   : > { %5788 = vpow2.f32 %v4556_v54 }
0x1860   : > { %5790 = vpow2.f32 %v4557_v52 }
0x1864   : > { %v5785_v47 = vpop.eup %5784 }
0x1865   : > { %3543 = vrot.lane.b32.xlu0 %v5785_v47, %s6071_s25 }
0x1868   : > { %v5787_v48 = vpop.eup %5786 }
0x1869   : > { %3545 = vrot.lane.b32.xlu1 %v5787_v48, %s6071_s25  ;;  %v5789_v53 = vpop.eup %5788 }
0x186a   : > { %v3531_v55 = vadd.f32 1.0, %v5789_v53  ;;  %v5791_v58 = vpop.eup %5790 }
0x186b   : > { %v3532_v59 = vadd.f32 1.0, %v5791_v58 }
0x186c   : > { %5792 = vrcp.f32 %v3531_v55 }
0x186d   : > { %5794 = vrcp.f32 %v3532_v59 }
0x1876   : > { %v5793_v60 = vpop.eup %5792 }
0x1877   : > { %v5795_v2 = vpop.eup %5794  ;;  %v3539_v19 = vmul.f32 %v5793_v60, %v7060_v35 }
0x1878   : > { %v3540_v12 = vmul.f32 %v5795_v2, %v7064_v41 }
0x18d7   : > { %v3544_v0 = vpop.permute.xlu0 %3543 }
0x18d8   : > { %v3549_v6 = vmul.f32 %v5793_v60, %v3544_v0 }
0x18da   : > { %3553 = vrot.lane.b32.xlu0 %v3549_v6, %s6070_s17 }
0x18db   : > { %v3546_v3 = vpop.permute.xlu1 %3545 }
0x18dc   : > { %v3550_v7 = vmul.f32 %v5795_v2, %v3546_v3 }
0x18de   : > { %3555 = vrot.lane.b32.xlu1 %v3550_v7, %s6070_s17 }
0x194c   : > { %v3554_v9 = vpop.permute.xlu0 %3553 }
0x194d   : > { %v7133_v21 = vadd.f32 %v3554_v9, %v3539_v19 }
0x194f   : > { %5796 = vtanh.f32 %v7133_v21 }
0x1950   : > { %v3556_v15 = vpop.permute.xlu1 %3555 }
0x1951   : > { %v7137_v25 = vadd.f32 %v3556_v15, %v3540_v12 }
0x1953   : > { %5798 = vtanh.f32 %v7137_v25 }
0x1959   : > { %v5797_v18 = vpop.eup %5796 }
0x195a   : > { %3565 = vrot.lane.b32.xlu0 %v5797_v18, %s6071_s25 }
0x195d   : > { %v5799_v22 = vpop.eup %5798 }
0x195e   : > { %3567 = vrot.lane.b32.xlu1 %v5799_v22, %s6071_s25 }
0x19cc   : > { %v3566_v35 = vpop.permute.xlu0 %3565 }
0x19cd   : > { %v3571_v24 = vmul.f32 %v5793_v60, %v3566_v35 }
0x19cf   : > { %3575 = vrot.lane.b32.xlu0 %v3571_v24, %s6070_s17 }
0x19d0   : > { %v3568_v26 = vpop.permute.xlu1 %3567 }
0x19d1   : > { %v3572_v28 = vmul.f32 %v5795_v2, %v3568_v26 }
0x19d3   : > { %3577 = vrot.lane.b32.xlu1 %v3572_v28, %s6070_s17  ;;  %3767 = vrot.lane.b32.xlu0 %v3571_v24, %s6070_s17 }
0x19d7   : > { %3769 = vrot.lane.b32.xlu1 %v3572_v28, %s6070_s17 }
0x1a41   : > { %v3576_v41 = vpop.permute.xlu0 %3575 }
0x1a42   : > { %5150 = vmatprep.mubr.msk.f32.mxu1 %vm762_vm1, %v3576_v41 }
0x1a45   : > { %v3578_v34 = vpop.permute.xlu1 %3577  ;;  %v3768_v37 = vpop.permute.xlu0 %3767 }
0x1a46   : > { %5151 = vmatmul.mubr.msk.f32.vlgmr.msra.gmra.mrb[36].mxu1 %vm762_vm1, %v3578_v34 }
0x1a47   : > { %4569 = vmatpush1.msk.msra.mxu1 %vm843_vm0, %v6928_v20  ;;  %3748 = vmatprep.mubr.f32.mxu1 %v6069_v16 }
0x1a48   : > { %5512 = vmatprep.subr.bf16.mxu1 %v6467_v23 }
0x1a49   : > { %v3770_v20 = vpop.permute.xlu1 %3769 }
0x1a4a   : > { %4570 = vmatmul.mubr.msk.f32.vlgmr.msra.gmra.mrb[38].mxu1 %vm836_vm2, %v4562_v32 }
0x1a4b   : > { %5514 = vmatpush3.bf16.msra.mxu1 %v6467_v23  ;;  %3754 = vmatprep.mubr.f32.mxu1 %v6069_v16 }
0x1a4c   : > { %5516 = vmatprep.subr.bf16.mxu1 %v6474_v27 }
0x1a4e   : > { %4571 = vmatmul.mubr.msk.f32.gmra.mrb[40].mxu1 %vm836_vm2, %v4563_v33 }
0x1a4f   : > { %5518 = vmatpush3.bf16.msra.mxu1 %v6474_v27  ;;  %5161 = vmatprep.mubr.msk.f32.mxu1 %vm762_vm1, %v3768_v37 }
0x1a50   : > { %5520 = vmatprep.subr.bf16.mxu1 %v6497_v31 }
0x1a52   : > { %5162 = vmatmul.mubr.msk.f32.vlgmr.msra.gmra.mrb[42].mxu1 %vm762_vm1, %v3770_v20 }
0x1a53   : > { %5522 = vmatpush3.bf16.msra.mxu1 %v6515_v38 }
0x1a54   : > { %5524 = vmatprep.subr.bf16.mxu1 %v6519_v39 }
0x1a57   : > { %5526 = vmatpush3.bf16.msra.mxu1 %v6535_v44  ;;  %v4565_v44 = vld [vmem:[%s6429_s15 + $0xe8] sm:$0xff] }
0x1a58   : > { %5528 = vmatprep.subr.bf16.mxu1 %v6538_v45 }
0x1a5b   : > { %5530 = vmatpush3.bf16.msra.mxu1 %v6553_v50  ;;  %v4564_v50 = vld [vmem:[%s6429_s15 + $0xe0] sm:$0xff] }
0x1a5c   : > { %5532 = vmatprep.subr.bf16.mxu1 %v6556_v51 }
0x1a5f   : > { %5534 = vmatpush3.bf16.msra.mxu1 %v6571_v56 }
0x1a60   : > { %5536 = vmatprep.subr.bf16.mxu1 %v6574_v57 }
0x1a63   : > { %5538 = vmatpush3.bf16.msra.mxu1 %v6589_v62 }
0x1a64   : > { %5540 = vmatprep.subr.bf16.mxu1 %v6592_v63 }
0x1a67   : > { %5542 = vmatpush3.bf16.msra.mxu1 %v6607_v4  ;;  %v4567_v4 = vld [vmem:[%s6429_s15 + $0xf8] sm:$0xff] }
0x1a68   : > { %5544 = vmatprep.subr.bf16.mxu1 %v6610_v5 }
0x1a6b   : > { %5546 = vmatpush3.bf16.msra.mxu1 %v6620_v8  ;;  %v4566_v8 = vld [vmem:[%s6429_s15 + $0xf0] sm:$0xff]  ;;  %s4093_s15 = scalar_lea.sflag [#allocation5], %s6420_s23 }
0x1a6c   : > { %5548 = vmatprep.subr.bf16.mxu1 %v6629_v11 }
0x1a6f   : > { %5550 = vmatpush3.bf16.msra.mxu1 %v6637_v14 }
0x1b19   : > { %v5152_v16 = vpop.f32.mrb[36].mxu1 }
0x1b1a   : > { %v3655_v23 = vadd.f32 %v7109_v1, %v5152_v16  ;;  %v3649_v27 = vpop.f32.mrb[37].mxu1 }
0x1b1b   : > { %v3650_v31 = vadd.f32 %v7109_v1, %v3649_v27 }
0x1b1c   : > { %4561 = vst [vmem:[%s6749_s11 + $0x68] sm:$0xff] %v3655_v23 }
0x1b1d   : > { %4560 = vst [vmem:[%s6749_s11 + $0x60] sm:$0xff] %v3650_v31  ;;  %v3750_v38 = vpop.f32.mrb[38].mxu1 }
0x1b1e   : > { %v3751_v39 = vadd.f32 %v3750_v38, %v6656_v29  ;;  %v3752_v45 = vpop.f32.mrb[39].mxu1 }
0x1b1f   : > { %v3753_v51 = vadd.f32 %v3752_v45, %v6658_v30 }
0x1b20   : > { %v3761_v62 = vmul.f32 %v4564_v50, %v3751_v39 }
0x1b21   : > { %v3762_v56 = vmul.f32 %v4565_v44, %v3753_v51  ;;  %v3756_v57 = vpop.f32.mrb[40].mxu1 }
0x1b22   : > { %v3757_v63 = vadd.f32 %v3756_v57, %v6656_v29  ;;  %v3758_v5 = vpop.f32.mrb[41].mxu1 }
0x1b23   : > { %v3759_v11 = vadd.f32 %v3758_v5, %v6658_v30  ;;  %3914 = vmatprep.mubr.f32.mxu1 %v3762_v56 }
0x1b24   : > { %3915 = vmatmul.mubr.f32.vlgmr.msra.gmra.mrb[44].mxu1 %v3761_v62  ;;  %v3763_v42 = vmul.f32 %v4566_v8, %v3757_v63 }
0x1b25   : > { %v3764_v14 = vmul.f32 %v4567_v4, %v3759_v11  ;;  %v5163_v36 = vpop.f32.mrb[42].mxu1 }
0x1b26   : > { %v3841_v40 = vpop.f32.mrb[43].mxu1 }
0x1b27   : > { %3919 = vmatprep.mubr.f32.mxu1 %v3764_v14 }
0x1b28   : > { %3920 = vmatmul.mubr.f32.gmra.mrb[46].mxu1 %v3763_v42 }
0x1bf7   : > { %v4987_v43 = vpop.f32.mrb[44].mxu1 }
0x1bf8   : > { %v4988_v10 = vpop.f32.mrb[45].mxu1 }
0x1bf9   : > { %v4989_v17 = vadd.f32 %v4988_v10, %v4987_v43 }
0x1bfb   : > { %v3917_v46 = vadd.f32 %v4989_v17, %v3841_v40  ;;  %v4990_v61 = vpop.f32.mrb[46].mxu1 }
0x1bfc   : > { %v4991_v49 = vpop.f32.mrb[47].mxu1 }
0x1bfd   : > { %v3925_v29 = vadd.f32 %v6981_v13, %v3917_v46  ;;  %v4992_v47 = vadd.f32 %v4991_v49, %v4990_v61 }
0x1bff   : > { %5800 = vtanh.f32 %v3925_v29  ;;  %v3922_v48 = vadd.f32 %v5163_v36, %v4992_v47  ;;  %v4574_v53 = vmul.f32 -1.442695, %v3925_v29 }
0x1c01   : > { %v3926_v30 = vadd.f32 %v6981_v13, %v3922_v48 }
0x1c03   : > { %5802 = vtanh.f32 %v3926_v30  ;;  %v4575_v55 = vmul.f32 -1.442695, %v3926_v30 }
0x1c04   : > { %5804 = vpow2.f32 %v4574_v53 }
0x1c05   : > { %5806 = vpow2.f32 %v4575_v55 }
0x1c09   : > { %v5801_v54 = vpop.eup %5800 }
0x1c0a   : > { %3945 = vrot.lane.b32.xlu0 %v5801_v54, %s6071_s25 }
0x1c0d   : > { %v5803_v52 = vpop.eup %5802 }
0x1c0e   : > { %3947 = vrot.lane.b32.xlu1 %v5803_v52, %s6071_s25  ;;  %v5805_v58 = vpop.eup %5804 }
0x1c0f   : > { %v3933_v59 = vadd.f32 1.0, %v5805_v58  ;;  %v5807_v60 = vpop.eup %5806 }
0x1c10   : > { %v3934_v0 = vadd.f32 1.0, %v5807_v60 }
0x1c11   : > { %5808 = vrcp.f32 %v3933_v59 }
0x1c12   : > { %5810 = vrcp.f32 %v3934_v0 }
0x1c1b   : > { %v5809_v6 = vpop.eup %5808 }
0x1c1c   : > { %v5811_v3 = vpop.eup %5810  ;;  %v3941_v9 = vmul.f32 %v5809_v6, %v7133_v21 }
0x1c1d   : > { %v3942_v18 = vmul.f32 %v5811_v3, %v7137_v25 }
0x1c7c   : > { %v3946_v2 = vpop.permute.xlu0 %3945 }
0x1c7d   : > { %v3951_v13 = vmul.f32 %v5809_v6, %v3946_v2 }
0x1c7f   : > { %3955 = vrot.lane.b32.xlu0 %v3951_v13, %s6070_s17 }
0x1c80   : > { %v3948_v7 = vpop.permute.xlu1 %3947 }
0x1c81   : > { %v3952_v19 = vmul.f32 %v5811_v3, %v3948_v7 }
0x1c83   : > { %3957 = vrot.lane.b32.xlu1 %v3952_v19, %s6070_s17 }
0x1cf1   : > { %v3956_v12 = vpop.permute.xlu0 %3955 }
0x1cf2   : > { %v3961_v15 = vadd.f32 %v3956_v12, %v3941_v9 }
0x1cf4   : > { %5812 = vtanh.f32 %v3961_v15 }
0x1cf5   : > { %v3958_v22 = vpop.permute.xlu1 %3957 }
0x1cf6   : > { %v3962_v35 = vadd.f32 %v3958_v22, %v3942_v18 }
0x1cf8   : > { %5814 = vtanh.f32 %v3962_v35 }
0x1cfe   : > { %v5813_v24 = vpop.eup %5812 }
0x1cff   : > { %3967 = vrot.lane.b32.xlu0 %v5813_v24, %s6071_s25 }
0x1d02   : > { %v5815_v26 = vpop.eup %5814 }
0x1d03   : > { %3969 = vrot.lane.b32.xlu1 %v5815_v26, %s6071_s25 }
0x1d71   : > { %v3968_v28 = vpop.permute.xlu0 %3967 }
0x1d72   : > { %v3973_v41 = vmul.f32 %v5809_v6, %v3968_v28 }
0x1d74   : > { %3977 = vrot.lane.b32.xlu0 %v3973_v41, %s6070_s17 }
0x1d75   : > { %v3970_v21 = vpop.permute.xlu1 %3969 }
0x1d76   : > { %v3974_v34 = vmul.f32 %v5811_v3, %v3970_v21 }
0x1d78   : > { %3979 = vrot.lane.b32.xlu1 %v3974_v34, %s6070_s17  ;;  %4074 = vrot.lane.b32.xlu0 %v3973_v41, %s6070_s17 }
0x1d7c   : > { %4076 = vrot.lane.b32.xlu1 %v3974_v34, %s6070_s17  ;;  %4084 = vrot.lane.b32.xlu0 %v3961_v15, %s6072_s1  ;;  %s7221_s17 = scalar_lea.sflag [#allocation14], %s666_s24 }
0x1d80   : > { %4086 = vrot.lane.b32.xlu1 %v3962_v35, %s6072_s1 }
0x1de6   : > { %v3978_v25 = vpop.permute.xlu0 %3977 }
0x1de7   : > { %5172 = vmatprep.mubr.msk.f32.mxu0 %vm762_vm1, %v3978_v25 }
0x1dea   : > { %v3980_v32 = vpop.permute.xlu1 %3979  ;;  %v4075_v33 = vpop.permute.xlu0 %4074 }
0x1deb   : > { %4080 = vst.msk [vmem:[%s6477_s13] sm:$0xff] %vm762_vm1, %v4075_v33  ;;  %5173 = vmatmul.mubr.msk.f32.vlgmr.msra.gmra.mrb[46].mxu0 %vm762_vm1, %v3980_v32 }
0x1dee   : > { %v4077_v37 = vpop.permute.xlu1 %4076  ;;  %v4085_v20 = vpop.permute.xlu0 %4084 }
0x1def   : > { %4081 = vst.msk [vmem:[%s6477_s13 + $0x8] sm:$0xff] %vm762_vm1, %v4077_v37  ;;  %4090 = vst.msk [vmem:[%s6643_s16] sm:$0xff] %vm762_vm1, %v4085_v20 }
0x1df2   : > { %v4087_v16 = vpop.permute.xlu1 %4086 }
0x1df3   : > { %4091 = vst.msk [vmem:[%s6643_s16 + $0x8] sm:$0xff] %vm762_vm1, %v4087_v16 }
0x1ebe   : > { %v5174_v23 = vpop.f32.mrb[46].mxu0 }
0x1ebf   : > { %v4057_v27 = vadd.f32 %v7109_v1, %v5174_v23  ;;  %v4051_v31 = vpop.f32.mrb[47].mxu0 }
0x1ec0   : > { %v4052_v38 = vadd.f32 %v7109_v1, %v4051_v31 }
0x1ec1   : > { %4579 = vst [vmem:[%s6749_s11 + $0x78] sm:$0xff] %v4057_v27 }
0x1ec2   : > { %4578 = vst [vmem:[%s6749_s11 + $0x70] sm:$0xff] %v4052_v38 }
0x1ec3   : > { %s7389_s21 = sld [smem:[#allocation27_spill]]  ;;  %s7390_s28 = sld [smem:[#allocation29_spill]] }
0x1ec4   : > { %s4135_s0 = sshll.u32 %s6749_s11, 4  ;;  %s7391_s20 = sld [smem:[#allocation36_spill]]  ;;  %s4136_s0 = int_to_ptr.vmem [resolvable:$true] %s4135_s0 }
0x1ec5   : > { %s6073_s23 = smov 256   ;;  %s6074_s14 = smov 512  }
0x1ec6   : > { %s6075_s24 = smov 2   ;;  %s6076_s12 = smov 128  }
0x1ec7   : > { %s6077_s11 = smov 8   ;;  %s6078_s1 = smov [#allocation18]  }
0x1ec9   : > { %s4596_s25 = sshll.u32 %s7389_s21, 8  ;;  %p7392_p6 = scmp.ne.s32.totalorder %s7390_s28, 0 }
0x1eca   : > { %s4118_s22 = scalar_lea.hbm %s7391_s20, %s4596_s25  ;;  %s6079_s21 = smov 0  }
0x1ecb   : > { %5580 = sst [smem:[#allocation19]] (%p7392_p6), %s6073_s23 }
0x1ecc   : > { %5581 = sst [smem:[#allocation19 + $0x1]] (%p7392_p6), %s6074_s14  ;;  %s4164_s14 = sshll.u32 %s6477_s13, 4  ;;  %s7248_s14 = int_to_ptr.vmem [resolvable:$true] %s4164_s14 }
0x1ecd   : > { %5582 = sst [smem:[#allocation19 + $0x2]] (%p7392_p6), %s6075_s24  ;;  %s5931_s3 = scalar_lea.vmem %s7248_s14, 256 }
0x1ece   : > { %5583 = sst [smem:[#allocation19 + $0x3]] (%p7392_p6), %s6076_s12  ;;  %p5932_p8 = scmp.ne.s32.totalorder %s7248_s14, %s5931_s3 }
0x1ecf   : > { %5584 = sst [smem:[#allocation19 + $0x4]] (%p7392_p6), %s6076_s12 }
0x1ed0   : > { %5585 = sst [smem:[#allocation19 + $0x5]] (%p7392_p6), %s6077_s11  ;;  %p5933_p9 = pnand %p5932_p8, %p7392_p6 }
0x1ed1   : > { %5586 = dma.general (%p7392_p6), %s4136_s0, 2048, %s4118_s22, %s4093_s15, %s6078_s1, [#allocation19], %s6079_s21, 0  }
0x1ed2   : > { %s7393_s20 = sld [smem:[#allocation37_spill]]  ;;  %s7394_s12 = sld [smem:[#allocation38_spill]] }
0x1ed3   : > { %p5934_p11 = pneg %p5933_p9  ;;  %s6080_s15 = smov [#allocation13]  }
0x1ed4   : > { %s5935_s0 = sshll.u32 %s6080_s15, 4  ;;  %s5936_s0 = int_to_ptr.vmem [resolvable:$false] %s5935_s0 }
0x1ed5   : > { %s5937_s22 = scalar_lea.vmem %s5936_s0, 512  ;;  %p5938_p0 = scmp.lt.s32.totalorder %s7248_s14, %s5936_s0 }
0x1ed6   : > { %p5939_p4 = scmp.lt.s32.totalorder %s5937_s22, %s5931_s3 }
0x1ed8   : > { %s7245_s23 = scalar_lea.hbm %s7393_s20, %s4596_s25  ;;  %s7253_s11 = scalar_lea.hbm %s7394_s12, %s4596_s25 }
0x1ed9   : > { %p5940_p3 = por %p5939_p4, %p5938_p0 }
0x1edb   : > { %p5941_p10 = pnand %p5940_p3, %p5934_p11 }
0x1edd   : > { %5944 = shalt.err (!%p5941_p10)
}
0x1ede   : > { %s5945_s2 = scalar_lea.hbm %s7245_s23, 256  ;;  %s5949_s1 = scalar_lea.hbm %s7393_s20, 512 }
0x1edf   : > { %p5946_p12 = scmp.ne.s32.totalorder %s7245_s23, %s5945_s2  ;;  %p5950_p13 = scmp.lt.u32.totalorder %s7245_s23, %s7393_s20 }
0x1ee0   : > { %p5951_p1 = scmp.lt.u32.totalorder %s5949_s1, %s5945_s2  ;;  %p5953_p9 = scmp.lt.u32.totalorder %s5945_s2, %s7245_s23 }
0x1ee1   : > { %p5947_p7 = pnand %p5946_p12, %p7392_p6 }
0x1ee2   : > { %p5952_p8 = por %p5951_p1, %p5950_p13 }
0x1ee3   : > { %p5948_p2 = pneg %p5947_p7 }
0x1ee4   : > { %p5954_p11 = por %p5953_p9, %p5952_p8 }
0x1ee6   : > { %p5955_p0 = pnand %p5954_p11, %p5948_p2 }
0x1ee8   : > { %5958 = shalt.err (!%p5955_p0)
}
0x1ee9   : > { %s6081_s3 = smov 128   ;;  %s6082_s18 = smov 8  }
0x1eea   : > { %5587 = dma.vmem_to_hbm [thread:$0]  (%p7392_p6), %s7248_s14, 256, %s7245_s23, %s7221_s17, %s6081_s3, %s6081_s3, %s6082_s18  }
0x1eeb   : > { %s4180_s24 = sshll.u32 %s6643_s16, 4  ;;  %s6083_s0 = smov [#allocation15]   ;;  %s7281_s24 = int_to_ptr.vmem [resolvable:$true] %s4180_s24 }
0x1eec   : > { %s5959_s15 = scalar_lea.vmem %s7281_s24, 256  ;;  %s5963_s22 = sshll.u32 %s6083_s0, 4  ;;  %s5964_s22 = int_to_ptr.vmem [resolvable:$false] %s5963_s22 }
0x1eed   : > { %p5960_p4 = scmp.ne.s32.totalorder %s7281_s24, %s5959_s15  ;;  %s5965_s2 = scalar_lea.vmem %s5964_s22, 512 }
0x1eee   : > { %p5966_p12 = scmp.lt.s32.totalorder %s7281_s24, %s5964_s22  ;;  %p5967_p7 = scmp.lt.s32.totalorder %s5965_s2, %s5959_s15 }
0x1eef   : > { %p5961_p3 = pnand %p5960_p4, %p7392_p6 }
0x1ef0   : > { %p5968_p2 = por %p5967_p7, %p5966_p12 }
0x1ef1   : > { %p5962_p10 = pneg %p5961_p3 }
0x1ef3   : > { %p5969_p13 = pnand %p5968_p2, %p5962_p10 }
0x1ef5   : > { %5972 = shalt.err (!%p5969_p13)
}
0x1ef6   : > { %s5973_s16 = scalar_lea.hbm %s7253_s11, 256  ;;  %s5977_s13 = scalar_lea.hbm %s7394_s12, 512 }
0x1ef7   : > { %p5974_p1 = scmp.ne.s32.totalorder %s7253_s11, %s5973_s16  ;;  %p5978_p11 = scmp.lt.u32.totalorder %s7253_s11, %s7394_s12 }
0x1ef8   : > { %p5979_p0 = scmp.lt.u32.totalorder %s5977_s13, %s5973_s16  ;;  %p5981_p3 = scmp.lt.u32.totalorder %s5973_s16, %s7253_s11 }
0x1ef9   : > { %p5975_p8 = pnand %p5974_p1, %p7392_p6 }
0x1efa   : > { %p5980_p4 = por %p5979_p0, %p5978_p11 }
0x1efb   : > { %p5976_p9 = pneg %p5975_p8 }
0x1efc   : > { %p5982_p10 = por %p5981_p3, %p5980_p4 }
0x1efe   : > { %p5983_p12 = pnand %p5982_p10, %p5976_p9 }
0x1f00   : > { %5986 = shalt.err (!%p5983_p12)
}
0x1f01   : > { %5588 = dma.vmem_to_hbm [thread:$0]  (%p7392_p6), %s7281_s24, 256, %s7253_s11, %s7221_s17, %s6081_s3, %s6081_s3, %s6082_s18  }
0x1f02 PF: > { %s7395_s21 = sld [smem:[#allocation26_spill]]  ;;  %s7396_s19 = sld [smem:[#allocation31_spill]] }
0x1f08   : > { %s4195_s15 = sand.u32 1, %s7395_s21   ;;  %p7397_p7 = scmp.ne.s32.totalorder %s7396_s19, 0 }
0x1f09   : > { %s4196_s0 = scalar_lea.sflag [#allocation5], %s4195_s15 }
0x1f0a   : > { %p5600_p2 = pnand %p4416_p5, %p7397_p7 }
0x1f0c   : > { %6024 = dma.done.wait (!%p5600_p2), %s4196_s0, 2048  }
0x1f0d   : > { %6026 = vsyncadd (!%p5600_p2), %s4196_s0, 4294965248  ;;  %s7398_s28 = sadd.s32 4294967294, %s6053_s30  }
0x1f0e   : > { %s4204_s22 = sand.u32 1, %s7398_s28  }
0x1f0f   : > { %s4205_s2 = scalar_lea.sflag [#allocation14], %s4204_s22 }
0x1f10   : > { %6028 = dma.done.wait (!%p5600_p2), %s4205_s2, 512  }
0x1f11   : > { %6030 = vsyncadd (!%p5600_p2), %s4205_s2, 4294966784  ;;  %s37_s30 = sadd.s32 1, %s6053_s30   ;;  %s7399_s17 = sld [smem:[#allocation30_spill]] }
0x1f12   : > { %p34_p6 = scmp.ge.s32.totalorder %s37_s30, 4   ;;  %s7400_s11 = sld [smem:[#allocation28_spill]] }
0x1f13   : > { %s7401_s25 = smov %s6037_s26  ;;  %s7402_s26 = smov %s6041_s27 }
0x1f14   : > { %s7404_s28 = smov %s6049_s29  ;;  %36 = sbr.rel (!%p34_p6) target bundleno = 19 (0x13), region = 254 }
0x1f17   : > { %s7403_s27 = smov %s7399_s17 }
0x1f18   : > { %s7405_s29 = smov %s7400_s11 }
0x1f1b   :  { %4219 = vsyncpa [#allocation4], 1 }
0x1f1c   :  { %4221 = vsyncpa [#allocation4 + $0x1], 1 }
0x1f1d   :  { %4222 = vsyncpa [#allocation7], 1 }
0x1f1e   :  { %4223 = vsyncpa [#allocation10], 1 }
0x1f1f   :  { %4225 = vsyncpa [#allocation10 + $0x1], 1 }
0x1f20   :  { %4226 = vsyncpa [#allocation5], 1 }
0x1f21   :  { %4228 = vsyncpa [#allocation5 + $0x1], 1 }
0x1f22   :  { %4229 = vsyncpa [#allocation14], 1 }
0x1f23   :  { %4231 = vsyncpa [#allocation14 + $0x1], 1 }

</bundles_post_ra>
